<compile_context>
chip_gen: v5e
topology: v5e:2x2
jax: 0.10.0
libtpu: 0.0.40
codegen_flags: <defaults>
</compile_context>

<pallas_src>
import math

import jax
import jax.numpy as jnp
from jax import lax
from jax.experimental import pallas as pl
from jax.experimental.pallas import tpu as pltpu


# ---------------------------------------------------------------------------
# Positional-encoding table (built ONCE at init, never in the hot path).
# ---------------------------------------------------------------------------
def make_pe_table(d_model: int, max_len: int = 5000) -> jnp.ndarray:
    """Sinusoidal PE buffer, shape (max_len, d_model).

    Matches the PyTorch construction (pe[:, 0::2] = sin, pe[:, 1::2] = cos)
    for even d_model; for odd d_model the trailing cos column is truncated.
    """
    position = jnp.arange(max_len, dtype=jnp.float32)[:, None]
    div_term = jnp.exp(
        jnp.arange(0, d_model, 2, dtype=jnp.float32) * (-math.log(10000.0) / d_model)
    )
    args = position * div_term
    pe = jnp.stack([jnp.sin(args), jnp.cos(args)], axis=-1)
    return pe.reshape(max_len, -1)[:, :d_model]


# ---------------------------------------------------------------------------
# Parameters
# ---------------------------------------------------------------------------
_PARAM_ORDER = (
    "w_fe", "b_fe", "g_fe", "be_fe", "pe0",
    "ln_a_g", "ln_a_b", "wv", "bv", "wo", "bo",
    "ln_f_g", "ln_f_b", "w1", "b1", "w2", "b2",
    "wh1", "bh1", "gh", "bh_ln", "wh2", "bh2", "wh3_row", "bh3",
)


def init_params(key, input_dim, hidden_size=128, num_layers=3,
                intermediate_size=512, max_len=5000):
    H, L, F = hidden_size, num_layers, intermediate_size
    assert max_len >= 1, "max_len must cover the sequence length (here 1)"
    ks = iter(jax.random.split(key, 40))

    def w(shape, fan_in):
        return jax.random.normal(next(ks), shape, jnp.float32) / math.sqrt(fan_in)

    def b(shape):
        return jax.random.normal(next(ks), shape, jnp.float32) * 0.02

    pe = make_pe_table(H, max_len)
    return dict(
        # feature_encoder: Linear -> LayerNorm -> ReLU -> Dropout(identity)
        w_fe=w((input_dim, H), input_dim), b_fe=b((1, H)),
        g_fe=1.0 + b((1, H)), be_fe=b((1, H)),
        # positional encoding row 0 (seq_len == 1), fused into the epilogue
        pe0=pe[0:1, :],
        # transformer encoder layers (norm_first, ReLU FFN), weights stacked on axis 0
        ln_a_g=1.0 + b((L, 1, H)), ln_a_b=b((L, 1, H)),
        wv=w((L, H, H), H), bv=b((L, 1, H)),
        wo=w((L, H, H), H), bo=b((L, 1, H)),
        ln_f_g=1.0 + b((L, 1, H)), ln_f_b=b((L, 1, H)),
        w1=w((L, H, F), H), b1=b((L, 1, F)),
        w2=w((L, F, H), F), b2=b((L, 1, H)),
        # prediction_head
        wh1=w((H, H // 2), H), bh1=b((1, H // 2)),
        gh=1.0 + b((1, H // 2)), bh_ln=b((1, H // 2)),
        wh2=w((H // 2, H // 4), H // 2), bh2=b((1, H // 4)),
        wh3_row=w((1, H // 4), H // 4), bh3=b((1, 1)),
    )


# ---------------------------------------------------------------------------
# Kernel: entire forward for one batch tile, all intermediates in VMEM.
# ---------------------------------------------------------------------------
def _heart_age_kernel(
    x_ref,
    w_fe_ref, b_fe_ref, g_fe_ref, be_fe_ref, pe_ref,
    ln_a_g_ref, ln_a_b_ref, wv_ref, bv_ref, wo_ref, bo_ref,
    ln_f_g_ref, ln_f_b_ref, w1_ref, b1_ref, w2_ref, b2_ref,
    wh1_ref, bh1_ref, gh_ref, bhl_ref, wh2_ref, bh2_ref, wh3_ref, bh3_ref,
    out_ref,
):
    f32 = jnp.float32
    eps = 1e-5  # PyTorch nn.LayerNorm default

    def layer_norm(h, gamma, beta):
        mu = jnp.mean(h, axis=-1, keepdims=True)
        var = jnp.mean(jnp.square(h - mu), axis=-1, keepdims=True)
        return (h - mu) * lax.rsqrt(var + eps) * gamma + beta

    x = x_ref[...].astype(f32)

    # ---- feature_encoder: Linear -> LayerNorm -> ReLU (dropout: identity) ----
    h = jnp.dot(x, w_fe_ref[...], preferred_element_type=f32) + b_fe_ref[...]
    h = layer_norm(h, g_fe_ref[...], be_fe_ref[...])
    h = jnp.maximum(h, 0.0)

    # ---- fused positional encoding (seq_len == 1 -> pe row 0) ----
    h = h + pe_ref[...]

    # ---- transformer encoder, norm_first, seq_len == 1 ----
    # softmax over a single key == 1 => attn(x) = out_proj(value_proj(x)).
    n_layers = wv_ref.shape[0]
    for l in range(n_layers):
        hn = layer_norm(h, ln_a_g_ref[l], ln_a_b_ref[l])
        v = jnp.dot(hn, wv_ref[l], preferred_element_type=f32) + bv_ref[l]
        attn = jnp.dot(v, wo_ref[l], preferred_element_type=f32) + bo_ref[l]
        h = h + attn
        hn = layer_norm(h, ln_f_g_ref[l], ln_f_b_ref[l])
        ff = jnp.maximum(
            jnp.dot(hn, w1_ref[l], preferred_element_type=f32) + b1_ref[l], 0.0)
        ff = jnp.dot(ff, w2_ref[l], preferred_element_type=f32) + b2_ref[l]
        h = h + ff

    # ---- prediction_head ----
    p = jnp.dot(h, wh1_ref[...], preferred_element_type=f32) + bh1_ref[...]
    p = layer_norm(p, gh_ref[...], bhl_ref[...])
    p = jnp.maximum(p, 0.0)
    p = jnp.dot(p, wh2_ref[...], preferred_element_type=f32) + bh2_ref[...]
    p = jnp.maximum(p, 0.0)
    # final 32 -> 1 linear as a lane reduce (avoids an N=1 MXU matmul)
    age = jnp.sum(p * wh3_ref[...], axis=-1, keepdims=True) + bh3_ref[...]
    out_ref[...] = age.astype(out_ref.dtype)


# ---------------------------------------------------------------------------
# Wrapper
# ---------------------------------------------------------------------------
def heart_age_forward(x: jnp.ndarray, params: dict) -> jnp.ndarray:
    """x: (B, input_dim) float32 -> predicted age (B, 1)."""
    B, input_dim = x.shape
    H = params["w_fe"].shape[1]
    L = params["wv"].shape[0]
    F = params["w1"].shape[2]

    # Batch tiling: a single block for tiny batches; for larger batches use a
    # multiple-of-8 tile that yields >= 2 grid steps so the "parallel" axis can
    # be sharded across v7x's two TensorCores.
    if B <= 8:
        tile_b = B
    else:
        tile_b = min(128, ((-(-B // 2) + 7) // 8) * 8)
    grid = (pl.cdiv(B, tile_b),)

    ordered = [params[name] for name in _PARAM_ORDER]

    def resident_spec(a):
        nd = a.ndim
        return pl.BlockSpec(a.shape, lambda b, _nd=nd: (0,) * _nd)

    in_specs = [pl.BlockSpec((tile_b, input_dim), lambda b: (b, 0))]
    in_specs += [resident_spec(a) for a in ordered]

    flops = 2 * B * (input_dim * H + L * (2 * H * H + 2 * H * F)
                     + H * (H // 2) + (H // 2) * (H // 4) + (H // 4))
    bytes_accessed = (x.size * x.dtype.itemsize
                      + sum(int(a.size) * a.dtype.itemsize for a in ordered)
                      + B * 4)
    cost = pl.CostEstimate(flops=int(flops),
                           transcendentals=int((2 + 2 * L) * B),
                           bytes_accessed=int(bytes_accessed))

    return pl.pallas_call(
        _heart_age_kernel,
        out_shape=jax.ShapeDtypeStruct((B, 1), x.dtype),
        grid_spec=pltpu.PrefetchScalarGridSpec(
            num_scalar_prefetch=0,
            grid=grid,
            in_specs=in_specs,
            out_specs=pl.BlockSpec((tile_b, 1), lambda b: (b, 0)),
        ),
        compiler_params=pltpu.CompilerParams(
            dimension_semantics=("parallel",),
        ),
        cost_estimate=cost,
    )(x, *ordered)


# ---------------------------------------------------------------------------
# Pure-JAX reference (same math, outside Pallas)
# ---------------------------------------------------------------------------
def _ref_forward(x, p):
    eps = 1e-5

    def ln(h, g, b):
        mu = jnp.mean(h, axis=-1, keepdims=True)
        var = jnp.mean(jnp.square(h - mu), axis=-1, keepdims=True)
        return (h - mu) * lax.rsqrt(var + eps) * g + b

    h = x @ p["w_fe"] + p["b_fe"]
    h = jnp.maximum(ln(h, p["g_fe"], p["be_fe"]), 0.0)
    h = h + p["pe0"]
    for l in range(p["wv"].shape[0]):
        hn = ln(h, p["ln_a_g"][l], p["ln_a_b"][l])
        v = hn @ p["wv"][l] + p["bv"][l]
        h = h + (v @ p["wo"][l] + p["bo"][l])
        hn = ln(h, p["ln_f_g"][l], p["ln_f_b"][l])
        ff = jnp.maximum(hn @ p["w1"][l] + p["b1"][l], 0.0)
        h = h + (ff @ p["w2"][l] + p["b2"][l])
    q = jnp.maximum(ln(h @ p["wh1"] + p["bh1"], p["gh"], p["bh_ln"]), 0.0)
    q = jnp.maximum(q @ p["wh2"] + p["bh2"], 0.0)
    return jnp.sum(q * p["wh3_row"], axis=-1, keepdims=True) + p["bh3"]


if __name__ == "__main__":
    key = jax.random.PRNGKey(0)
    k_params, k_x1, k_x2 = jax.random.split(key, 3)

    INPUT_DIM = 32          # per-sample feature vector
    HIDDEN = 128            # HeartAgeTransformer default hidden_size
    params = init_params(k_params, INPUT_DIM, hidden_size=HIDDEN,
                         num_layers=3, intermediate_size=512)

    # (1) Small batch (single grid step).
    B1 = 2
    x1 = jax.random.normal(k_x1, (B1, INPUT_DIM), dtype=jnp.float32)
    out1 = jax.block_until_ready(heart_age_forward(x1, params))
    ref1 = _ref_forward(x1, params)
    assert out1.shape == (B1, 1)
    assert jnp.allclose(out1, ref1, atol=1e-4, rtol=1e-4), "mismatch (B=2)"

    # (2) Larger batch exercising the tiled, multi-grid-step ("parallel") path.
    B2 = 16
    x2 = jax.random.normal(k_x2, (B2, INPUT_DIM), dtype=jnp.float32)
    out2 = jax.block_until_ready(heart_age_forward(x2, params))
    ref2 = _ref_forward(x2, params)
    assert out2.shape == (B2, 1)
    assert jnp.allclose(out2, ref2, atol=1e-4, rtol=1e-4), "mismatch (B=16)"

    print("KERNEL_OK")
</pallas_src>

<mosaic_0001>
module attributes {stable_mosaic.version = 11 : i64} {
  func.func @_heart_age_kernel(%arg0: i32, %arg1: memref<2x32xf32, #tpu.memory_space<vmem>>, %arg2: memref<32x128xf32, #tpu.memory_space<vmem>>, %arg3: memref<1x128xf32, #tpu.memory_space<vmem>>, %arg4: memref<1x128xf32, #tpu.memory_space<vmem>>, %arg5: memref<1x128xf32, #tpu.memory_space<vmem>>, %arg6: memref<1x128xf32, #tpu.memory_space<vmem>>, %arg7: memref<3x1x128xf32, #tpu.memory_space<vmem>>, %arg8: memref<3x1x128xf32, #tpu.memory_space<vmem>>, %arg9: memref<3x128x128xf32, #tpu.memory_space<vmem>>, %arg10: memref<3x1x128xf32, #tpu.memory_space<vmem>>, %arg11: memref<3x128x128xf32, #tpu.memory_space<vmem>>, %arg12: memref<3x1x128xf32, #tpu.memory_space<vmem>>, %arg13: memref<3x1x128xf32, #tpu.memory_space<vmem>>, %arg14: memref<3x1x128xf32, #tpu.memory_space<vmem>>, %arg15: memref<3x128x512xf32, #tpu.memory_space<vmem>>, %arg16: memref<3x1x512xf32, #tpu.memory_space<vmem>>, %arg17: memref<3x512x128xf32, #tpu.memory_space<vmem>>, %arg18: memref<3x1x128xf32, #tpu.memory_space<vmem>>, %arg19: memref<128x64xf32, #tpu.memory_space<vmem>>, %arg20: memref<1x64xf32, #tpu.memory_space<vmem>>, %arg21: memref<1x64xf32, #tpu.memory_space<vmem>>, %arg22: memref<1x64xf32, #tpu.memory_space<vmem>>, %arg23: memref<64x32xf32, #tpu.memory_space<vmem>>, %arg24: memref<1x32xf32, #tpu.memory_space<vmem>>, %arg25: memref<1x32xf32, #tpu.memory_space<vmem>>, %arg26: memref<1x1xf32, #tpu.memory_space<vmem>>, %arg27: memref<2x1xf32, #tpu.memory_space<vmem>>) attributes {dimension_semantics = [#tpu.dimension_semantics<parallel>], iteration_bounds = array<i64: 1>, scalar_prefetch = 0 : i64, scratch_operands = 0 : i64, tpu.core_type = #tpu.core_type<tc>, window_params = [{transform_indices = @transform_0, window_bounds = array<i64: 2, 32>}, {pipeline_mode = #tpu.pipeline_mode<synchronous>, transform_indices = @transform_1, window_bounds = array<i64: 32, 128>}, {pipeline_mode = #tpu.pipeline_mode<synchronous>, transform_indices = @transform_2, window_bounds = array<i64: 1, 128>}, {pipeline_mode = #tpu.pipeline_mode<synchronous>, transform_indices = @transform_3, window_bounds = array<i64: 1, 128>}, {pipeline_mode = #tpu.pipeline_mode<synchronous>, transform_indices = @transform_4, window_bounds = array<i64: 1, 128>}, {pipeline_mode = #tpu.pipeline_mode<synchronous>, transform_indices = @transform_5, window_bounds = array<i64: 1, 128>}, {pipeline_mode = #tpu.pipeline_mode<synchronous>, transform_indices = @transform_6, window_bounds = array<i64: 3, 1, 128>}, {pipeline_mode = #tpu.pipeline_mode<synchronous>, transform_indices = @transform_7, window_bounds = array<i64: 3, 1, 128>}, {pipeline_mode = #tpu.pipeline_mode<synchronous>, transform_indices = @transform_8, window_bounds = array<i64: 3, 128, 128>}, {pipeline_mode = #tpu.pipeline_mode<synchronous>, transform_indices = @transform_9, window_bounds = array<i64: 3, 1, 128>}, {pipeline_mode = #tpu.pipeline_mode<synchronous>, transform_indices = @transform_10, window_bounds = array<i64: 3, 128, 128>}, {pipeline_mode = #tpu.pipeline_mode<synchronous>, transform_indices = @transform_11, window_bounds = array<i64: 3, 1, 128>}, {pipeline_mode = #tpu.pipeline_mode<synchronous>, transform_indices = @transform_12, window_bounds = array<i64: 3, 1, 128>}, {pipeline_mode = #tpu.pipeline_mode<synchronous>, transform_indices = @transform_13, window_bounds = array<i64: 3, 1, 128>}, {pipeline_mode = #tpu.pipeline_mode<synchronous>, transform_indices = @transform_14, window_bounds = array<i64: 3, 128, 512>}, {pipeline_mode = #tpu.pipeline_mode<synchronous>, transform_indices = @transform_15, window_bounds = array<i64: 3, 1, 512>}, {pipeline_mode = #tpu.pipeline_mode<synchronous>, transform_indices = @transform_16, window_bounds = array<i64: 3, 512, 128>}, {pipeline_mode = #tpu.pipeline_mode<synchronous>, transform_indices = @transform_17, window_bounds = array<i64: 3, 1, 128>}, {pipeline_mode = #tpu.pipeline_mode<synchronous>, transform_indices = @transform_18, window_bounds = array<i64: 128, 64>}, {pipeline_mode = #tpu.pipeline_mode<synchronous>, transform_indices = @transform_19, window_bounds = array<i64: 1, 64>}, {pipeline_mode = #tpu.pipeline_mode<synchronous>, transform_indices = @transform_20, window_bounds = array<i64: 1, 64>}, {pipeline_mode = #tpu.pipeline_mode<synchronous>, transform_indices = @transform_21, window_bounds = array<i64: 1, 64>}, {pipeline_mode = #tpu.pipeline_mode<synchronous>, transform_indices = @transform_22, window_bounds = array<i64: 64, 32>}, {pipeline_mode = #tpu.pipeline_mode<synchronous>, transform_indices = @transform_23, window_bounds = array<i64: 1, 32>}, {pipeline_mode = #tpu.pipeline_mode<synchronous>, transform_indices = @transform_24, window_bounds = array<i64: 1, 32>}, {pipeline_mode = #tpu.pipeline_mode<synchronous>, transform_indices = @transform_25, window_bounds = array<i64: 1, 1>}, {transform_indices = @transform_26, window_bounds = array<i64: 2, 1>}]} {
    %c0 = arith.constant 0 : index
    %c0_0 = arith.constant 0 : index
    %0 = vector.load %arg1[%c0, %c0_0] : memref<2x32xf32, #tpu.memory_space<vmem>>, vector<2x32xf32>
    %c0_1 = arith.constant 0 : index
    %c0_2 = arith.constant 0 : index
    %1 = vector.load %arg2[%c0_1, %c0_2] : memref<32x128xf32, #tpu.memory_space<vmem>>, vector<32x128xf32>
    %cst = arith.constant dense<0.000000e+00> : vector<2x128xf32>
    %2 = tpu.matmul %0, %1, %cst {dimension_numbers = #tpu.dot_dimension_numbers<[1], [0], [0], [1], [0, 0, 1, 1], [], []>} : vector<2x32xf32>, vector<32x128xf32>, vector<2x128xf32> -> vector<2x128xf32>
    %c0_3 = arith.constant 0 : index
    %c0_4 = arith.constant 0 : index
    %3 = vector.load %arg3[%c0_3, %c0_4] : memref<1x128xf32, #tpu.memory_space<vmem>>, vector<1x128xf32>
    %4 = vector.broadcast %3 : vector<1x128xf32> to vector<2x128xf32>
    %5 = arith.addf %2, %4 : vector<2x128xf32>
    %c0_5 = arith.constant 0 : index
    %c0_6 = arith.constant 0 : index
    %6 = vector.load %arg4[%c0_5, %c0_6] : memref<1x128xf32, #tpu.memory_space<vmem>>, vector<1x128xf32>
    %c0_7 = arith.constant 0 : index
    %c0_8 = arith.constant 0 : index
    %7 = vector.load %arg5[%c0_7, %c0_8] : memref<1x128xf32, #tpu.memory_space<vmem>>, vector<1x128xf32>
    %cst_9 = arith.constant dense<0.000000e+00> : vector<2xf32>
    %8 = vector.multi_reduction <add>, %5, %cst_9 [1] : vector<2x128xf32> to vector<2xf32>
    %9 = vector.shape_cast %8 : vector<2xf32> to vector<2x1xf32>
    %cst_10 = arith.constant 1.280000e+02 : f32
    %10 = vector.broadcast %cst_10 : f32 to vector<2x1xf32>
    %11 = arith.divf %9, %10 : vector<2x1xf32>
    %12 = vector.broadcast %11 : vector<2x1xf32> to vector<2x128xf32>
    %13 = arith.subf %5, %12 : vector<2x128xf32>
    %14 = arith.mulf %13, %13 : vector<2x128xf32>
    %cst_11 = arith.constant dense<0.000000e+00> : vector<2xf32>
    %15 = vector.multi_reduction <add>, %14, %cst_11 [1] : vector<2x128xf32> to vector<2xf32>
    %16 = vector.shape_cast %15 : vector<2xf32> to vector<2x1xf32>
    %cst_12 = arith.constant 1.280000e+02 : f32
    %17 = vector.broadcast %cst_12 : f32 to vector<2x1xf32>
    %18 = arith.divf %16, %17 : vector<2x1xf32>
    %19 = vector.broadcast %11 : vector<2x1xf32> to vector<2x128xf32>
    %20 = arith.subf %5, %19 : vector<2x128xf32>
    %cst_13 = arith.constant 9.99999974E-6 : f32
    %21 = vector.broadcast %cst_13 : f32 to vector<2x1xf32>
    %22 = arith.addf %18, %21 : vector<2x1xf32>
    %23 = math.rsqrt %22 : vector<2x1xf32>
    %24 = vector.broadcast %23 : vector<2x1xf32> to vector<2x128xf32>
    %25 = arith.mulf %20, %24 : vector<2x128xf32>
    %26 = vector.broadcast %6 : vector<1x128xf32> to vector<2x128xf32>
    %27 = arith.mulf %25, %26 : vector<2x128xf32>
    %28 = vector.broadcast %7 : vector<1x128xf32> to vector<2x128xf32>
    %29 = arith.addf %27, %28 : vector<2x128xf32>
    %cst_14 = arith.constant 0.000000e+00 : f32
    %30 = vector.broadcast %cst_14 : f32 to vector<2x128xf32>
    %31 = arith.maximumf %29, %30 : vector<2x128xf32>
    %c0_15 = arith.constant 0 : index
    %c0_16 = arith.constant 0 : index
    %32 = vector.load %arg6[%c0_15, %c0_16] : memref<1x128xf32, #tpu.memory_space<vmem>>, vector<1x128xf32>
    %33 = vector.broadcast %32 : vector<1x128xf32> to vector<2x128xf32>
    %34 = arith.addf %31, %33 : vector<2x128xf32>
    %c0_17 = arith.constant 0 : index
    %c0_18 = arith.constant 0 : index
    %c0_19 = arith.constant 0 : index
    %35 = vector.load %arg7[%c0_17, %c0_18, %c0_19] : memref<3x1x128xf32, #tpu.memory_space<vmem>>, vector<1x1x128xf32>
    %36 = vector.shape_cast %35 : vector<1x1x128xf32> to vector<1x128xf32>
    %c0_20 = arith.constant 0 : index
    %c0_21 = arith.constant 0 : index
    %c0_22 = arith.constant 0 : index
    %37 = vector.load %arg8[%c0_20, %c0_21, %c0_22] : memref<3x1x128xf32, #tpu.memory_space<vmem>>, vector<1x1x128xf32>
    %38 = vector.shape_cast %37 : vector<1x1x128xf32> to vector<1x128xf32>
    %cst_23 = arith.constant dense<0.000000e+00> : vector<2xf32>
    %39 = vector.multi_reduction <add>, %34, %cst_23 [1] : vector<2x128xf32> to vector<2xf32>
    %40 = vector.shape_cast %39 : vector<2xf32> to vector<2x1xf32>
    %cst_24 = arith.constant 1.280000e+02 : f32
    %41 = vector.broadcast %cst_24 : f32 to vector<2x1xf32>
    %42 = arith.divf %40, %41 : vector<2x1xf32>
    %43 = vector.broadcast %42 : vector<2x1xf32> to vector<2x128xf32>
    %44 = arith.subf %34, %43 : vector<2x128xf32>
    %45 = arith.mulf %44, %44 : vector<2x128xf32>
    %cst_25 = arith.constant dense<0.000000e+00> : vector<2xf32>
    %46 = vector.multi_reduction <add>, %45, %cst_25 [1] : vector<2x128xf32> to vector<2xf32>
    %47 = vector.shape_cast %46 : vector<2xf32> to vector<2x1xf32>
    %cst_26 = arith.constant 1.280000e+02 : f32
    %48 = vector.broadcast %cst_26 : f32 to vector<2x1xf32>
    %49 = arith.divf %47, %48 : vector<2x1xf32>
    %50 = vector.broadcast %42 : vector<2x1xf32> to vector<2x128xf32>
    %51 = arith.subf %34, %50 : vector<2x128xf32>
    %cst_27 = arith.constant 9.99999974E-6 : f32
    %52 = vector.broadcast %cst_27 : f32 to vector<2x1xf32>
    %53 = arith.addf %49, %52 : vector<2x1xf32>
    %54 = math.rsqrt %53 : vector<2x1xf32>
    %55 = vector.broadcast %54 : vector<2x1xf32> to vector<2x128xf32>
    %56 = arith.mulf %51, %55 : vector<2x128xf32>
    %57 = vector.broadcast %36 : vector<1x128xf32> to vector<2x128xf32>
    %58 = arith.mulf %56, %57 : vector<2x128xf32>
    %59 = vector.broadcast %38 : vector<1x128xf32> to vector<2x128xf32>
    %60 = arith.addf %58, %59 : vector<2x128xf32>
    %c0_28 = arith.constant 0 : index
    %c0_29 = arith.constant 0 : index
    %c0_30 = arith.constant 0 : index
    %61 = vector.load %arg9[%c0_28, %c0_29, %c0_30] : memref<3x128x128xf32, #tpu.memory_space<vmem>>, vector<1x128x128xf32>
    %62 = vector.shape_cast %61 : vector<1x128x128xf32> to vector<128x128xf32>
    %cst_31 = arith.constant dense<0.000000e+00> : vector<2x128xf32>
    %63 = tpu.matmul %60, %62, %cst_31 {dimension_numbers = #tpu.dot_dimension_numbers<[1], [0], [0], [1], [0, 0, 1, 1], [], []>} : vector<2x128xf32>, vector<128x128xf32>, vector<2x128xf32> -> vector<2x128xf32>
    %c0_32 = arith.constant 0 : index
    %c0_33 = arith.constant 0 : index
    %c0_34 = arith.constant 0 : index
    %64 = vector.load %arg10[%c0_32, %c0_33, %c0_34] : memref<3x1x128xf32, #tpu.memory_space<vmem>>, vector<1x1x128xf32>
    %65 = vector.shape_cast %64 : vector<1x1x128xf32> to vector<1x128xf32>
    %66 = vector.broadcast %65 : vector<1x128xf32> to vector<2x128xf32>
    %67 = arith.addf %63, %66 : vector<2x128xf32>
    %c0_35 = arith.constant 0 : index
    %c0_36 = arith.constant 0 : index
    %c0_37 = arith.constant 0 : index
    %68 = vector.load %arg11[%c0_35, %c0_36, %c0_37] : memref<3x128x128xf32, #tpu.memory_space<vmem>>, vector<1x128x128xf32>
    %69 = vector.shape_cast %68 : vector<1x128x128xf32> to vector<128x128xf32>
    %cst_38 = arith.constant dense<0.000000e+00> : vector<2x128xf32>
    %70 = tpu.matmul %67, %69, %cst_38 {dimension_numbers = #tpu.dot_dimension_numbers<[1], [0], [0], [1], [0, 0, 1, 1], [], []>} : vector<2x128xf32>, vector<128x128xf32>, vector<2x128xf32> -> vector<2x128xf32>
    %c0_39 = arith.constant 0 : index
    %c0_40 = arith.constant 0 : index
    %c0_41 = arith.constant 0 : index
    %71 = vector.load %arg12[%c0_39, %c0_40, %c0_41] : memref<3x1x128xf32, #tpu.memory_space<vmem>>, vector<1x1x128xf32>
    %72 = vector.shape_cast %71 : vector<1x1x128xf32> to vector<1x128xf32>
    %73 = vector.broadcast %72 : vector<1x128xf32> to vector<2x128xf32>
    %74 = arith.addf %70, %73 : vector<2x128xf32>
    %75 = arith.addf %34, %74 : vector<2x128xf32>
    %c0_42 = arith.constant 0 : index
    %c0_43 = arith.constant 0 : index
    %c0_44 = arith.constant 0 : index
    %76 = vector.load %arg13[%c0_42, %c0_43, %c0_44] : memref<3x1x128xf32, #tpu.memory_space<vmem>>, vector<1x1x128xf32>
    %77 = vector.shape_cast %76 : vector<1x1x128xf32> to vector<1x128xf32>
    %c0_45 = arith.constant 0 : index
    %c0_46 = arith.constant 0 : index
    %c0_47 = arith.constant 0 : index
    %78 = vector.load %arg14[%c0_45, %c0_46, %c0_47] : memref<3x1x128xf32, #tpu.memory_space<vmem>>, vector<1x1x128xf32>
    %79 = vector.shape_cast %78 : vector<1x1x128xf32> to vector<1x128xf32>
    %cst_48 = arith.constant dense<0.000000e+00> : vector<2xf32>
    %80 = vector.multi_reduction <add>, %75, %cst_48 [1] : vector<2x128xf32> to vector<2xf32>
    %81 = vector.shape_cast %80 : vector<2xf32> to vector<2x1xf32>
    %cst_49 = arith.constant 1.280000e+02 : f32
    %82 = vector.broadcast %cst_49 : f32 to vector<2x1xf32>
    %83 = arith.divf %81, %82 : vector<2x1xf32>
    %84 = vector.broadcast %83 : vector<2x1xf32> to vector<2x128xf32>
    %85 = arith.subf %75, %84 : vector<2x128xf32>
    %86 = arith.mulf %85, %85 : vector<2x128xf32>
    %cst_50 = arith.constant dense<0.000000e+00> : vector<2xf32>
    %87 = vector.multi_reduction <add>, %86, %cst_50 [1] : vector<2x128xf32> to vector<2xf32>
    %88 = vector.shape_cast %87 : vector<2xf32> to vector<2x1xf32>
    %cst_51 = arith.constant 1.280000e+02 : f32
    %89 = vector.broadcast %cst_51 : f32 to vector<2x1xf32>
    %90 = arith.divf %88, %89 : vector<2x1xf32>
    %91 = vector.broadcast %83 : vector<2x1xf32> to vector<2x128xf32>
    %92 = arith.subf %75, %91 : vector<2x128xf32>
    %cst_52 = arith.constant 9.99999974E-6 : f32
    %93 = vector.broadcast %cst_52 : f32 to vector<2x1xf32>
    %94 = arith.addf %90, %93 : vector<2x1xf32>
    %95 = math.rsqrt %94 : vector<2x1xf32>
    %96 = vector.broadcast %95 : vector<2x1xf32> to vector<2x128xf32>
    %97 = arith.mulf %92, %96 : vector<2x128xf32>
    %98 = vector.broadcast %77 : vector<1x128xf32> to vector<2x128xf32>
    %99 = arith.mulf %97, %98 : vector<2x128xf32>
    %100 = vector.broadcast %79 : vector<1x128xf32> to vector<2x128xf32>
    %101 = arith.addf %99, %100 : vector<2x128xf32>
    %c0_53 = arith.constant 0 : index
    %c0_54 = arith.constant 0 : index
    %c0_55 = arith.constant 0 : index
    %102 = vector.load %arg15[%c0_53, %c0_54, %c0_55] : memref<3x128x512xf32, #tpu.memory_space<vmem>>, vector<1x128x512xf32>
    %103 = vector.shape_cast %102 : vector<1x128x512xf32> to vector<128x512xf32>
    %cst_56 = arith.constant dense<0.000000e+00> : vector<2x512xf32>
    %104 = tpu.matmul %101, %103, %cst_56 {dimension_numbers = #tpu.dot_dimension_numbers<[1], [0], [0], [1], [0, 0, 1, 1], [], []>} : vector<2x128xf32>, vector<128x512xf32>, vector<2x512xf32> -> vector<2x512xf32>
    %c0_57 = arith.constant 0 : index
    %c0_58 = arith.constant 0 : index
    %c0_59 = arith.constant 0 : index
    %105 = vector.load %arg16[%c0_57, %c0_58, %c0_59] : memref<3x1x512xf32, #tpu.memory_space<vmem>>, vector<1x1x512xf32>
    %106 = vector.shape_cast %105 : vector<1x1x512xf32> to vector<1x512xf32>
    %107 = vector.broadcast %106 : vector<1x512xf32> to vector<2x512xf32>
    %108 = arith.addf %104, %107 : vector<2x512xf32>
    %cst_60 = arith.constant 0.000000e+00 : f32
    %109 = vector.broadcast %cst_60 : f32 to vector<2x512xf32>
    %110 = arith.maximumf %108, %109 : vector<2x512xf32>
    %c0_61 = arith.constant 0 : index
    %c0_62 = arith.constant 0 : index
    %c0_63 = arith.constant 0 : index
    %111 = vector.load %arg17[%c0_61, %c0_62, %c0_63] : memref<3x512x128xf32, #tpu.memory_space<vmem>>, vector<1x512x128xf32>
    %112 = vector.shape_cast %111 : vector<1x512x128xf32> to vector<512x128xf32>
    %cst_64 = arith.constant dense<0.000000e+00> : vector<2x128xf32>
    %113 = tpu.matmul %110, %112, %cst_64 {dimension_numbers = #tpu.dot_dimension_numbers<[1], [0], [0], [1], [0, 0, 1, 1], [], []>} : vector<2x512xf32>, vector<512x128xf32>, vector<2x128xf32> -> vector<2x128xf32>
    %c0_65 = arith.constant 0 : index
    %c0_66 = arith.constant 0 : index
    %c0_67 = arith.constant 0 : index
    %114 = vector.load %arg18[%c0_65, %c0_66, %c0_67] : memref<3x1x128xf32, #tpu.memory_space<vmem>>, vector<1x1x128xf32>
    %115 = vector.shape_cast %114 : vector<1x1x128xf32> to vector<1x128xf32>
    %116 = vector.broadcast %115 : vector<1x128xf32> to vector<2x128xf32>
    %117 = arith.addf %113, %116 : vector<2x128xf32>
    %118 = arith.addf %75, %117 : vector<2x128xf32>
    %c1 = arith.constant 1 : index
    %c0_68 = arith.constant 0 : index
    %c0_69 = arith.constant 0 : index
    %119 = vector.load %arg7[%c1, %c0_68, %c0_69] : memref<3x1x128xf32, #tpu.memory_space<vmem>>, vector<1x1x128xf32>
    %120 = vector.shape_cast %119 : vector<1x1x128xf32> to vector<1x128xf32>
    %c1_70 = arith.constant 1 : index
    %c0_71 = arith.constant 0 : index
    %c0_72 = arith.constant 0 : index
    %121 = vector.load %arg8[%c1_70, %c0_71, %c0_72] : memref<3x1x128xf32, #tpu.memory_space<vmem>>, vector<1x1x128xf32>
    %122 = vector.shape_cast %121 : vector<1x1x128xf32> to vector<1x128xf32>
    %cst_73 = arith.constant dense<0.000000e+00> : vector<2xf32>
    %123 = vector.multi_reduction <add>, %118, %cst_73 [1] : vector<2x128xf32> to vector<2xf32>
    %124 = vector.shape_cast %123 : vector<2xf32> to vector<2x1xf32>
    %cst_74 = arith.constant 1.280000e+02 : f32
    %125 = vector.broadcast %cst_74 : f32 to vector<2x1xf32>
    %126 = arith.divf %124, %125 : vector<2x1xf32>
    %127 = vector.broadcast %126 : vector<2x1xf32> to vector<2x128xf32>
    %128 = arith.subf %118, %127 : vector<2x128xf32>
    %129 = arith.mulf %128, %128 : vector<2x128xf32>
    %cst_75 = arith.constant dense<0.000000e+00> : vector<2xf32>
    %130 = vector.multi_reduction <add>, %129, %cst_75 [1] : vector<2x128xf32> to vector<2xf32>
    %131 = vector.shape_cast %130 : vector<2xf32> to vector<2x1xf32>
    %cst_76 = arith.constant 1.280000e+02 : f32
    %132 = vector.broadcast %cst_76 : f32 to vector<2x1xf32>
    %133 = arith.divf %131, %132 : vector<2x1xf32>
    %134 = vector.broadcast %126 : vector<2x1xf32> to vector<2x128xf32>
    %135 = arith.subf %118, %134 : vector<2x128xf32>
    %cst_77 = arith.constant 9.99999974E-6 : f32
    %136 = vector.broadcast %cst_77 : f32 to vector<2x1xf32>
    %137 = arith.addf %133, %136 : vector<2x1xf32>
    %138 = math.rsqrt %137 : vector<2x1xf32>
    %139 = vector.broadcast %138 : vector<2x1xf32> to vector<2x128xf32>
    %140 = arith.mulf %135, %139 : vector<2x128xf32>
    %141 = vector.broadcast %120 : vector<1x128xf32> to vector<2x128xf32>
    %142 = arith.mulf %140, %141 : vector<2x128xf32>
    %143 = vector.broadcast %122 : vector<1x128xf32> to vector<2x128xf32>
    %144 = arith.addf %142, %143 : vector<2x128xf32>
    %c1_78 = arith.constant 1 : index
    %c0_79 = arith.constant 0 : index
    %c0_80 = arith.constant 0 : index
    %145 = vector.load %arg9[%c1_78, %c0_79, %c0_80] : memref<3x128x128xf32, #tpu.memory_space<vmem>>, vector<1x128x128xf32>
    %146 = vector.shape_cast %145 : vector<1x128x128xf32> to vector<128x128xf32>
    %cst_81 = arith.constant dense<0.000000e+00> : vector<2x128xf32>
    %147 = tpu.matmul %144, %146, %cst_81 {dimension_numbers = #tpu.dot_dimension_numbers<[1], [0], [0], [1], [0, 0, 1, 1], [], []>} : vector<2x128xf32>, vector<128x128xf32>, vector<2x128xf32> -> vector<2x128xf32>
    %c1_82 = arith.constant 1 : index
    %c0_83 = arith.constant 0 : index
    %c0_84 = arith.constant 0 : index
    %148 = vector.load %arg10[%c1_82, %c0_83, %c0_84] : memref<3x1x128xf32, #tpu.memory_space<vmem>>, vector<1x1x128xf32>
    %149 = vector.shape_cast %148 : vector<1x1x128xf32> to vector<1x128xf32>
    %150 = vector.broadcast %149 : vector<1x128xf32> to vector<2x128xf32>
    %151 = arith.addf %147, %150 : vector<2x128xf32>
    %c1_85 = arith.constant 1 : index
    %c0_86 = arith.constant 0 : index
    %c0_87 = arith.constant 0 : index
    %152 = vector.load %arg11[%c1_85, %c0_86, %c0_87] : memref<3x128x128xf32, #tpu.memory_space<vmem>>, vector<1x128x128xf32>
    %153 = vector.shape_cast %152 : vector<1x128x128xf32> to vector<128x128xf32>
    %cst_88 = arith.constant dense<0.000000e+00> : vector<2x128xf32>
    %154 = tpu.matmul %151, %153, %cst_88 {dimension_numbers = #tpu.dot_dimension_numbers<[1], [0], [0], [1], [0, 0, 1, 1], [], []>} : vector<2x128xf32>, vector<128x128xf32>, vector<2x128xf32> -> vector<2x128xf32>
    %c1_89 = arith.constant 1 : index
    %c0_90 = arith.constant 0 : index
    %c0_91 = arith.constant 0 : index
    %155 = vector.load %arg12[%c1_89, %c0_90, %c0_91] : memref<3x1x128xf32, #tpu.memory_space<vmem>>, vector<1x1x128xf32>
    %156 = vector.shape_cast %155 : vector<1x1x128xf32> to vector<1x128xf32>
    %157 = vector.broadcast %156 : vector<1x128xf32> to vector<2x128xf32>
    %158 = arith.addf %154, %157 : vector<2x128xf32>
    %159 = arith.addf %118, %158 : vector<2x128xf32>
    %c1_92 = arith.constant 1 : index
    %c0_93 = arith.constant 0 : index
    %c0_94 = arith.constant 0 : index
    %160 = vector.load %arg13[%c1_92, %c0_93, %c0_94] : memref<3x1x128xf32, #tpu.memory_space<vmem>>, vector<1x1x128xf32>
    %161 = vector.shape_cast %160 : vector<1x1x128xf32> to vector<1x128xf32>
    %c1_95 = arith.constant 1 : index
    %c0_96 = arith.constant 0 : index
    %c0_97 = arith.constant 0 : index
    %162 = vector.load %arg14[%c1_95, %c0_96, %c0_97] : memref<3x1x128xf32, #tpu.memory_space<vmem>>, vector<1x1x128xf32>
    %163 = vector.shape_cast %162 : vector<1x1x128xf32> to vector<1x128xf32>
    %cst_98 = arith.constant dense<0.000000e+00> : vector<2xf32>
    %164 = vector.multi_reduction <add>, %159, %cst_98 [1] : vector<2x128xf32> to vector<2xf32>
    %165 = vector.shape_cast %164 : vector<2xf32> to vector<2x1xf32>
    %cst_99 = arith.constant 1.280000e+02 : f32
    %166 = vector.broadcast %cst_99 : f32 to vector<2x1xf32>
    %167 = arith.divf %165, %166 : vector<2x1xf32>
    %168 = vector.broadcast %167 : vector<2x1xf32> to vector<2x128xf32>
    %169 = arith.subf %159, %168 : vector<2x128xf32>
    %170 = arith.mulf %169, %169 : vector<2x128xf32>
    %cst_100 = arith.constant dense<0.000000e+00> : vector<2xf32>
    %171 = vector.multi_reduction <add>, %170, %cst_100 [1] : vector<2x128xf32> to vector<2xf32>
    %172 = vector.shape_cast %171 : vector<2xf32> to vector<2x1xf32>
    %cst_101 = arith.constant 1.280000e+02 : f32
    %173 = vector.broadcast %cst_101 : f32 to vector<2x1xf32>
    %174 = arith.divf %172, %173 : vector<2x1xf32>
    %175 = vector.broadcast %167 : vector<2x1xf32> to vector<2x128xf32>
    %176 = arith.subf %159, %175 : vector<2x128xf32>
    %cst_102 = arith.constant 9.99999974E-6 : f32
    %177 = vector.broadcast %cst_102 : f32 to vector<2x1xf32>
    %178 = arith.addf %174, %177 : vector<2x1xf32>
    %179 = math.rsqrt %178 : vector<2x1xf32>
    %180 = vector.broadcast %179 : vector<2x1xf32> to vector<2x128xf32>
    %181 = arith.mulf %176, %180 : vector<2x128xf32>
    %182 = vector.broadcast %161 : vector<1x128xf32> to vector<2x128xf32>
    %183 = arith.mulf %181, %182 : vector<2x128xf32>
    %184 = vector.broadcast %163 : vector<1x128xf32> to vector<2x128xf32>
    %185 = arith.addf %183, %184 : vector<2x128xf32>
    %c1_103 = arith.constant 1 : index
    %c0_104 = arith.constant 0 : index
    %c0_105 = arith.constant 0 : index
    %186 = vector.load %arg15[%c1_103, %c0_104, %c0_105] : memref<3x128x512xf32, #tpu.memory_space<vmem>>, vector<1x128x512xf32>
    %187 = vector.shape_cast %186 : vector<1x128x512xf32> to vector<128x512xf32>
    %cst_106 = arith.constant dense<0.000000e+00> : vector<2x512xf32>
    %188 = tpu.matmul %185, %187, %cst_106 {dimension_numbers = #tpu.dot_dimension_numbers<[1], [0], [0], [1], [0, 0, 1, 1], [], []>} : vector<2x128xf32>, vector<128x512xf32>, vector<2x512xf32> -> vector<2x512xf32>
    %c1_107 = arith.constant 1 : index
    %c0_108 = arith.constant 0 : index
    %c0_109 = arith.constant 0 : index
    %189 = vector.load %arg16[%c1_107, %c0_108, %c0_109] : memref<3x1x512xf32, #tpu.memory_space<vmem>>, vector<1x1x512xf32>
    %190 = vector.shape_cast %189 : vector<1x1x512xf32> to vector<1x512xf32>
    %191 = vector.broadcast %190 : vector<1x512xf32> to vector<2x512xf32>
    %192 = arith.addf %188, %191 : vector<2x512xf32>
    %cst_110 = arith.constant 0.000000e+00 : f32
    %193 = vector.broadcast %cst_110 : f32 to vector<2x512xf32>
    %194 = arith.maximumf %192, %193 : vector<2x512xf32>
    %c1_111 = arith.constant 1 : index
    %c0_112 = arith.constant 0 : index
    %c0_113 = arith.constant 0 : index
    %195 = vector.load %arg17[%c1_111, %c0_112, %c0_113] : memref<3x512x128xf32, #tpu.memory_space<vmem>>, vector<1x512x128xf32>
    %196 = vector.shape_cast %195 : vector<1x512x128xf32> to vector<512x128xf32>
    %cst_114 = arith.constant dense<0.000000e+00> : vector<2x128xf32>
    %197 = tpu.matmul %194, %196, %cst_114 {dimension_numbers = #tpu.dot_dimension_numbers<[1], [0], [0], [1], [0, 0, 1, 1], [], []>} : vector<2x512xf32>, vector<512x128xf32>, vector<2x128xf32> -> vector<2x128xf32>
    %c1_115 = arith.constant 1 : index
    %c0_116 = arith.constant 0 : index
    %c0_117 = arith.constant 0 : index
    %198 = vector.load %arg18[%c1_115, %c0_116, %c0_117] : memref<3x1x128xf32, #tpu.memory_space<vmem>>, vector<1x1x128xf32>
    %199 = vector.shape_cast %198 : vector<1x1x128xf32> to vector<1x128xf32>
    %200 = vector.broadcast %199 : vector<1x128xf32> to vector<2x128xf32>
    %201 = arith.addf %197, %200 : vector<2x128xf32>
    %202 = arith.addf %159, %201 : vector<2x128xf32>
    %c2 = arith.constant 2 : index
    %c0_118 = arith.constant 0 : index
    %c0_119 = arith.constant 0 : index
    %203 = vector.load %arg7[%c2, %c0_118, %c0_119] : memref<3x1x128xf32, #tpu.memory_space<vmem>>, vector<1x1x128xf32>
    %204 = vector.shape_cast %203 : vector<1x1x128xf32> to vector<1x128xf32>
    %c2_120 = arith.constant 2 : index
    %c0_121 = arith.constant 0 : index
    %c0_122 = arith.constant 0 : index
    %205 = vector.load %arg8[%c2_120, %c0_121, %c0_122] : memref<3x1x128xf32, #tpu.memory_space<vmem>>, vector<1x1x128xf32>
    %206 = vector.shape_cast %205 : vector<1x1x128xf32> to vector<1x128xf32>
    %cst_123 = arith.constant dense<0.000000e+00> : vector<2xf32>
    %207 = vector.multi_reduction <add>, %202, %cst_123 [1] : vector<2x128xf32> to vector<2xf32>
    %208 = vector.shape_cast %207 : vector<2xf32> to vector<2x1xf32>
    %cst_124 = arith.constant 1.280000e+02 : f32
    %209 = vector.broadcast %cst_124 : f32 to vector<2x1xf32>
    %210 = arith.divf %208, %209 : vector<2x1xf32>
    %211 = vector.broadcast %210 : vector<2x1xf32> to vector<2x128xf32>
    %212 = arith.subf %202, %211 : vector<2x128xf32>
    %213 = arith.mulf %212, %212 : vector<2x128xf32>
    %cst_125 = arith.constant dense<0.000000e+00> : vector<2xf32>
    %214 = vector.multi_reduction <add>, %213, %cst_125 [1] : vector<2x128xf32> to vector<2xf32>
    %215 = vector.shape_cast %214 : vector<2xf32> to vector<2x1xf32>
    %cst_126 = arith.constant 1.280000e+02 : f32
    %216 = vector.broadcast %cst_126 : f32 to vector<2x1xf32>
    %217 = arith.divf %215, %216 : vector<2x1xf32>
    %218 = vector.broadcast %210 : vector<2x1xf32> to vector<2x128xf32>
    %219 = arith.subf %202, %218 : vector<2x128xf32>
    %cst_127 = arith.constant 9.99999974E-6 : f32
    %220 = vector.broadcast %cst_127 : f32 to vector<2x1xf32>
    %221 = arith.addf %217, %220 : vector<2x1xf32>
    %222 = math.rsqrt %221 : vector<2x1xf32>
    %223 = vector.broadcast %222 : vector<2x1xf32> to vector<2x128xf32>
    %224 = arith.mulf %219, %223 : vector<2x128xf32>
    %225 = vector.broadcast %204 : vector<1x128xf32> to vector<2x128xf32>
    %226 = arith.mulf %224, %225 : vector<2x128xf32>
    %227 = vector.broadcast %206 : vector<1x128xf32> to vector<2x128xf32>
    %228 = arith.addf %226, %227 : vector<2x128xf32>
    %c2_128 = arith.constant 2 : index
    %c0_129 = arith.constant 0 : index
    %c0_130 = arith.constant 0 : index
    %229 = vector.load %arg9[%c2_128, %c0_129, %c0_130] : memref<3x128x128xf32, #tpu.memory_space<vmem>>, vector<1x128x128xf32>
    %230 = vector.shape_cast %229 : vector<1x128x128xf32> to vector<128x128xf32>
    %cst_131 = arith.constant dense<0.000000e+00> : vector<2x128xf32>
    %231 = tpu.matmul %228, %230, %cst_131 {dimension_numbers = #tpu.dot_dimension_numbers<[1], [0], [0], [1], [0, 0, 1, 1], [], []>} : vector<2x128xf32>, vector<128x128xf32>, vector<2x128xf32> -> vector<2x128xf32>
    %c2_132 = arith.constant 2 : index
    %c0_133 = arith.constant 0 : index
    %c0_134 = arith.constant 0 : index
    %232 = vector.load %arg10[%c2_132, %c0_133, %c0_134] : memref<3x1x128xf32, #tpu.memory_space<vmem>>, vector<1x1x128xf32>
    %233 = vector.shape_cast %232 : vector<1x1x128xf32> to vector<1x128xf32>
    %234 = vector.broadcast %233 : vector<1x128xf32> to vector<2x128xf32>
    %235 = arith.addf %231, %234 : vector<2x128xf32>
    %c2_135 = arith.constant 2 : index
    %c0_136 = arith.constant 0 : index
    %c0_137 = arith.constant 0 : index
    %236 = vector.load %arg11[%c2_135, %c0_136, %c0_137] : memref<3x128x128xf32, #tpu.memory_space<vmem>>, vector<1x128x128xf32>
    %237 = vector.shape_cast %236 : vector<1x128x128xf32> to vector<128x128xf32>
    %cst_138 = arith.constant dense<0.000000e+00> : vector<2x128xf32>
    %238 = tpu.matmul %235, %237, %cst_138 {dimension_numbers = #tpu.dot_dimension_numbers<[1], [0], [0], [1], [0, 0, 1, 1], [], []>} : vector<2x128xf32>, vector<128x128xf32>, vector<2x128xf32> -> vector<2x128xf32>
    %c2_139 = arith.constant 2 : index
    %c0_140 = arith.constant 0 : index
    %c0_141 = arith.constant 0 : index
    %239 = vector.load %arg12[%c2_139, %c0_140, %c0_141] : memref<3x1x128xf32, #tpu.memory_space<vmem>>, vector<1x1x128xf32>
    %240 = vector.shape_cast %239 : vector<1x1x128xf32> to vector<1x128xf32>
    %241 = vector.broadcast %240 : vector<1x128xf32> to vector<2x128xf32>
    %242 = arith.addf %238, %241 : vector<2x128xf32>
    %243 = arith.addf %202, %242 : vector<2x128xf32>
    %c2_142 = arith.constant 2 : index
    %c0_143 = arith.constant 0 : index
    %c0_144 = arith.constant 0 : index
    %244 = vector.load %arg13[%c2_142, %c0_143, %c0_144] : memref<3x1x128xf32, #tpu.memory_space<vmem>>, vector<1x1x128xf32>
    %245 = vector.shape_cast %244 : vector<1x1x128xf32> to vector<1x128xf32>
    %c2_145 = arith.constant 2 : index
    %c0_146 = arith.constant 0 : index
    %c0_147 = arith.constant 0 : index
    %246 = vector.load %arg14[%c2_145, %c0_146, %c0_147] : memref<3x1x128xf32, #tpu.memory_space<vmem>>, vector<1x1x128xf32>
    %247 = vector.shape_cast %246 : vector<1x1x128xf32> to vector<1x128xf32>
    %cst_148 = arith.constant dense<0.000000e+00> : vector<2xf32>
    %248 = vector.multi_reduction <add>, %243, %cst_148 [1] : vector<2x128xf32> to vector<2xf32>
    %249 = vector.shape_cast %248 : vector<2xf32> to vector<2x1xf32>
    %cst_149 = arith.constant 1.280000e+02 : f32
    %250 = vector.broadcast %cst_149 : f32 to vector<2x1xf32>
    %251 = arith.divf %249, %250 : vector<2x1xf32>
    %252 = vector.broadcast %251 : vector<2x1xf32> to vector<2x128xf32>
    %253 = arith.subf %243, %252 : vector<2x128xf32>
    %254 = arith.mulf %253, %253 : vector<2x128xf32>
    %cst_150 = arith.constant dense<0.000000e+00> : vector<2xf32>
    %255 = vector.multi_reduction <add>, %254, %cst_150 [1] : vector<2x128xf32> to vector<2xf32>
    %256 = vector.shape_cast %255 : vector<2xf32> to vector<2x1xf32>
    %cst_151 = arith.constant 1.280000e+02 : f32
    %257 = vector.broadcast %cst_151 : f32 to vector<2x1xf32>
    %258 = arith.divf %256, %257 : vector<2x1xf32>
    %259 = vector.broadcast %251 : vector<2x1xf32> to vector<2x128xf32>
    %260 = arith.subf %243, %259 : vector<2x128xf32>
    %cst_152 = arith.constant 9.99999974E-6 : f32
    %261 = vector.broadcast %cst_152 : f32 to vector<2x1xf32>
    %262 = arith.addf %258, %261 : vector<2x1xf32>
    %263 = math.rsqrt %262 : vector<2x1xf32>
    %264 = vector.broadcast %263 : vector<2x1xf32> to vector<2x128xf32>
    %265 = arith.mulf %260, %264 : vector<2x128xf32>
    %266 = vector.broadcast %245 : vector<1x128xf32> to vector<2x128xf32>
    %267 = arith.mulf %265, %266 : vector<2x128xf32>
    %268 = vector.broadcast %247 : vector<1x128xf32> to vector<2x128xf32>
    %269 = arith.addf %267, %268 : vector<2x128xf32>
    %c2_153 = arith.constant 2 : index
    %c0_154 = arith.constant 0 : index
    %c0_155 = arith.constant 0 : index
    %270 = vector.load %arg15[%c2_153, %c0_154, %c0_155] : memref<3x128x512xf32, #tpu.memory_space<vmem>>, vector<1x128x512xf32>
    %271 = vector.shape_cast %270 : vector<1x128x512xf32> to vector<128x512xf32>
    %cst_156 = arith.constant dense<0.000000e+00> : vector<2x512xf32>
    %272 = tpu.matmul %269, %271, %cst_156 {dimension_numbers = #tpu.dot_dimension_numbers<[1], [0], [0], [1], [0, 0, 1, 1], [], []>} : vector<2x128xf32>, vector<128x512xf32>, vector<2x512xf32> -> vector<2x512xf32>
    %c2_157 = arith.constant 2 : index
    %c0_158 = arith.constant 0 : index
    %c0_159 = arith.constant 0 : index
    %273 = vector.load %arg16[%c2_157, %c0_158, %c0_159] : memref<3x1x512xf32, #tpu.memory_space<vmem>>, vector<1x1x512xf32>
    %274 = vector.shape_cast %273 : vector<1x1x512xf32> to vector<1x512xf32>
    %275 = vector.broadcast %274 : vector<1x512xf32> to vector<2x512xf32>
    %276 = arith.addf %272, %275 : vector<2x512xf32>
    %cst_160 = arith.constant 0.000000e+00 : f32
    %277 = vector.broadcast %cst_160 : f32 to vector<2x512xf32>
    %278 = arith.maximumf %276, %277 : vector<2x512xf32>
    %c2_161 = arith.constant 2 : index
    %c0_162 = arith.constant 0 : index
    %c0_163 = arith.constant 0 : index
    %279 = vector.load %arg17[%c2_161, %c0_162, %c0_163] : memref<3x512x128xf32, #tpu.memory_space<vmem>>, vector<1x512x128xf32>
    %280 = vector.shape_cast %279 : vector<1x512x128xf32> to vector<512x128xf32>
    %cst_164 = arith.constant dense<0.000000e+00> : vector<2x128xf32>
    %281 = tpu.matmul %278, %280, %cst_164 {dimension_numbers = #tpu.dot_dimension_numbers<[1], [0], [0], [1], [0, 0, 1, 1], [], []>} : vector<2x512xf32>, vector<512x128xf32>, vector<2x128xf32> -> vector<2x128xf32>
    %c2_165 = arith.constant 2 : index
    %c0_166 = arith.constant 0 : index
    %c0_167 = arith.constant 0 : index
    %282 = vector.load %arg18[%c2_165, %c0_166, %c0_167] : memref<3x1x128xf32, #tpu.memory_space<vmem>>, vector<1x1x128xf32>
    %283 = vector.shape_cast %282 : vector<1x1x128xf32> to vector<1x128xf32>
    %284 = vector.broadcast %283 : vector<1x128xf32> to vector<2x128xf32>
    %285 = arith.addf %281, %284 : vector<2x128xf32>
    %286 = arith.addf %243, %285 : vector<2x128xf32>
    %c0_168 = arith.constant 0 : index
    %c0_169 = arith.constant 0 : index
    %287 = vector.load %arg19[%c0_168, %c0_169] : memref<128x64xf32, #tpu.memory_space<vmem>>, vector<128x64xf32>
    %cst_170 = arith.constant dense<0.000000e+00> : vector<2x64xf32>
    %288 = tpu.matmul %286, %287, %cst_170 {dimension_numbers = #tpu.dot_dimension_numbers<[1], [0], [0], [1], [0, 0, 1, 1], [], []>} : vector<2x128xf32>, vector<128x64xf32>, vector<2x64xf32> -> vector<2x64xf32>
    %c0_171 = arith.constant 0 : index
    %c0_172 = arith.constant 0 : index
    %289 = vector.load %arg20[%c0_171, %c0_172] : memref<1x64xf32, #tpu.memory_space<vmem>>, vector<1x64xf32>
    %290 = vector.broadcast %289 : vector<1x64xf32> to vector<2x64xf32>
    %291 = arith.addf %288, %290 : vector<2x64xf32>
    %c0_173 = arith.constant 0 : index
    %c0_174 = arith.constant 0 : index
    %292 = vector.load %arg21[%c0_173, %c0_174] : memref<1x64xf32, #tpu.memory_space<vmem>>, vector<1x64xf32>
    %c0_175 = arith.constant 0 : index
    %c0_176 = arith.constant 0 : index
    %293 = vector.load %arg22[%c0_175, %c0_176] : memref<1x64xf32, #tpu.memory_space<vmem>>, vector<1x64xf32>
    %cst_177 = arith.constant dense<0.000000e+00> : vector<2xf32>
    %294 = vector.multi_reduction <add>, %291, %cst_177 [1] : vector<2x64xf32> to vector<2xf32>
    %295 = vector.shape_cast %294 : vector<2xf32> to vector<2x1xf32>
    %cst_178 = arith.constant 6.400000e+01 : f32
    %296 = vector.broadcast %cst_178 : f32 to vector<2x1xf32>
    %297 = arith.divf %295, %296 : vector<2x1xf32>
    %298 = vector.broadcast %297 : vector<2x1xf32> to vector<2x64xf32>
    %299 = arith.subf %291, %298 : vector<2x64xf32>
    %300 = arith.mulf %299, %299 : vector<2x64xf32>
    %cst_179 = arith.constant dense<0.000000e+00> : vector<2xf32>
    %301 = vector.multi_reduction <add>, %300, %cst_179 [1] : vector<2x64xf32> to vector<2xf32>
    %302 = vector.shape_cast %301 : vector<2xf32> to vector<2x1xf32>
    %cst_180 = arith.constant 6.400000e+01 : f32
    %303 = vector.broadcast %cst_180 : f32 to vector<2x1xf32>
    %304 = arith.divf %302, %303 : vector<2x1xf32>
    %305 = vector.broadcast %297 : vector<2x1xf32> to vector<2x64xf32>
    %306 = arith.subf %291, %305 : vector<2x64xf32>
    %cst_181 = arith.constant 9.99999974E-6 : f32
    %307 = vector.broadcast %cst_181 : f32 to vector<2x1xf32>
    %308 = arith.addf %304, %307 : vector<2x1xf32>
    %309 = math.rsqrt %308 : vector<2x1xf32>
    %310 = vector.broadcast %309 : vector<2x1xf32> to vector<2x64xf32>
    %311 = arith.mulf %306, %310 : vector<2x64xf32>
    %312 = vector.broadcast %292 : vector<1x64xf32> to vector<2x64xf32>
    %313 = arith.mulf %311, %312 : vector<2x64xf32>
    %314 = vector.broadcast %293 : vector<1x64xf32> to vector<2x64xf32>
    %315 = arith.addf %313, %314 : vector<2x64xf32>
    %cst_182 = arith.constant 0.000000e+00 : f32
    %316 = vector.broadcast %cst_182 : f32 to vector<2x64xf32>
    %317 = arith.maximumf %315, %316 : vector<2x64xf32>
    %c0_183 = arith.constant 0 : index
    %c0_184 = arith.constant 0 : index
    %318 = vector.load %arg23[%c0_183, %c0_184] : memref<64x32xf32, #tpu.memory_space<vmem>>, vector<64x32xf32>
    %cst_185 = arith.constant dense<0.000000e+00> : vector<2x32xf32>
    %319 = tpu.matmul %317, %318, %cst_185 {dimension_numbers = #tpu.dot_dimension_numbers<[1], [0], [0], [1], [0, 0, 1, 1], [], []>} : vector<2x64xf32>, vector<64x32xf32>, vector<2x32xf32> -> vector<2x32xf32>
    %c0_186 = arith.constant 0 : index
    %c0_187 = arith.constant 0 : index
    %320 = vector.load %arg24[%c0_186, %c0_187] : memref<1x32xf32, #tpu.memory_space<vmem>>, vector<1x32xf32>
    %321 = vector.broadcast %320 : vector<1x32xf32> to vector<2x32xf32>
    %322 = arith.addf %319, %321 : vector<2x32xf32>
    %cst_188 = arith.constant 0.000000e+00 : f32
    %323 = vector.broadcast %cst_188 : f32 to vector<2x32xf32>
    %324 = arith.maximumf %322, %323 : vector<2x32xf32>
    %c0_189 = arith.constant 0 : index
    %c0_190 = arith.constant 0 : index
    %325 = vector.load %arg25[%c0_189, %c0_190] : memref<1x32xf32, #tpu.memory_space<vmem>>, vector<1x32xf32>
    %326 = vector.broadcast %325 : vector<1x32xf32> to vector<2x32xf32>
    %327 = arith.mulf %324, %326 : vector<2x32xf32>
    %cst_191 = arith.constant dense<0.000000e+00> : vector<2xf32>
    %328 = vector.multi_reduction <add>, %327, %cst_191 [1] : vector<2x32xf32> to vector<2xf32>
    %329 = vector.shape_cast %328 : vector<2xf32> to vector<2x1xf32>
    %c0_192 = arith.constant 0 : index
    %c0_193 = arith.constant 0 : index
    %330 = vector.load %arg26[%c0_192, %c0_193] : memref<1x1xf32, #tpu.memory_space<vmem>>, vector<1x1xf32>
    %331 = vector.broadcast %330 : vector<1x1xf32> to vector<2x1xf32>
    %332 = arith.addf %329, %331 : vector<2x1xf32>
    %c0_194 = arith.constant 0 : index
    %c0_195 = arith.constant 0 : index
    %333 = vector.load %arg27[%c0_194, %c0_195] : memref<2x1xf32, #tpu.memory_space<vmem>>, vector<2x1xf32>
    tpu.vector_store %arg27[%c0_194, %c0_195], %332 {strides = array<i32>} : memref<2x1xf32, #tpu.memory_space<vmem>>, vector<2x1xf32>,
    return
  }
  func.func @transform_0(%arg0: i32) -> (i32, i32) {
    %c0_i32 = arith.constant 0 : i32
    %c0_i32_0 = arith.constant 0 : i32
    return %arg0, %c0_i32 : i32, i32
  }
  func.func @transform_1(%arg0: i32) -> (i32, i32) {
    %c0_i32 = arith.constant 0 : i32
    %c0_i32_0 = arith.constant 0 : i32
    %c0_i32_1 = arith.constant 0 : i32
    return %c0_i32, %c0_i32_0 : i32, i32
  }
  func.func @transform_2(%arg0: i32) -> (i32, i32) {
    %c0_i32 = arith.constant 0 : i32
    %c0_i32_0 = arith.constant 0 : i32
    %c0_i32_1 = arith.constant 0 : i32
    return %c0_i32, %c0_i32_0 : i32, i32
  }
  func.func @transform_3(%arg0: i32) -> (i32, i32) {
    %c0_i32 = arith.constant 0 : i32
    %c0_i32_0 = arith.constant 0 : i32
    %c0_i32_1 = arith.constant 0 : i32
    return %c0_i32, %c0_i32_0 : i32, i32
  }
  func.func @transform_4(%arg0: i32) -> (i32, i32) {
    %c0_i32 = arith.constant 0 : i32
    %c0_i32_0 = arith.constant 0 : i32
    %c0_i32_1 = arith.constant 0 : i32
    return %c0_i32, %c0_i32_0 : i32, i32
  }
  func.func @transform_5(%arg0: i32) -> (i32, i32) {
    %c0_i32 = arith.constant 0 : i32
    %c0_i32_0 = arith.constant 0 : i32
    %c0_i32_1 = arith.constant 0 : i32
    return %c0_i32, %c0_i32_0 : i32, i32
  }
  func.func @transform_6(%arg0: i32) -> (i32, i32, i32) {
    %c0_i32 = arith.constant 0 : i32
    %c0_i32_0 = arith.constant 0 : i32
    %c0_i32_1 = arith.constant 0 : i32
    %c0_i32_2 = arith.constant 0 : i32
    return %c0_i32, %c0_i32_0, %c0_i32_1 : i32, i32, i32
  }
  func.func @transform_7(%arg0: i32) -> (i32, i32, i32) {
    %c0_i32 = arith.constant 0 : i32
    %c0_i32_0 = arith.constant 0 : i32
    %c0_i32_1 = arith.constant 0 : i32
    %c0_i32_2 = arith.constant 0 : i32
    return %c0_i32, %c0_i32_0, %c0_i32_1 : i32, i32, i32
  }
  func.func @transform_8(%arg0: i32) -> (i32, i32, i32) {
    %c0_i32 = arith.constant 0 : i32
    %c0_i32_0 = arith.constant 0 : i32
    %c0_i32_1 = arith.constant 0 : i32
    %c0_i32_2 = arith.constant 0 : i32
    return %c0_i32, %c0_i32_0, %c0_i32_1 : i32, i32, i32
  }
  func.func @transform_9(%arg0: i32) -> (i32, i32, i32) {
    %c0_i32 = arith.constant 0 : i32
    %c0_i32_0 = arith.constant 0 : i32
    %c0_i32_1 = arith.constant 0 : i32
    %c0_i32_2 = arith.constant 0 : i32
    return %c0_i32, %c0_i32_0, %c0_i32_1 : i32, i32, i32
  }
  func.func @transform_10(%arg0: i32) -> (i32, i32, i32) {
    %c0_i32 = arith.constant 0 : i32
    %c0_i32_0 = arith.constant 0 : i32
    %c0_i32_1 = arith.constant 0 : i32
    %c0_i32_2 = arith.constant 0 : i32
    return %c0_i32, %c0_i32_0, %c0_i32_1 : i32, i32, i32
  }
  func.func @transform_11(%arg0: i32) -> (i32, i32, i32) {
    %c0_i32 = arith.constant 0 : i32
    %c0_i32_0 = arith.constant 0 : i32
    %c0_i32_1 = arith.constant 0 : i32
    %c0_i32_2 = arith.constant 0 : i32
    return %c0_i32, %c0_i32_0, %c0_i32_1 : i32, i32, i32
  }
  func.func @transform_12(%arg0: i32) -> (i32, i32, i32) {
    %c0_i32 = arith.constant 0 : i32
    %c0_i32_0 = arith.constant 0 : i32
    %c0_i32_1 = arith.constant 0 : i32
    %c0_i32_2 = arith.constant 0 : i32
    return %c0_i32, %c0_i32_0, %c0_i32_1 : i32, i32, i32
  }
  func.func @transform_13(%arg0: i32) -> (i32, i32, i32) {
    %c0_i32 = arith.constant 0 : i32
    %c0_i32_0 = arith.constant 0 : i32
    %c0_i32_1 = arith.constant 0 : i32
    %c0_i32_2 = arith.constant 0 : i32
    return %c0_i32, %c0_i32_0, %c0_i32_1 : i32, i32, i32
  }
  func.func @transform_14(%arg0: i32) -> (i32, i32, i32) {
    %c0_i32 = arith.constant 0 : i32
    %c0_i32_0 = arith.constant 0 : i32
    %c0_i32_1 = arith.constant 0 : i32
    %c0_i32_2 = arith.constant 0 : i32
    return %c0_i32, %c0_i32_0, %c0_i32_1 : i32, i32, i32
  }
  func.func @transform_15(%arg0: i32) -> (i32, i32, i32) {
    %c0_i32 = arith.constant 0 : i32
    %c0_i32_0 = arith.constant 0 : i32
    %c0_i32_1 = arith.constant 0 : i32
    %c0_i32_2 = arith.constant 0 : i32
    return %c0_i32, %c0_i32_0, %c0_i32_1 : i32, i32, i32
  }
  func.func @transform_16(%arg0: i32) -> (i32, i32, i32) {
    %c0_i32 = arith.constant 0 : i32
    %c0_i32_0 = arith.constant 0 : i32
    %c0_i32_1 = arith.constant 0 : i32
    %c0_i32_2 = arith.constant 0 : i32
    return %c0_i32, %c0_i32_0, %c0_i32_1 : i32, i32, i32
  }
  func.func @transform_17(%arg0: i32) -> (i32, i32, i32) {
    %c0_i32 = arith.constant 0 : i32
    %c0_i32_0 = arith.constant 0 : i32
    %c0_i32_1 = arith.constant 0 : i32
    %c0_i32_2 = arith.constant 0 : i32
    return %c0_i32, %c0_i32_0, %c0_i32_1 : i32, i32, i32
  }
  func.func @transform_18(%arg0: i32) -> (i32, i32) {
    %c0_i32 = arith.constant 0 : i32
    %c0_i32_0 = arith.constant 0 : i32
    %c0_i32_1 = arith.constant 0 : i32
    return %c0_i32, %c0_i32_0 : i32, i32
  }
  func.func @transform_19(%arg0: i32) -> (i32, i32) {
    %c0_i32 = arith.constant 0 : i32
    %c0_i32_0 = arith.constant 0 : i32
    %c0_i32_1 = arith.constant 0 : i32
    return %c0_i32, %c0_i32_0 : i32, i32
  }
  func.func @transform_20(%arg0: i32) -> (i32, i32) {
    %c0_i32 = arith.constant 0 : i32
    %c0_i32_0 = arith.constant 0 : i32
    %c0_i32_1 = arith.constant 0 : i32
    return %c0_i32, %c0_i32_0 : i32, i32
  }
  func.func @transform_21(%arg0: i32) -> (i32, i32) {
    %c0_i32 = arith.constant 0 : i32
    %c0_i32_0 = arith.constant 0 : i32
    %c0_i32_1 = arith.constant 0 : i32
    return %c0_i32, %c0_i32_0 : i32, i32
  }
  func.func @transform_22(%arg0: i32) -> (i32, i32) {
    %c0_i32 = arith.constant 0 : i32
    %c0_i32_0 = arith.constant 0 : i32
    %c0_i32_1 = arith.constant 0 : i32
    return %c0_i32, %c0_i32_0 : i32, i32
  }
  func.func @transform_23(%arg0: i32) -> (i32, i32) {
    %c0_i32 = arith.constant 0 : i32
    %c0_i32_0 = arith.constant 0 : i32
    %c0_i32_1 = arith.constant 0 : i32
    return %c0_i32, %c0_i32_0 : i32, i32
  }
  func.func @transform_24(%arg0: i32) -> (i32, i32) {
    %c0_i32 = arith.constant 0 : i32
    %c0_i32_0 = arith.constant 0 : i32
    %c0_i32_1 = arith.constant 0 : i32
    return %c0_i32, %c0_i32_0 : i32, i32
  }
  func.func @transform_25(%arg0: i32) -> (i32, i32) {
    %c0_i32 = arith.constant 0 : i32
    %c0_i32_0 = arith.constant 0 : i32
    %c0_i32_1 = arith.constant 0 : i32
    return %c0_i32, %c0_i32_0 : i32, i32
  }
  func.func @transform_26(%arg0: i32) -> (i32, i32) {
    %c0_i32 = arith.constant 0 : i32
    %c0_i32_0 = arith.constant 0 : i32
    return %arg0, %c0_i32 : i32, i32
  }
}

</mosaic_0001>

<bundles_post_ra>
// kernel: tpu_custom_call.1
= control target key start
LH: loop header
LB: loop body
LE: loop exit
PB: predicated region body
PF: predicated region fallthrough
CT: control target
= control target key end

     0   :  { %s2385_s0 = inlined_call_operand.vmem [shape: f32[2,32], index: 0, kind: input, shape index: {}]   ;;  %s2386_s1 = inlined_call_operand.vmem [shape: f32[32,128], index: 1, kind: input, shape index: {}]   ;;  %s2387_s2 = inlined_call_operand.vmem [shape: f32[1,128], index: 2, kind: input, shape index: {}]   ;;  %s2388_s3 = inlined_call_operand.vmem [shape: f32[1,128], index: 3, kind: input, shape index: {}]   ;;  %s2389_s4 = inlined_call_operand.vmem [shape: f32[1,128], index: 4, kind: input, shape index: {}]   ;;  %s2390_s5 = inlined_call_operand.vmem [shape: f32[1,128], index: 5, kind: input, shape index: {}]   ;;  %s2391_s6 = inlined_call_operand.vmem [shape: f32[3,1,128], index: 6, kind: input, shape index: {}]   ;;  %s2392_s7 = inlined_call_operand.vmem [shape: f32[3,1,128], index: 7, kind: input, shape index: {}]   ;;  %s2393_s8 = inlined_call_operand.hbm [shape: f32[3,128,128], index: 8, kind: input, shape index: {}]   ;;  %s2394_s9 = inlined_call_operand.vmem [shape: f32[3,1,128], index: 9, kind: input, shape index: {}]   ;;  %s2395_s10 = inlined_call_operand.hbm [shape: f32[3,128,128], index: 10, kind: input, shape index: {}]   ;;  %s2396_s11 = inlined_call_operand.vmem [shape: f32[3,1,128], index: 11, kind: input, shape index: {}]   ;;  %s2397_s12 = inlined_call_operand.vmem [shape: f32[3,1,128], index: 12, kind: input, shape index: {}]   ;;  %s2398_s13 = inlined_call_operand.vmem [shape: f32[3,1,128], index: 13, kind: input, shape index: {}]   ;;  %s2399_s14 = inlined_call_operand.hbm [shape: f32[3,128,512], index: 14, kind: input, shape index: {}]   ;;  %s2400_s15 = inlined_call_operand.vmem [shape: f32[3,1,512], index: 15, kind: input, shape index: {}]   ;;  %s2401_s16 = inlined_call_operand.hbm [shape: f32[3,512,128], index: 16, kind: input, shape index: {}]   ;;  %s2402_s17 = inlined_call_operand.vmem [shape: f32[3,1,128], index: 17, kind: input, shape index: {}]   ;;  %s2403_s18 = inlined_call_operand.vmem [shape: f32[128,64], index: 18, kind: input, shape index: {}]   ;;  %s2404_s19 = inlined_call_operand.vmem [shape: f32[1,64], index: 19, kind: input, shape index: {}]   ;;  %s2405_s20 = inlined_call_operand.vmem [shape: f32[1,64], index: 20, kind: input, shape index: {}]   ;;  %s2406_s21 = inlined_call_operand.vmem [shape: f32[1,64], index: 21, kind: input, shape index: {}]   ;;  %s2407_s22 = inlined_call_operand.vmem [shape: f32[64,32], index: 22, kind: input, shape index: {}]   ;;  %s2408_s23 = inlined_call_operand.vmem [shape: f32[1,32], index: 23, kind: input, shape index: {}]   ;;  %s2409_s24 = inlined_call_operand.vmem [shape: f32[1,32], index: 24, kind: input, shape index: {}]   ;;  %s2410_s25 = inlined_call_operand.<no memory space> [shape: f32[1,1], index: 25, kind: input, shape index: {}]   ;;  %s2411_s26 = inlined_call_operand.vmem [shape: f32[2,1], index: 26, kind: output, shape index: {}]  }
   0x1   :  { %2416 = sst [smem:[#allocation13_spill]] %s2385_s0  ;;  %v31_v0 = vstv %s2410_s25 }
   0x2   :  { %2417 = sst [smem:[#allocation14_spill]] %s2386_s1  ;;  %32 = vst [vmem:[#allocation2] sm:$0x1] %v31_v0 }
   0x3   :  { %2418 = sst [smem:[#allocation15_spill]] %s2387_s2 }
   0x4   :  { %2419 = sst [smem:[#allocation16_spill]] %s2388_s3 }
   0x5   :  { %2420 = sst [smem:[#allocation17_spill]] %s2389_s4 }
   0x6   :  { %2421 = sst [smem:[#allocation18_spill]] %s2390_s5 }
   0x7   :  { %2422 = sst [smem:[#allocation19_spill]] %s2391_s6 }
   0x8   :  { %2423 = sst [smem:[#allocation20_spill]] %s2392_s7 }
   0x9   :  { %2424 = sst [smem:[#allocation21_spill]] %s2393_s8 }
   0xa   :  { %2425 = sst [smem:[#allocation22_spill]] %s2394_s9 }
   0xb   :  { %2426 = sst [smem:[#allocation23_spill]] %s2395_s10 }
   0xc   :  { %2427 = sst [smem:[#allocation24_spill]] %s2411_s26 }
   0xd   :  { %33 = vsyncpa [#allocation4], 0 }
   0xe   :  { %34 = vsyncpa [#allocation6], 0 }
   0xf   :  { %35 = vsyncpa [#allocation9], 0  ;;  %s2428_s8 = sld [smem:[#allocation23_spill]]  ;;  %s1929_s29 = smov [#allocation5]  }
  0x10   :  { %s73_s0 = sshll.u32 %s1929_s29, 4  ;;  %s2429_s2 = sld [smem:[#allocation21_spill]]  ;;  %s74_s0 = int_to_ptr.vmem [resolvable:$true] %s73_s0 }
  0x11   :  { %s1930_s10 = smov 128   ;;  %s1931_s6 = smov 8  }
  0x12   :  { %s1932_s25 = smov [#allocation3]   ;;  %s90_s26 = sshll.u32 %s2399_s14, 4  ;;  %s91_s26 = int_to_ptr.hbm [resolvable:$true] %s90_s26 }
  0x13   :  { %s58_s1 = sshll.u32 %s1932_s25, 4  ;;  %s1933_s7 = smov [#allocation7]   ;;  %s59_s1 = int_to_ptr.vmem [resolvable:$true] %s58_s1 }
  0x14   :  { %s92_s28 = sshll.u32 %s1933_s7, 4  ;;  %s105_s9 = sshll.u32 %s2401_s16, 4  ;;  %s93_s28 = int_to_ptr.vmem [resolvable:$true] %s92_s28  ;;  %s106_s9 = int_to_ptr.hbm [resolvable:$true] %s105_s9 }
  0x15   :  { %s71_s4 = sshll.u32 %s2428_s8, 4  ;;  %s1934_s30 = smov 512   ;;  %s72_s4 = int_to_ptr.hbm [resolvable:$true] %s71_s4 }
  0x16   :  { %s56_s5 = sshll.u32 %s2429_s2, 4  ;;  %s1935_s2 = smov 32   ;;  %s57_s5 = int_to_ptr.hbm [resolvable:$true] %s56_s5 }
  0x17   :  { %79 = dma.hbm_to_vmem [thread:$0]  %s72_s4, 6144, %s74_s0, [#allocation6], %s1930_s10, %s1930_s10, %s1931_s6  }
  0x18   :  { %64 = dma.hbm_to_vmem [thread:$0]  %s57_s5, 6144, %s59_s1, [#allocation4], %s1930_s10, %s1930_s10, %s1931_s6  }
  0x19   :  { %98 = dma.hbm_to_vmem [thread:$0]  %s91_s26, 24576, %s93_s28, [#allocation6], %s1934_s30, %s1934_s30, %s1935_s2  }
  0x1a   :  { %s1936_s4 = smov [#allocation8]  }
  0x1b   :  { %s107_s0 = sshll.u32 %s1936_s4, 4  ;;  %s108_s0 = int_to_ptr.vmem [resolvable:$true] %s107_s0 }
  0x1c   :  { %113 = dma.hbm_to_vmem [thread:$0]  %s106_s9, 24576, %s108_s0, [#allocation9], %s1930_s10, %s1930_s10, %s1931_s6  }
  0x1d   :  { %1923 = dma.done.wait [#allocation4], 6144  }
  0x1e   :  { %1924 = vsyncadd [#allocation4], 4294961152 }
  0x1f   :  { %1925 = dma.done.wait [#allocation6], 30720  }
  0x20   :  { %1926 = vsyncadd [#allocation6], 4294936576 }
  0x21   :  { %1927 = dma.done.wait [#allocation9], 24576  }
  0x22   :  { %1928 = vsyncadd [#allocation9], 4294942720  ;;  %s2430_s25 = sld [smem:[#allocation14_spill]]  ;;  %vm157_vm0 = vcmask 261120   ;;  %vm183_vm1 = vcmask 1041408   ;;  %v1937_v10 = vmov 128.0  }
  0x23   :  { %s2431_s28 = sld [smem:[#allocation13_spill]]  ;;  %1807 = vrcp.f32 %v1937_v10  ;;  %v274_v41 = vld [vmem:[#allocation3 + $0x78] sm:$0xff]  ;;  %v273_v42 = vld [vmem:[#allocation3 + $0x70] sm:$0xff]  ;;  %v272_v48 = vld [vmem:[#allocation3 + $0x68] sm:$0xff] }
  0x24   :  { %s2432_s9 = sld [smem:[#allocation15_spill]]  ;;  %279 = vmatpush.msra.mxu1 %v274_v41  ;;  %v271_v49 = vld [vmem:[#allocation3 + $0x60] sm:$0xff]  ;;  %v270_v50 = vld [vmem:[#allocation3 + $0x58] sm:$0xff]  ;;  %v269_v51 = vld [vmem:[#allocation3 + $0x50] sm:$0xff] }
  0x25   :  { %s2433_s4 = sld [smem:[#allocation16_spill]]  ;;  %v268_v52 = vld [vmem:[#allocation3 + $0x48] sm:$0xff]  ;;  %v267_v53 = vld [vmem:[#allocation3 + $0x40] sm:$0xff]  ;;  %v266_v54 = vld [vmem:[#allocation3 + $0x38] sm:$0xff] }
  0x26   :  { %s2434_s5 = sld [smem:[#allocation17_spill]]  ;;  %280 = vmatpush.msra.mxu1 %v273_v42  ;;  %v265_v55 = vld [vmem:[#allocation3 + $0x30] sm:$0xff]  ;;  %v264_v56 = vld [vmem:[#allocation3 + $0x28] sm:$0xff]  ;;  %v263_v57 = vld [vmem:[#allocation3 + $0x20] sm:$0xff] }
  0x27   :  { %s2435_s16 = sld [smem:[#allocation18_spill]]  ;;  %v262_v58 = vld [vmem:[#allocation3 + $0x18] sm:$0xff]  ;;  %v261_v59 = vld [vmem:[#allocation3 + $0x10] sm:$0xff]  ;;  %v260_v60 = vld [vmem:[#allocation3 + $0x8] sm:$0xff] }
  0x28   :  { %v152_v1 = vld [vmem:[%s2430_s25 + $0x18] sm:$0xff]  ;;  %v151_v2 = vld [vmem:[%s2430_s25 + $0x10] sm:$0xff]  ;;  %v150_v3 = vld [vmem:[%s2430_s25 + $0x8] sm:$0xff]  ;;  %281 = vmatpush.msra.mxu1 %v272_v48  ;;  %s2436_s10 = sld [smem:[#allocation19_spill]] }
  0x29   :  { %173 = vmatpush.msra.mxu0 %v152_v1  ;;  %v149_v4 = vld [vmem:[%s2430_s25] sm:$0xff]  ;;  %v1808_v11 = vpop.eup %1807  ;;  %v313_v63 = vld [vmem:[#allocation5 + $0x70] sm:$0xff]  ;;  %v312_v0 = vld [vmem:[#allocation5 + $0x68] sm:$0xff]  ;;  %s2437_s7 = sld [smem:[#allocation20_spill]] }
  0x2a   :  { %v148_v5 = vld [vmem:[%s2431_s28] sm:$0x3]  ;;  %v188_v12 = vmul.f32 128.0, %v1808_v11  ;;  %vm192_vm2 = vweird.f32 %v1808_v11  ;;  %282 = vmatpush.msra.mxu1 %v271_v49  ;;  %s2438_s29 = sld [smem:[#allocation22_spill]]  ;;  %v434_v41 = vld [vmem:[#allocation7 + $0x1f0] sm:$0xff] }
  0x2b   :  { %174 = vmatpush.msra.mxu0 %v151_v2  ;;  %v1776_v6 = vld [vmem:[%s2432_s9] ss:$0 sm:$0xff]  ;;  %v259_v61 = vld [vmem:[#allocation3] sm:$0xff]  ;;  %s2439_s27 = sld [smem:[#allocation24_spill]] }
  0x2c   :  { %v189_v13 = vsub.f32 1.0, %v188_v12  ;;  %v1777_v31 = vld [vmem:[%s2433_s4] ss:$0 sm:$0xff]  ;;  %283 = vmatpush.msra.mxu1 %v270_v50  ;;  %v305_v12 = vld [vmem:[#allocation5 + $0x30] sm:$0xff] }
  0x2d   :  { %175 = vmatpush.msra.mxu0 %v150_v3  ;;  %v1778_v34 = vld [vmem:[%s2434_s5] ss:$0 sm:$0xff]  ;;  %v311_v3 = vld [vmem:[#allocation5 + $0x60] sm:$0xff] }
  0x2e   :  { %v190_v14 = vmul.f32 %v1808_v11, %v189_v13  ;;  %v1779_v37 = vld [vmem:[%s2435_s16] ss:$0 sm:$0xff]  ;;  %284 = vmatpush.msra.mxu1 %v269_v51  ;;  %v424_v51 = vld [vmem:[#allocation7 + $0x1a0] sm:$0xff] }
  0x2f   :  { %176 = vmatpush.msra.mxu0 %v149_v4  ;;  %v314_v62 = vld [vmem:[#allocation5 + $0x78] sm:$0xff] }
  0x30   :  { %1748 = vmatmul.msk.f32.vlgmr.msra.gmra.mxu0 %vm157_vm0, %v148_v5  ;;  %v191_v15 = vadd.f32 %v1808_v11, %v190_v14  ;;  %285 = vmatpush.msra.mxu1 %v268_v52  ;;  %v310_v5 = vld [vmem:[#allocation5 + $0x58] sm:$0xff]  ;;  %v304_v14 = vld [vmem:[#allocation5 + $0x28] sm:$0xff] }
  0x31   :  { %319 = vmatpush.msra.mxu2 %v314_v62  ;;  %v306_v10 = vld [vmem:[#allocation5 + $0x38] sm:$0xff]  ;;  %v425_v52 = vld [vmem:[#allocation7 + $0x1a8] sm:$0xff] }
  0x32   :  { %v2108_v16 = vsel %vm192_vm2, %v1808_v11, %v191_v15  ;;  %286 = vmatpush.msra.mxu1 %v267_v53  ;;  %v435_v42 = vld [vmem:[#allocation7 + $0x1f8] sm:$0xff]  ;;  %v426_v53 = vld [vmem:[#allocation7 + $0x1b0] sm:$0xff] }
  0x33   :  { %320 = vmatpush.msra.mxu2 %v313_v63  ;;  %v419_v62 = vld [vmem:[#allocation7 + $0x178] sm:$0xff]  ;;  %v412_v63 = vld [vmem:[#allocation7 + $0x140] sm:$0xff] }
  0x34   :  { %287 = vmatpush.msra.mxu1 %v266_v54  ;;  %v427_v54 = vld [vmem:[#allocation7 + $0x1b8] sm:$0xff] }
  0x35   :  { %321 = vmatpush.msra.mxu2 %v312_v0  ;;  %v413_v0 = vld [vmem:[#allocation7 + $0x148] sm:$0xff] }
  0x36   :  { %288 = vmatpush.msra.mxu1 %v265_v55  ;;  %v420_v55 = vld [vmem:[#allocation7 + $0x180] sm:$0xff] }
  0x37   :  { %322 = vmatpush.msra.mxu2 %v311_v3  ;;  %v408_v3 = vld [vmem:[#allocation7 + $0x120] sm:$0xff] }
  0x38   :  { %289 = vmatpush.msra.mxu1 %v264_v56  ;;  %v421_v56 = vld [vmem:[#allocation7 + $0x188] sm:$0xff] }
  0x39   :  { %323 = vmatpush.msra.mxu2 %v310_v5  ;;  %v410_v5 = vld [vmem:[#allocation7 + $0x130] sm:$0xff] }
  0x3a   :  { %290 = vmatpush.msra.mxu1 %v263_v57  ;;  %v422_v57 = vld [vmem:[#allocation7 + $0x190] sm:$0xff] }
  0x3c   :  { %291 = vmatpush.msra.mxu1 %v262_v58  ;;  %v423_v58 = vld [vmem:[#allocation7 + $0x198] sm:$0xff] }
  0x3e   :  { %292 = vmatpush.msra.mxu1 %v261_v59  ;;  %v416_v59 = vld [vmem:[#allocation7 + $0x160] sm:$0xff] }
  0x40   :  { %293 = vmatpush.msra.mxu1 %v260_v60  ;;  %v417_v60 = vld [vmem:[#allocation7 + $0x168] sm:$0xff] }
  0x42   :  { %294 = vmatpush.msra.mxu1 %v259_v61  ;;  %v418_v61 = vld [vmem:[#allocation7 + $0x170] sm:$0xff] }
  0x44   :  { %486 = vmatpush.msrb.mxu1 %v434_v41  ;;  %v379_v41 = vld [vmem:[#allocation7 + $0x38] sm:$0xff] }
  0xad   :  { %v178_v7 = vpop.f32.mrf.mxu0 }
  0xae   :  { %v179_v8 = vadd.f32 %v1776_v6, %v178_v7  ;;  %v309_v6 = vld [vmem:[#allocation5 + $0x50] sm:$0xff]  ;;  %v308_v7 = vld [vmem:[#allocation5 + $0x48] sm:$0xff] }
  0xaf   :  { %324 = vmatpush.msra.mxu2 %v309_v6  ;;  %v411_v6 = vld [vmem:[#allocation7 + $0x138] sm:$0xff] }
  0xb0   :  { %v184_v9 = vsel %vm183_vm1, %v179_v8, 0.0 }
  0xb1   :  { %185 = vadd.xlane.f32.xlu0 %v184_v9  ;;  %325 = vmatpush.msra.mxu2 %v308_v7  ;;  %v404_v7 = vld [vmem:[#allocation7 + $0x100] sm:$0xff] }
 0x124   :  { %v186_v17 = vpop.xlane.xlu0 %185 }
 0x125   :  { %v194_v18 = vmul.f32 %v2108_v16, %v186_v17  ;;  %v303_v17 = vld [vmem:[#allocation5 + $0x20] sm:$0xff] }
 0x127   :  { %v195_v19 = vsub.f32 %v179_v8, %v194_v18  ;;  %v307_v8 = vld [vmem:[#allocation5 + $0x40] sm:$0xff] }
 0x128   :  { %326 = vmatpush.msra.mxu2 %v307_v8  ;;  %v405_v8 = vld [vmem:[#allocation7 + $0x108] sm:$0xff] }
 0x129   :  { %v196_v20 = vmul.f32 %v195_v19, %v195_v19 }
 0x12a   :  { %327 = vmatpush.msra.mxu2 %v306_v10  ;;  %v407_v10 = vld [vmem:[#allocation7 + $0x118] sm:$0xff] }
 0x12b   :  { %v197_v21 = vsel %vm183_vm1, %v196_v20, 0.0 }
 0x12c   :  { %198 = vadd.xlane.f32.xlu0 %v197_v21  ;;  %328 = vmatpush.msra.mxu2 %v305_v12  ;;  %v1780_v21 = vld [vmem:[%s2436_s10] ss:$0 sm:$0xff]  ;;  %v401_v12 = vld [vmem:[#allocation7 + $0xe8] sm:$0xff] }
 0x12e   :  { %329 = vmatpush.msra.mxu2 %v304_v14  ;;  %v403_v14 = vld [vmem:[#allocation7 + $0xf8] sm:$0xff] }
 0x130   :  { %330 = vmatpush.msra.mxu2 %v303_v17  ;;  %v397_v17 = vld [vmem:[#allocation7 + $0xc8] sm:$0xff] }
 0x19f   :  { %v199_v22 = vpop.xlane.xlu0 %198 }
 0x1a0   :  { %v200_v23 = vmul.f32 %v199_v22, %v2108_v16  ;;  %v301_v22 = vld [vmem:[#allocation5 + $0x10] sm:$0xff] }
 0x1a2   :  { %v201_v24 = vadd.f32 1e-05, %v200_v23 }
 0x1a4   :  { %1809 = vrsqrt.f32 %v201_v24  ;;  %vm208_vm4 = vweird.f32 %v201_v24 }
 0x1aa   :  { %v1810_v25 = vpop.eup %1809 }
 0x1ab   :  { %v203_v26 = vmul.f32 %v1810_v25, %v201_v24  ;;  %vm209_vm3 = vweird.f32 %v1810_v25 }
 0x1ac   :  { %vm210_vm5 = vmor %vm208_vm4, %vm209_vm3 }
 0x1ad   :  { %v204_v27 = vmul.f32 %v1810_v25, %v203_v26 }
 0x1af   :  { %v205_v28 = vmul.f32 0.5, %v204_v27 }
 0x1b1   :  { %v206_v29 = vsub.f32 1.5, %v205_v28  ;;  %v300_v28 = vld [vmem:[#allocation5 + $0x8] sm:$0xff] }
 0x1b3   :  { %v207_v30 = vmul.f32 %v1810_v25, %v206_v29  ;;  %v299_v29 = vld [vmem:[#allocation5] sm:$0xff] }
 0x1b5   :  { %v211_v32 = vsel %vm210_vm5, %v1810_v25, %v207_v30  ;;  %v1781_v25 = vld [vmem:[%s2437_s7] ss:$0 sm:$0xff] }
 0x1b6   :  { %v212_v33 = vmul.f32 %v211_v32, %v195_v19  ;;  %v302_v19 = vld [vmem:[#allocation5 + $0x18] sm:$0xff] }
 0x1b7   :  { %331 = vmatpush.msra.mxu2 %v302_v19  ;;  %v1782_v30 = vld [vmem:[%s2438_s29] ss:$0 sm:$0xff] }
 0x1b8   :  { %v216_v35 = vmul.f32 %v1777_v31, %v212_v33  ;;  %v1783_v33 = vld [vmem:[%s2396_s11] ss:$0 sm:$0xff] }
 0x1b9   :  { %332 = vmatpush.msra.mxu2 %v301_v22  ;;  %v399_v19 = vld [vmem:[#allocation7 + $0xd8] sm:$0xff]  ;;  %v394_v22 = vld [vmem:[#allocation7 + $0xb0] sm:$0xff] }
 0x1ba   :  { %v220_v36 = vadd.f32 %v1778_v34, %v216_v35 }
 0x1bb   :  { %333 = vmatpush.msra.mxu2 %v300_v28  ;;  %v384_v28 = vld [vmem:[#allocation7 + $0x60] sm:$0xff] }
 0x1bc   :  { %v221_v38 = vmax.f32 %v220_v36, 0.0 }
 0x1bd   :  { %334 = vmatpush.msra.mxu2 %v299_v29  ;;  %v385_v29 = vld [vmem:[#allocation7 + $0x68] sm:$0xff] }
 0x1be   :  { %v2122_v39 = vadd.f32 %v1779_v37, %v221_v38  ;;  %v432_v38 = vld [vmem:[#allocation7 + $0x1e0] sm:$0xff] }
 0x1bf   :  { %446 = vmatpush.msra.mxu3 %v432_v38  ;;  %506 = vmatpush.msrb.mxu2 %v435_v42  ;;  %v377_v38 = vld [vmem:[#allocation7 + $0x28] sm:$0xff]  ;;  %v372_v42 = vld [vmem:[#allocation7] sm:$0xff] }
 0x1c0   :  { %v229_v40 = vsel %vm183_vm1, %v2122_v39, 0.0 }
 0x1c1   :  { %230 = vadd.xlane.f32.xlu1 %v229_v40  ;;  %v433_v40 = vld [vmem:[#allocation7 + $0x1e8] sm:$0xff] }
 0x1c2   :  { %466 = vmatpush.msrb.mxu0 %v433_v40  ;;  %v378_v40 = vld [vmem:[#allocation7 + $0x30] sm:$0xff] }
 0x234   :  { %v231_v43 = vpop.xlane.xlu1 %230 }
 0x235   :  { %v232_v44 = vmul.f32 %v231_v43, %v2108_v16  ;;  %v428_v43 = vld [vmem:[#allocation7 + $0x1c0] sm:$0xff] }
 0x236   :  { %447 = vmatpush.msra.mxu3 %v428_v43  ;;  %v373_v43 = vld [vmem:[#allocation7 + $0x8] sm:$0xff] }
 0x237   :  { %v2128_v45 = vsub.f32 %v2122_v39, %v232_v44  ;;  %v429_v44 = vld [vmem:[#allocation7 + $0x1c8] sm:$0xff] }
 0x238   :  { %467 = vmatpush.msrb.mxu0 %v429_v44  ;;  %448 = vmatpush.msra.mxu3 %v424_v51  ;;  %v374_v44 = vld [vmem:[#allocation7 + $0x10] sm:$0xff]  ;;  %v559_v51 = vld [vmem:[#allocation8 + $0xe8] sm:$0xff] }
 0x239   :  { %v234_v46 = vmul.f32 %v2128_v45, %v2128_v45 }
 0x23a   :  { %468 = vmatpush.msrb.mxu0 %v425_v52  ;;  %449 = vmatpush.msra.mxu3 %v420_v55  ;;  %v575_v52 = vld [vmem:[#allocation8 + $0x168] sm:$0xff]  ;;  %v593_v55 = vld [vmem:[#allocation8 + $0x1f8] sm:$0xff] }
 0x23b   :  { %v235_v47 = vsel %vm183_vm1, %v234_v46, 0.0  ;;  %v431_v46 = vld [vmem:[#allocation7 + $0x1d8] sm:$0xff] }
 0x23c   :  { %236 = vadd.xlane.f32.xlu1 %v235_v47  ;;  %507 = vmatpush.msrb.mxu2 %v431_v46  ;;  %v561_v46 = vld [vmem:[#allocation8 + $0xf8] sm:$0xff] }
 0x23d   :  { %469 = vmatpush.msrb.mxu0 %v421_v56  ;;  %450 = vmatpush.msra.mxu3 %v416_v59  ;;  %v544_v56 = vld [vmem:[#allocation8 + $0x70] sm:$0xff] }
 0x23e   :  { %508 = vmatpush.msrb.mxu2 %v427_v54  ;;  %v592_v59 = vld [vmem:[#allocation8 + $0x1f0] sm:$0xff] }
 0x23f   :  { %470 = vmatpush.msrb.mxu0 %v417_v60  ;;  %451 = vmatpush.msra.mxu3 %v412_v63  ;;  %v557_v63 = vld [vmem:[#allocation8 + $0xd8] sm:$0xff] }
 0x240   :  { %509 = vmatpush.msrb.mxu2 %v423_v58  ;;  %v574_v58 = vld [vmem:[#allocation8 + $0x160] sm:$0xff] }
 0x241   :  { %471 = vmatpush.msrb.mxu0 %v413_v0  ;;  %452 = vmatpush.msra.mxu3 %v408_v3  ;;  %v573_v0 = vld [vmem:[#allocation8 + $0x158] sm:$0xff]  ;;  %v556_v3 = vld [vmem:[#allocation8 + $0xd0] sm:$0xff] }
 0x242   :  { %510 = vmatpush.msrb.mxu2 %v419_v62  ;;  %v591_v62 = vld [vmem:[#allocation8 + $0x1e8] sm:$0xff] }
 0x243   :  { %453 = vmatpush.msra.mxu3 %v404_v7  ;;  %v555_v7 = vld [vmem:[#allocation8 + $0xc8] sm:$0xff] }
 0x2af   :  { %v237_v1 = vpop.xlane.xlu1 %236 }
 0x2b0   :  { %v238_v2 = vmul.f32 %v237_v1, %v2108_v16  ;;  %v414_v1 = vld [vmem:[#allocation7 + $0x150] sm:$0xff] }
 0x2b2   :  { %v239_v4 = vadd.f32 1e-05, %v238_v2  ;;  %v415_v2 = vld [vmem:[#allocation7 + $0x158] sm:$0xff] }
 0x2b3   :  { %511 = vmatpush.msrb.mxu2 %v415_v2  ;;  %v590_v2 = vld [vmem:[#allocation8 + $0x1e0] sm:$0xff] }
 0x2b4   :  { %1811 = vrsqrt.f32 %v239_v4  ;;  %vm246_vm7 = vweird.f32 %v239_v4 }
 0x2b5   :  { %512 = vmatpush.msrb.mxu2 %v411_v6  ;;  %v589_v6 = vld [vmem:[#allocation8 + $0x1d8] sm:$0xff] }
 0x2b7   :  { %513 = vmatpush.msrb.mxu2 %v407_v10  ;;  %v588_v10 = vld [vmem:[#allocation8 + $0x1d0] sm:$0xff] }
 0x2b9   :  { %514 = vmatpush.msrb.mxu2 %v403_v14  ;;  %v539_v14 = vld [vmem:[#allocation8 + $0x48] sm:$0xff] }
 0x2ba   :  { %v1812_v9 = vpop.eup %1811 }
 0x2bb   :  { %v241_v11 = vmul.f32 %v1812_v9, %v239_v4  ;;  %vm247_vm6 = vweird.f32 %v1812_v9  ;;  %v409_v4 = vld [vmem:[#allocation7 + $0x128] sm:$0xff]  ;;  %515 = vmatpush.msrb.mxu2 %v399_v19  ;;  %v569_v19 = vld [vmem:[#allocation8 + $0x138] sm:$0xff] }
 0x2bc   :  { %vm248_vm8 = vmor %vm246_vm7, %vm247_vm6  ;;  %472 = vmatpush.msrb.mxu0 %v409_v4  ;;  %v572_v4 = vld [vmem:[#allocation8 + $0x150] sm:$0xff] }
 0x2bd   :  { %v242_v13 = vmul.f32 %v1812_v9, %v241_v11  ;;  %v400_v11 = vld [vmem:[#allocation7 + $0xe0] sm:$0xff] }
 0x2be   :  { %473 = vmatpush.msrb.mxu0 %v405_v8  ;;  %454 = vmatpush.msra.mxu3 %v400_v11  ;;  %v571_v8 = vld [vmem:[#allocation8 + $0x148] sm:$0xff]  ;;  %v554_v11 = vld [vmem:[#allocation8 + $0xc0] sm:$0xff] }
 0x2bf   :  { %v243_v15 = vmul.f32 0.5, %v242_v13  ;;  %v402_v13 = vld [vmem:[#allocation7 + $0xf0] sm:$0xff] }
 0x2c0   :  { %474 = vmatpush.msrb.mxu0 %v401_v12  ;;  %v570_v12 = vld [vmem:[#allocation8 + $0x140] sm:$0xff] }
 0x2c1   :  { %v244_v18 = vsub.f32 1.5, %v243_v15  ;;  %v396_v15 = vld [vmem:[#allocation7 + $0xc0] sm:$0xff] }
 0x2c2   :  { %455 = vmatpush.msra.mxu3 %v396_v15  ;;  %475 = vmatpush.msrb.mxu0 %v397_v17  ;;  %v587_v15 = vld [vmem:[#allocation8 + $0x1c8] sm:$0xff] }
 0x2c3   :  { %v245_v20 = vmul.f32 %v1812_v9, %v244_v18  ;;  %v398_v18 = vld [vmem:[#allocation7 + $0xd0] sm:$0xff] }
 0x2c5   :  { %v249_v23 = vsel %vm248_vm8, %v1812_v9, %v245_v20  ;;  %v406_v9 = vld [vmem:[#allocation7 + $0x110] sm:$0xff]  ;;  %v392_v20 = vld [vmem:[#allocation7 + $0xa0] sm:$0xff]  ;;  %vm1649_vm8 = vcmask 517120  }
 0x2c6   :  { %v250_v24 = vmul.f32 %v249_v23, %v2128_v45  ;;  %v430_v45 = vld [vmem:[#allocation7 + $0x1d0] sm:$0xff]  ;;  %456 = vmatpush.msra.mxu3 %v392_v20  ;;  %v395_v23 = vld [vmem:[#allocation7 + $0xb8] sm:$0xff]  ;;  %v538_v20 = vld [vmem:[#allocation8 + $0x40] sm:$0xff] }
 0x2c7   :  { %487 = vmatpush.msrb.mxu1 %v430_v45  ;;  %516 = vmatpush.msrb.mxu2 %v395_v23  ;;  %v375_v45 = vld [vmem:[#allocation7 + $0x18] sm:$0xff]  ;;  %v552_v23 = vld [vmem:[#allocation8 + $0xb0] sm:$0xff] }
 0x2c8   :  { %v254_v26 = vmul.f32 %v1780_v21, %v250_v24  ;;  %v393_v21 = vld [vmem:[#allocation7 + $0xa8] sm:$0xff]  ;;  %v388_v24 = vld [vmem:[#allocation7 + $0x80] sm:$0xff] }
 0x2c9   :  { %488 = vmatpush.msrb.mxu1 %v426_v53  ;;  %476 = vmatpush.msrb.mxu0 %v393_v21  ;;  %v545_v53 = vld [vmem:[#allocation8 + $0x78] sm:$0xff]  ;;  %v586_v21 = vld [vmem:[#allocation8 + $0x1c0] sm:$0xff] }
 0x2ca   :  { %v258_v27 = vadd.f32 %v1781_v25, %v254_v26  ;;  %v389_v25 = vld [vmem:[#allocation7 + $0x88] sm:$0xff]  ;;  %v390_v26 = vld [vmem:[#allocation7 + $0x90] sm:$0xff]  ;;  %457 = vmatpush.msra.mxu3 %v388_v24 }
 0x2cb   :  { %489 = vmatpush.msrb.mxu1 %v422_v57  ;;  %477 = vmatpush.msrb.mxu0 %v389_v25  ;;  %v558_v57 = vld [vmem:[#allocation8 + $0xe0] sm:$0xff]  ;;  %v568_v24 = vld [vmem:[#allocation8 + $0x130] sm:$0xff]  ;;  %v537_v25 = vld [vmem:[#allocation8 + $0x38] sm:$0xff] }
 0x2cc   :  { %295 = vmatmul.f32.vlgmr.msra.gmra.mxu1 %v258_v27  ;;  %v391_v27 = vld [vmem:[#allocation7 + $0x98] sm:$0xff]  ;;  %458 = vmatpush.msra.mxu3 %v384_v28  ;;  %v551_v28 = vld [vmem:[#allocation8 + $0xa8] sm:$0xff] }
 0x2cd   :  { %490 = vmatpush.msrb.mxu1 %v418_v61  ;;  %517 = vmatpush.msrb.mxu2 %v391_v27  ;;  %v543_v61 = vld [vmem:[#allocation8 + $0x68] sm:$0xff] }
 0x2ce   :  { %478 = vmatpush.msrb.mxu0 %v385_v29  ;;  %v567_v29 = vld [vmem:[#allocation8 + $0x128] sm:$0xff] }
 0x2cf   :  { %491 = vmatpush.msrb.mxu1 %v414_v1  ;;  %v542_v1 = vld [vmem:[#allocation8 + $0x60] sm:$0xff] }
 0x2d1   :  { %492 = vmatpush.msrb.mxu1 %v410_v5  ;;  %v541_v5 = vld [vmem:[#allocation8 + $0x58] sm:$0xff] }
 0x2d3   :  { %493 = vmatpush.msrb.mxu1 %v406_v9  ;;  %v540_v9 = vld [vmem:[#allocation8 + $0x50] sm:$0xff] }
 0x2d5   :  { %494 = vmatpush.msrb.mxu1 %v402_v13 }
 0x2d7   :  { %495 = vmatpush.msrb.mxu1 %v398_v18  ;;  %v553_v18 = vld [vmem:[#allocation8 + $0xb8] sm:$0xff] }
 0x2d9   :  { %496 = vmatpush.msrb.mxu1 %v394_v22 }
 0x2db   :  { %497 = vmatpush.msrb.mxu1 %v390_v26  ;;  %v585_v26 = vld [vmem:[#allocation8 + $0x1b8] sm:$0xff] }
 0x349   :  { %v296_v31 = vpop.f32.mrf.mxu1 }
 0x34a   :  { %v297_v32 = vadd.f32 %v1782_v30, %v296_v31  ;;  %v386_v30 = vld [vmem:[#allocation7 + $0x70] sm:$0xff]  ;;  %v387_v31 = vld [vmem:[#allocation7 + $0x78] sm:$0xff] }
 0x34b   :  { %498 = vmatpush.msrb.mxu1 %v386_v30  ;;  %518 = vmatpush.msrb.mxu2 %v387_v31  ;;  %v536_v30 = vld [vmem:[#allocation8 + $0x30] sm:$0xff] }
 0x34c   :  { %335 = vmatmul.f32.vlgmr.msra.gmra.mxu2 %v297_v32  ;;  %v380_v32 = vld [vmem:[#allocation7 + $0x40] sm:$0xff]  ;;  %v584_v31 = vld [vmem:[#allocation8 + $0x1b0] sm:$0xff] }
 0x34d   :  { %459 = vmatpush.msra.mxu3 %v380_v32 }
 0x3cf   :  { %v336_v34 = vpop.f32.mrf.mxu2 }
 0x3d0   :  { %v337_v35 = vadd.f32 %v1783_v33, %v336_v34  ;;  %v381_v33 = vld [vmem:[#allocation7 + $0x48] sm:$0xff]  ;;  %v382_v34 = vld [vmem:[#allocation7 + $0x50] sm:$0xff] }
 0x3d1   :  { %479 = vmatpush.msrb.mxu0 %v381_v33  ;;  %499 = vmatpush.msrb.mxu1 %v382_v34  ;;  %v550_v33 = vld [vmem:[#allocation8 + $0xa0] sm:$0xff] }
 0x3d2   :  { %v2148_v36 = vadd.f32 %v337_v35, %v2122_v39  ;;  %v383_v35 = vld [vmem:[#allocation7 + $0x58] sm:$0xff]  ;;  %v566_v34 = vld [vmem:[#allocation8 + $0x120] sm:$0xff] }
 0x3d3   :  { %519 = vmatpush.msrb.mxu2 %v383_v35  ;;  %480 = vmatpush.msrb.mxu0 %v377_v38  ;;  %v565_v38 = vld [vmem:[#allocation8 + $0x118] sm:$0xff] }
 0x3d4   :  { %v342_v37 = vsel %vm183_vm1, %v2148_v36, 0.0  ;;  %500 = vmatpush.msrb.mxu1 %v378_v40  ;;  %v1784_v40 = vld [vmem:[%s2397_s12] ss:$0 sm:$0xff] }
 0x3d5   :  { %343 = vadd.xlane.f32.xlu2 %v342_v37  ;;  %v376_v37 = vld [vmem:[#allocation7 + $0x20] sm:$0xff]  ;;  %520 = vmatpush.msrb.mxu2 %v379_v41 }
 0x3d6   :  { %460 = vmatpush.msra.mxu3 %v376_v37  ;;  %481 = vmatpush.msrb.mxu0 %v373_v43  ;;  %v549_v37 = vld [vmem:[#allocation8 + $0x98] sm:$0xff] }
 0x3d7   :  { %501 = vmatpush.msrb.mxu1 %v374_v44  ;;  %521 = vmatpush.msrb.mxu2 %v375_v45  ;;  %v1785_v43 = vld [vmem:[%s2398_s13] ss:$0 sm:$0xff] }
 0x3d8   :  { %461 = vmatpush.msra.mxu3 %v372_v42  ;;  %618 = vmatpush.msra.mxu0 %v561_v46  ;;  %v535_v46 = vld [vmem:[#allocation8 + $0x28] sm:$0xff] }
 0x3d9   :  { %658 = vmatpush.msra.mxu2 %v593_v55  ;;  %v562_v55 = vld [vmem:[#allocation8 + $0x100] sm:$0xff] }
 0x3da   :  { %598 = vmatpush.msrb.mxu3 %v545_v53  ;;  %v533_v53 = vld [vmem:[#allocation8 + $0x18] sm:$0xff] }
 0x3db   :  { %659 = vmatpush.msra.mxu2 %v592_v59  ;;  %v531_v59 = vld [vmem:[#allocation8 + $0x8] sm:$0xff] }
 0x3dc   :  { %599 = vmatpush.msrb.mxu3 %v544_v56  ;;  %v581_v56 = vld [vmem:[#allocation8 + $0x198] sm:$0xff] }
 0x3dd   :  { %660 = vmatpush.msra.mxu2 %v591_v62  ;;  %v578_v62 = vld [vmem:[#allocation8 + $0x180] sm:$0xff] }
 0x3de   :  { %600 = vmatpush.msrb.mxu3 %v543_v61  ;;  %v530_v61 = vld [vmem:[#allocation8] sm:$0xff] }
 0x3df   :  { %661 = vmatpush.msra.mxu2 %v590_v2 }
 0x3e0   :  { %601 = vmatpush.msrb.mxu3 %v542_v1 }
 0x3e1   :  { %662 = vmatpush.msra.mxu2 %v589_v6 }
 0x3e2   :  { %602 = vmatpush.msrb.mxu3 %v541_v5 }
 0x3e3   :  { %663 = vmatpush.msra.mxu2 %v588_v10 }
 0x3e4   :  { %603 = vmatpush.msrb.mxu3 %v540_v9 }
 0x3e5   :  { %664 = vmatpush.msra.mxu2 %v587_v15 }
 0x3e6   :  { %604 = vmatpush.msrb.mxu3 %v539_v14 }
 0x3e7   :  { %665 = vmatpush.msra.mxu2 %v586_v21 }
 0x3e8   :  { %605 = vmatpush.msrb.mxu3 %v538_v20 }
 0x3e9   :  { %666 = vmatpush.msra.mxu2 %v585_v26 }
 0x3ea   :  { %606 = vmatpush.msrb.mxu3 %v537_v25 }
 0x3eb   :  { %667 = vmatpush.msra.mxu2 %v584_v31 }
 0x3ec   :  { %607 = vmatpush.msrb.mxu3 %v536_v30 }
 0x3ee   :  { %608 = vmatpush.msrb.mxu3 %v535_v46  ;;  %v717_v46 = vld [vmem:[#allocation3 + $0x98] sm:$0xff] }
 0x448   :  { %v344_v39 = vpop.xlane.xlu2 %343 }
 0x449   :  { %v345_v47 = vmul.f32 %v344_v39, %v2108_v16  ;;  %v577_v39 = vld [vmem:[#allocation8 + $0x178] sm:$0xff] }
 0x44a   :  { %638 = vmatpush.msra.mxu1 %v577_v39  ;;  %v548_v39 = vld [vmem:[#allocation8 + $0x90] sm:$0xff] }
 0x44b   :  { %v2154_v48 = vsub.f32 %v2148_v36, %v345_v47  ;;  %v560_v47 = vld [vmem:[#allocation8 + $0xf0] sm:$0xff] }
 0x44c   :  { %619 = vmatpush.msra.mxu0 %v560_v47  ;;  %v564_v47 = vld [vmem:[#allocation8 + $0x110] sm:$0xff] }
 0x44d   :  { %v347_v49 = vmul.f32 %v2154_v48, %v2154_v48 }
 0x44e   :  { %620 = vmatpush.msra.mxu0 %v559_v51  ;;  %v563_v51 = vld [vmem:[#allocation8 + $0x108] sm:$0xff] }
 0x44f   :  { %v348_v50 = vsel %vm183_vm1, %v347_v49, 0.0  ;;  %v576_v49 = vld [vmem:[#allocation8 + $0x170] sm:$0xff] }
 0x450   :  { %349 = vadd.xlane.f32.xlu2 %v348_v50  ;;  %639 = vmatpush.msra.mxu1 %v576_v49  ;;  %v583_v49 = vld [vmem:[#allocation8 + $0x1a8] sm:$0xff] }
 0x451   :  { %621 = vmatpush.msra.mxu0 %v558_v57  ;;  %668 = vmatpush.msra.mxu2 %v583_v49  ;;  %v532_v57 = vld [vmem:[#allocation8 + $0x10] sm:$0xff]  ;;  %v714_v49 = vld [vmem:[#allocation3 + $0x80] sm:$0xff] }
 0x452   :  { %640 = vmatpush.msra.mxu1 %v575_v52  ;;  %v582_v52 = vld [vmem:[#allocation8 + $0x1a0] sm:$0xff] }
 0x453   :  { %622 = vmatpush.msra.mxu0 %v557_v63  ;;  %669 = vmatpush.msra.mxu2 %v582_v52  ;;  %v436_v63 = vld [vmem:[%s2400_s15] sm:$0xf] }
 0x454   :  { %641 = vmatpush.msra.mxu1 %v574_v58  ;;  %v580_v58 = vld [vmem:[#allocation8 + $0x190] sm:$0xff]  ;;  %v440_v1 = vperm.slane %v436_v63, 2  ;;  %v441_v9 = vperm.slane %v436_v63, 3 }
 0x455   :  { %623 = vmatpush.msra.mxu0 %v556_v3  ;;  %670 = vmatpush.msra.mxu2 %v581_v56  ;;  %v767_v56 = vld [vmem:[#allocation5 + $0xd8] sm:$0xff] }
 0x456   :  { %642 = vmatpush.msra.mxu1 %v573_v0  ;;  %v439_v0 = vperm.slane %v436_v63, 1 }
 0x457   :  { %624 = vmatpush.msra.mxu0 %v555_v7  ;;  %671 = vmatpush.msra.mxu2 %v580_v58  ;;  %v438_v7 = vperm.slane %v436_v63, 0  ;;  %v765_v58 = vld [vmem:[#allocation5 + $0xc8] sm:$0xff]  ;;  %v762_v63 = vld [vmem:[#allocation5 + $0xb0] sm:$0xff] }
 0x458   :  { %643 = vmatpush.msra.mxu1 %v572_v4 }
 0x459   :  { %625 = vmatpush.msra.mxu0 %v554_v11 }
 0x45a   :  { %644 = vmatpush.msra.mxu1 %v571_v8 }
 0x45b   :  { %626 = vmatpush.msra.mxu0 %v553_v18 }
 0x45c   :  { %645 = vmatpush.msra.mxu1 %v570_v12 }
 0x45d   :  { %627 = vmatpush.msra.mxu0 %v552_v23 }
 0x45e   :  { %646 = vmatpush.msra.mxu1 %v569_v19 }
 0x45f   :  { %628 = vmatpush.msra.mxu0 %v551_v28  ;;  %v729_v28 = vld [vmem:[#allocation3 + $0xf8] sm:$0xff] }
 0x460   :  { %647 = vmatpush.msra.mxu1 %v568_v24 }
 0x461   :  { %629 = vmatpush.msra.mxu0 %v550_v33 }
 0x462   :  { %648 = vmatpush.msra.mxu1 %v567_v29  ;;  %v728_v29 = vld [vmem:[#allocation3 + $0xf0] sm:$0xff] }
 0x463   :  { %630 = vmatpush.msra.mxu0 %v549_v37  ;;  %v725_v37 = vld [vmem:[#allocation3 + $0xd8] sm:$0xff] }
 0x464   :  { %649 = vmatpush.msra.mxu1 %v566_v34  ;;  %v727_v34 = vld [vmem:[#allocation3 + $0xe8] sm:$0xff] }
 0x465   :  { %631 = vmatpush.msra.mxu0 %v548_v39  ;;  %v716_v39 = vld [vmem:[#allocation3 + $0x90] sm:$0xff] }
 0x466   :  { %650 = vmatpush.msra.mxu1 %v565_v38  ;;  %v724_v38 = vld [vmem:[#allocation3 + $0xd0] sm:$0xff] }
 0x468   :  { %651 = vmatpush.msra.mxu1 %v564_v47  ;;  %v715_v47 = vld [vmem:[#allocation3 + $0x88] sm:$0xff] }
 0x46a   :  { %652 = vmatpush.msra.mxu1 %v563_v51  ;;  %v769_v51 = vld [vmem:[#allocation5 + $0xe8] sm:$0xff] }
 0x46c   :  { %653 = vmatpush.msra.mxu1 %v562_v55 }
 0x4c3   :  { %v350_v50 = vpop.xlane.xlu2 %349 }
 0x4c4   :  { %v351_v54 = vmul.f32 %v350_v50, %v2108_v16  ;;  %v547_v50 = vld [vmem:[#allocation8 + $0x88] sm:$0xff] }
 0x4c5   :  { %632 = vmatpush.msra.mxu0 %v547_v50  ;;  %v770_v50 = vld [vmem:[#allocation5 + $0xf0] sm:$0xff] }
 0x4c6   :  { %v2160_v60 = vadd.f32 1e-05, %v351_v54  ;;  %v546_v54 = vld [vmem:[#allocation8 + $0x80] sm:$0xff] }
 0x4c7   :  { %633 = vmatpush.msra.mxu0 %v546_v54  ;;  %v768_v54 = vld [vmem:[#allocation5 + $0xe0] sm:$0xff] }
 0x4c8   :  { %1813 = vrsqrt.f32 %v2160_v60  ;;  %vm359_vm10 = vweird.f32 %v2160_v60 }
 0x4ce   :  { %v1814_v13 = vpop.eup %1813 }
 0x4cf   :  { %v354_v17 = vmul.f32 %v1814_v13, %v2160_v60  ;;  %vm360_vm9 = vweird.f32 %v1814_v13  ;;  %v579_v60 = vld [vmem:[#allocation8 + $0x188] sm:$0xff] }
 0x4d0   :  { %vm361_vm11 = vmor %vm359_vm10, %vm360_vm9  ;;  %672 = vmatpush.msra.mxu2 %v579_v60 }
 0x4d1   :  { %v355_v22 = vmul.f32 %v1814_v13, %v354_v17  ;;  %v1786_v17 = vld [vmem:[%s2402_s17] ss:$0 sm:$0xff] }
 0x4d2   :  { %673 = vmatpush.msra.mxu2 %v578_v62 }
 0x4d3   :  { %v356_v27 = vmul.f32 0.5, %v355_v22 }
 0x4d5   :  { %v357_v32 = vsub.f32 1.5, %v356_v27 }
 0x4d7   :  { %v358_v35 = vmul.f32 %v1814_v13, %v357_v32 }
 0x4d9   :  { %v362_v41 = vsel %vm361_vm11, %v1814_v13, %v358_v35  ;;  %v726_v35 = vld [vmem:[#allocation3 + $0xe0] sm:$0xff] }
 0x4da   :  { %v363_v42 = vmul.f32 %v362_v41, %v2154_v48  ;;  %v534_v48 = vld [vmem:[#allocation8 + $0x20] sm:$0xff] }
 0x4db   :  { %609 = vmatpush.msrb.mxu3 %v534_v48  ;;  %v722_v41 = vld [vmem:[#allocation3 + $0xc0] sm:$0xff]  ;;  %v771_v48 = vld [vmem:[#allocation5 + $0xf8] sm:$0xff] }
 0x4dc   :  { %v367_v44 = vmul.f32 %v1784_v40, %v363_v42  ;;  %v723_v40 = vld [vmem:[#allocation3 + $0xc8] sm:$0xff]  ;;  %v721_v42 = vld [vmem:[#allocation3 + $0xb8] sm:$0xff] }
 0x4dd   :  { %610 = vmatpush.msrb.mxu3 %v533_v53 }
 0x4de   :  { %v371_v45 = vadd.f32 %v1785_v43, %v367_v44  ;;  %v720_v43 = vld [vmem:[#allocation3 + $0xb0] sm:$0xff]  ;;  %v719_v44 = vld [vmem:[#allocation3 + $0xa8] sm:$0xff] }
 0x4df   :  { %611 = vmatpush.msrb.mxu3 %v532_v57  ;;  %v766_v57 = vld [vmem:[#allocation5 + $0xd0] sm:$0xff] }
 0x4e0   :  { %462 = vmatmul.f32.vlgmr.msra.gmra.mxu3 %v371_v45  ;;  %482 = vmatmul.f32.vlgmr.msrb.gmra.mxu0 %v371_v45 }
 0x4e1   :  { %502 = vmatmul.f32.vlgmr.msrb.gmra.mxu1 %v371_v45  ;;  %522 = vmatmul.f32.vlgmr.msrb.gmra.mxu2 %v371_v45  ;;  %v718_v45 = vld [vmem:[#allocation3 + $0xa0] sm:$0xff] }
 0x4e2   :  { %612 = vmatpush.msrb.mxu3 %v531_v59  ;;  %777 = vmatpush.msrb.mxu0 %v771_v48  ;;  %v764_v59 = vld [vmem:[#allocation5 + $0xc0] sm:$0xff]  ;;  %v880_v48 = vld [vmem:[#allocation7 + $0x378] sm:$0xff] }
 0x4e4   :  { %613 = vmatpush.msrb.mxu3 %v530_v61  ;;  %778 = vmatpush.msrb.mxu0 %v770_v50  ;;  %v763_v61 = vld [vmem:[#allocation5 + $0xb8] sm:$0xff]  ;;  %v873_v50 = vld [vmem:[#allocation7 + $0x340] sm:$0xff] }
 0x4e6   :  { %735 = vmatpush.msra.mxu3 %v729_v28  ;;  %779 = vmatpush.msrb.mxu0 %v769_v51  ;;  %v895_v28 = vld [vmem:[#allocation7 + $0x3f0] sm:$0xff]  ;;  %v874_v51 = vld [vmem:[#allocation7 + $0x348] sm:$0xff] }
 0x4e8   :  { %736 = vmatpush.msra.mxu3 %v728_v29  ;;  %780 = vmatpush.msrb.mxu0 %v768_v54  ;;  %v896_v29 = vld [vmem:[#allocation7 + $0x3f8] sm:$0xff]  ;;  %v869_v54 = vld [vmem:[#allocation7 + $0x320] sm:$0xff] }
 0x4ea   :  { %737 = vmatpush.msra.mxu3 %v727_v34  ;;  %781 = vmatpush.msrb.mxu0 %v767_v56  ;;  %v871_v56 = vld [vmem:[#allocation7 + $0x330] sm:$0xff] }
 0x4ec   :  { %738 = vmatpush.msra.mxu3 %v726_v35  ;;  %782 = vmatpush.msrb.mxu0 %v766_v57  ;;  %v872_v57 = vld [vmem:[#allocation7 + $0x338] sm:$0xff] }
 0x4ee   :  { %739 = vmatpush.msra.mxu3 %v725_v37  ;;  %783 = vmatpush.msrb.mxu0 %v765_v58  ;;  %v865_v58 = vld [vmem:[#allocation7 + $0x300] sm:$0xff] }
 0x4f0   :  { %740 = vmatpush.msra.mxu3 %v724_v38  ;;  %784 = vmatpush.msrb.mxu0 %v764_v59  ;;  %v885_v38 = vld [vmem:[#allocation7 + $0x3a0] sm:$0xff]  ;;  %v866_v59 = vld [vmem:[#allocation7 + $0x308] sm:$0xff] }
 0x4f2   :  { %741 = vmatpush.msra.mxu3 %v723_v40  ;;  %785 = vmatpush.msrb.mxu0 %v763_v61  ;;  %v886_v40 = vld [vmem:[#allocation7 + $0x3a8] sm:$0xff]  ;;  %v868_v61 = vld [vmem:[#allocation7 + $0x318] sm:$0xff] }
 0x4f4   :  { %742 = vmatpush.msra.mxu3 %v722_v41  ;;  %786 = vmatpush.msrb.mxu0 %v762_v63  ;;  %v887_v41 = vld [vmem:[#allocation7 + $0x3b0] sm:$0xff]  ;;  %v862_v63 = vld [vmem:[#allocation7 + $0x2e8] sm:$0xff] }
 0x4f6   :  { %743 = vmatpush.msra.mxu3 %v721_v42  ;;  %v888_v42 = vld [vmem:[#allocation7 + $0x3b8] sm:$0xff] }
 0x4f8   :  { %744 = vmatpush.msra.mxu3 %v720_v43  ;;  %v881_v43 = vld [vmem:[#allocation7 + $0x380] sm:$0xff] }
 0x4fa   :  { %745 = vmatpush.msra.mxu3 %v719_v44  ;;  %v882_v44 = vld [vmem:[#allocation7 + $0x388] sm:$0xff] }
 0x4fc   :  { %746 = vmatpush.msra.mxu3 %v718_v45  ;;  %v883_v45 = vld [vmem:[#allocation7 + $0x390] sm:$0xff] }
 0x4fe   :  { %747 = vmatpush.msra.mxu3 %v717_v46  ;;  %v884_v46 = vld [vmem:[#allocation7 + $0x398] sm:$0xff] }
 0x500   :  { %748 = vmatpush.msra.mxu3 %v716_v39  ;;  %v877_v39 = vld [vmem:[#allocation7 + $0x360] sm:$0xff] }
 0x502   :  { %749 = vmatpush.msra.mxu3 %v715_v47  ;;  %v878_v47 = vld [vmem:[#allocation7 + $0x368] sm:$0xff] }
 0x504   :  { %750 = vmatpush.msra.mxu3 %v714_v49  ;;  %v879_v49 = vld [vmem:[#allocation7 + $0x370] sm:$0xff] }
 0x55d   :  { %v483_v2 = vpop.f32.mrf.mxu0 }
 0x55e   :  { %v484_v3 = vadd.f32 %v483_v2, %v439_v0  ;;  %v503_v4 = vpop.f32.mrf.mxu1 }
 0x55f   :  { %v504_v5 = vadd.f32 %v503_v4, %v440_v1  ;;  %v761_v1 = vld [vmem:[#allocation5 + $0xa8] sm:$0xff] }
 0x560   :  { %v527_v6 = vmax.f32 %v484_v3, 0.0  ;;  %v760_v3 = vld [vmem:[#allocation5 + $0xa0] sm:$0xff]  ;;  %787 = vmatpush.msrb.mxu0 %v761_v1  ;;  %v864_v1 = vld [vmem:[#allocation7 + $0x2f8] sm:$0xff] }
 0x561   :  { %v528_v8 = vmax.f32 %v504_v5, 0.0  ;;  %v759_v5 = vld [vmem:[#allocation5 + $0x98] sm:$0xff] }
 0x562   :  { %634 = vmatmul.f32.vlgmr.msra.gmra.mxu0 %v527_v6 }
 0x563   :  { %654 = vmatmul.f32.vlgmr.msra.gmra.mxu1 %v528_v8  ;;  %v463_v10 = vpop.f32.mrf.mxu3  ;;  %788 = vmatpush.msrb.mxu0 %v760_v3  ;;  %v758_v8 = vld [vmem:[#allocation5 + $0x90] sm:$0xff]  ;;  %v858_v3 = vld [vmem:[#allocation7 + $0x2c8] sm:$0xff] }
 0x564   :  { %v464_v11 = vadd.f32 %v463_v10, %v438_v7  ;;  %v523_v12 = vpop.f32.mrf.mxu2  ;;  %v1787_v7 = vld [vmem:[%s2436_s10 + $0x1] ss:$0 sm:$0xff] }
 0x565   :  { %v524_v13 = vadd.f32 %v523_v12, %v441_v9  ;;  %789 = vmatpush.msrb.mxu0 %v759_v5  ;;  %v860_v5 = vld [vmem:[#allocation7 + $0x2d8] sm:$0xff] }
 0x566   :  { %v526_v14 = vmax.f32 %v464_v11, 0.0  ;;  %v1788_v11 = vld [vmem:[%s2437_s7 + $0x1] ss:$0 sm:$0xff] }
 0x567   :  { %v529_v15 = vmax.f32 %v524_v13, 0.0  ;;  %790 = vmatpush.msrb.mxu0 %v758_v8  ;;  %v855_v8 = vld [vmem:[#allocation7 + $0x2b0] sm:$0xff] }
 0x568   :  { %614 = vmatmul.f32.vlgmr.msrb.gmra.mxu3 %v526_v14  ;;  %v757_v14 = vld [vmem:[#allocation5 + $0x88] sm:$0xff] }
 0x569   :  { %674 = vmatmul.f32.vlgmr.msra.gmra.mxu2 %v529_v15  ;;  %791 = vmatpush.msrb.mxu0 %v757_v14  ;;  %v756_v15 = vld [vmem:[#allocation5 + $0x80] sm:$0xff] }
 0x56a   :  { %948 = vmatpush.msrb.mxu3 %v895_v28  ;;  %v845_v14 = vld [vmem:[#allocation7 + $0x260] sm:$0xff]  ;;  %v840_v28 = vld [vmem:[#allocation7 + $0x238] sm:$0xff] }
 0x56b   :  { %792 = vmatpush.msrb.mxu0 %v756_v15  ;;  %v846_v15 = vld [vmem:[#allocation7 + $0x268] sm:$0xff] }
 0x56d   :  { %968 = vmatpush.msra.mxu0 %v896_v29  ;;  %v833_v29 = vld [vmem:[#allocation7 + $0x200] sm:$0xff] }
 0x5df   :  { %v635_v20 = vpop.f32.mrf.mxu0 }
 0x5e0   :  { %v655_v22 = vpop.f32.mrf.mxu1 }
 0x5eb   :  { %v615_v18 = vpop.f32.mrf.mxu3 }
 0x5ec   :  { %v616_v19 = vadd.f32 %v1786_v17, %v615_v18  ;;  %v675_v24 = vpop.f32.mrf.mxu2  ;;  %v1789_v17 = vld [vmem:[%s2438_s29 + $0x1] ss:$0 sm:$0xff] }
 0x5ee   :  { %v636_v21 = vadd.f32 %v635_v20, %v616_v19  ;;  %v1790_v20 = vld [vmem:[%s2396_s11 + $0x1] ss:$0 sm:$0xff] }
 0x5f0   :  { %v656_v23 = vadd.f32 %v655_v22, %v636_v21 }
 0x5f2   :  { %v676_v25 = vadd.f32 %v675_v24, %v656_v23 }
 0x5f4   :  { %v2179_v26 = vadd.f32 %v676_v25, %v2148_v36  ;;  %v893_v25 = vld [vmem:[#allocation7 + $0x3e0] sm:$0xff] }
 0x5f5   :  { %908 = vmatpush.msrb.mxu1 %v893_v25  ;;  %v838_v25 = vld [vmem:[#allocation7 + $0x228] sm:$0xff] }
 0x5f6   :  { %v683_v27 = vsel %vm183_vm1, %v2179_v26, 0.0 }
 0x5f7   :  { %684 = vadd.xlane.f32.xlu0 %v683_v27  ;;  %v894_v27 = vld [vmem:[#allocation7 + $0x3e8] sm:$0xff] }
 0x5f8   :  { %928 = vmatpush.msrb.mxu2 %v894_v27  ;;  %v839_v27 = vld [vmem:[#allocation7 + $0x230] sm:$0xff] }
 0x66a   :  { %v685_v30 = vpop.xlane.xlu0 %684 }
 0x66b   :  { %v686_v31 = vmul.f32 %v685_v30, %v2108_v16  ;;  %v889_v30 = vld [vmem:[#allocation7 + $0x3c0] sm:$0xff] }
 0x66c   :  { %909 = vmatpush.msrb.mxu1 %v889_v30  ;;  %v834_v30 = vld [vmem:[#allocation7 + $0x208] sm:$0xff] }
 0x66d   :  { %v2185_v32 = vsub.f32 %v2179_v26, %v686_v31  ;;  %v890_v31 = vld [vmem:[#allocation7 + $0x3c8] sm:$0xff] }
 0x66e   :  { %929 = vmatpush.msrb.mxu2 %v890_v31  ;;  %910 = vmatpush.msrb.mxu1 %v885_v38  ;;  %v835_v31 = vld [vmem:[#allocation7 + $0x210] sm:$0xff] }
 0x66f   :  { %v688_v33 = vmul.f32 %v2185_v32, %v2185_v32 }
 0x670   :  { %930 = vmatpush.msrb.mxu2 %v886_v40  ;;  %911 = vmatpush.msrb.mxu1 %v881_v43  ;;  %v1054_v40 = vld [vmem:[#allocation8 + $0x3e8] sm:$0xff] }
 0x671   :  { %v689_v36 = vsel %vm183_vm1, %v688_v33, 0.0  ;;  %v892_v33 = vld [vmem:[#allocation7 + $0x3d8] sm:$0xff] }
 0x672   :  { %690 = vadd.xlane.f32.xlu1 %v689_v36  ;;  %969 = vmatpush.msra.mxu0 %v892_v33  ;;  %v1008_v33 = vld [vmem:[#allocation8 + $0x278] sm:$0xff] }
 0x673   :  { %931 = vmatpush.msrb.mxu2 %v882_v44  ;;  %912 = vmatpush.msrb.mxu1 %v877_v39  ;;  %v1023_v44 = vld [vmem:[#allocation8 + $0x2f0] sm:$0xff] }
 0x674   :  { %970 = vmatpush.msra.mxu0 %v888_v42  ;;  %v1040_v42 = vld [vmem:[#allocation8 + $0x378] sm:$0xff]  ;;  %v1039_v39 = vld [vmem:[#allocation8 + $0x370] sm:$0xff] }
 0x675   :  { %932 = vmatpush.msrb.mxu2 %v878_v47  ;;  %913 = vmatpush.msrb.mxu1 %v873_v50  ;;  %v1004_v50 = vld [vmem:[#allocation8 + $0x258] sm:$0xff] }
 0x676   :  { %971 = vmatpush.msra.mxu0 %v884_v46  ;;  %v1053_v46 = vld [vmem:[#allocation8 + $0x3e0] sm:$0xff] }
 0x677   :  { %933 = vmatpush.msrb.mxu2 %v874_v51  ;;  %914 = vmatpush.msrb.mxu1 %v869_v54  ;;  %v1052_v51 = vld [vmem:[#allocation8 + $0x3d8] sm:$0xff]  ;;  %v1003_v54 = vld [vmem:[#allocation8 + $0x250] sm:$0xff] }
 0x678   :  { %972 = vmatpush.msra.mxu0 %v880_v48  ;;  %v1038_v48 = vld [vmem:[#allocation8 + $0x368] sm:$0xff] }
 0x679   :  { %915 = vmatpush.msrb.mxu1 %v865_v58  ;;  %v1002_v58 = vld [vmem:[#allocation8 + $0x248] sm:$0xff] }
 0x6e5   :  { %v691_v52 = vpop.xlane.xlu1 %690 }
 0x6e6   :  { %v692_v53 = vmul.f32 %v691_v52, %v2108_v16  ;;  %v875_v52 = vld [vmem:[#allocation7 + $0x350] sm:$0xff] }
 0x6e8   :  { %v693_v55 = vadd.f32 1e-05, %v692_v53  ;;  %v876_v53 = vld [vmem:[#allocation7 + $0x358] sm:$0xff] }
 0x6e9   :  { %973 = vmatpush.msra.mxu0 %v876_v53  ;;  %v1037_v53 = vld [vmem:[#allocation8 + $0x360] sm:$0xff] }
 0x6ea   :  { %1815 = vrsqrt.f32 %v693_v55  ;;  %vm700_vm13 = vweird.f32 %v693_v55 }
 0x6eb   :  { %974 = vmatpush.msra.mxu0 %v872_v57  ;;  %v1036_v57 = vld [vmem:[#allocation8 + $0x358] sm:$0xff] }
 0x6ed   :  { %975 = vmatpush.msra.mxu0 %v868_v61  ;;  %v1035_v61 = vld [vmem:[#allocation8 + $0x350] sm:$0xff] }
 0x6ef   :  { %976 = vmatpush.msra.mxu0 %v864_v1  ;;  %v1018_v1 = vld [vmem:[#allocation8 + $0x2c8] sm:$0xff] }
 0x6f0   :  { %v1816_v60 = vpop.eup %1815 }
 0x6f1   :  { %v695_v62 = vmul.f32 %v1816_v60, %v693_v55  ;;  %vm701_vm12 = vweird.f32 %v1816_v60  ;;  %v870_v55 = vld [vmem:[#allocation7 + $0x328] sm:$0xff]  ;;  %977 = vmatpush.msra.mxu0 %v860_v5  ;;  %v1048_v5 = vld [vmem:[#allocation8 + $0x3b8] sm:$0xff] }
 0x6f2   :  { %vm702_vm14 = vmor %vm700_vm13, %vm701_vm12  ;;  %934 = vmatpush.msrb.mxu2 %v870_v55  ;;  %v1051_v55 = vld [vmem:[#allocation8 + $0x3d0] sm:$0xff]  ;;  %vm1700_vm13 = vcmask 523264  }
 0x6f3   :  { %v696_v0 = vmul.f32 %v1816_v60, %v695_v62  ;;  %v861_v62 = vld [vmem:[#allocation7 + $0x2e0] sm:$0xff] }
 0x6f4   :  { %935 = vmatpush.msrb.mxu2 %v866_v59  ;;  %916 = vmatpush.msrb.mxu1 %v861_v62  ;;  %v1050_v59 = vld [vmem:[#allocation8 + $0x3c8] sm:$0xff]  ;;  %v1001_v62 = vld [vmem:[#allocation8 + $0x240] sm:$0xff] }
 0x6f5   :  { %v697_v2 = vmul.f32 0.5, %v696_v0  ;;  %v863_v0 = vld [vmem:[#allocation7 + $0x2f0] sm:$0xff] }
 0x6f6   :  { %936 = vmatpush.msrb.mxu2 %v862_v63  ;;  %v1049_v63 = vld [vmem:[#allocation8 + $0x3c0] sm:$0xff] }
 0x6f7   :  { %v698_v4 = vsub.f32 1.5, %v697_v2  ;;  %v857_v2 = vld [vmem:[#allocation7 + $0x2c0] sm:$0xff] }
 0x6f8   :  { %917 = vmatpush.msrb.mxu1 %v857_v2  ;;  %937 = vmatpush.msrb.mxu2 %v858_v3  ;;  %v1034_v2 = vld [vmem:[#allocation8 + $0x348] sm:$0xff] }
 0x6f9   :  { %v699_v6 = vmul.f32 %v1816_v60, %v698_v4  ;;  %v859_v4 = vld [vmem:[#allocation7 + $0x2d0] sm:$0xff] }
 0x6fb   :  { %v703_v9 = vsel %vm702_vm14, %v1816_v60, %v699_v6  ;;  %v867_v60 = vld [vmem:[#allocation7 + $0x310] sm:$0xff]  ;;  %v853_v6 = vld [vmem:[#allocation7 + $0x2a0] sm:$0xff]  ;;  %vm1730_vm14 = vcmask 254976  }
 0x6fc   :  { %v704_v10 = vmul.f32 %v703_v9, %v2185_v32  ;;  %v891_v32 = vld [vmem:[#allocation7 + $0x3d0] sm:$0xff]  ;;  %918 = vmatpush.msrb.mxu1 %v853_v6  ;;  %v856_v9 = vld [vmem:[#allocation7 + $0x2b8] sm:$0xff]  ;;  %v1017_v6 = vld [vmem:[#allocation8 + $0x2c0] sm:$0xff] }
 0x6fd   :  { %949 = vmatpush.msrb.mxu3 %v891_v32  ;;  %978 = vmatpush.msra.mxu0 %v856_v9  ;;  %v836_v32 = vld [vmem:[#allocation7 + $0x218] sm:$0xff]  ;;  %v999_v9 = vld [vmem:[#allocation8 + $0x230] sm:$0xff] }
 0x6fe   :  { %v708_v12 = vmul.f32 %v1787_v7, %v704_v10  ;;  %v854_v7 = vld [vmem:[#allocation7 + $0x2a8] sm:$0xff]  ;;  %v849_v10 = vld [vmem:[#allocation7 + $0x280] sm:$0xff] }
 0x6ff   :  { %950 = vmatpush.msrb.mxu3 %v887_v41  ;;  %938 = vmatpush.msrb.mxu2 %v854_v7  ;;  %v1024_v41 = vld [vmem:[#allocation8 + $0x2f8] sm:$0xff]  ;;  %v1033_v7 = vld [vmem:[#allocation8 + $0x340] sm:$0xff] }
 0x700   :  { %v712_v13 = vadd.f32 %v1788_v11, %v708_v12  ;;  %v850_v11 = vld [vmem:[#allocation7 + $0x288] sm:$0xff]  ;;  %v851_v12 = vld [vmem:[#allocation7 + $0x290] sm:$0xff]  ;;  %919 = vmatpush.msrb.mxu1 %v849_v10 }
 0x701   :  { %951 = vmatpush.msrb.mxu3 %v883_v45  ;;  %939 = vmatpush.msrb.mxu2 %v850_v11  ;;  %v1005_v45 = vld [vmem:[#allocation8 + $0x260] sm:$0xff]  ;;  %v1047_v10 = vld [vmem:[#allocation8 + $0x3b0] sm:$0xff]  ;;  %v1016_v11 = vld [vmem:[#allocation8 + $0x2b8] sm:$0xff] }
 0x702   :  { %751 = vmatmul.f32.vlgmr.msra.gmra.mxu3 %v712_v13  ;;  %v852_v13 = vld [vmem:[#allocation7 + $0x298] sm:$0xff]  ;;  %920 = vmatpush.msrb.mxu1 %v845_v14  ;;  %v998_v14 = vld [vmem:[#allocation8 + $0x228] sm:$0xff] }
 0x703   :  { %952 = vmatpush.msrb.mxu3 %v879_v49  ;;  %979 = vmatpush.msra.mxu0 %v852_v13  ;;  %v1022_v49 = vld [vmem:[#allocation8 + $0x2e8] sm:$0xff] }
 0x704   :  { %940 = vmatpush.msrb.mxu2 %v846_v15  ;;  %v1046_v15 = vld [vmem:[#allocation8 + $0x3a8] sm:$0xff] }
 0x705   :  { %953 = vmatpush.msrb.mxu3 %v875_v52  ;;  %v1021_v52 = vld [vmem:[#allocation8 + $0x2e0] sm:$0xff] }
 0x707   :  { %954 = vmatpush.msrb.mxu3 %v871_v56  ;;  %v1020_v56 = vld [vmem:[#allocation8 + $0x2d8] sm:$0xff] }
 0x709   :  { %955 = vmatpush.msrb.mxu3 %v867_v60  ;;  %v1019_v60 = vld [vmem:[#allocation8 + $0x2d0] sm:$0xff] }
 0x70b   :  { %956 = vmatpush.msrb.mxu3 %v863_v0 }
 0x70d   :  { %957 = vmatpush.msrb.mxu3 %v859_v4  ;;  %v1000_v4 = vld [vmem:[#allocation8 + $0x238] sm:$0xff] }
 0x70f   :  { %958 = vmatpush.msrb.mxu3 %v855_v8 }
 0x711   :  { %959 = vmatpush.msrb.mxu3 %v851_v12  ;;  %v1032_v12 = vld [vmem:[#allocation8 + $0x338] sm:$0xff] }
 0x785   :  { %v752_v18 = vpop.f32.mrf.mxu3 }
 0x786   :  { %v753_v19 = vadd.f32 %v1789_v17, %v752_v18  ;;  %v847_v17 = vld [vmem:[#allocation7 + $0x270] sm:$0xff]  ;;  %v848_v18 = vld [vmem:[#allocation7 + $0x278] sm:$0xff] }
 0x787   :  { %960 = vmatpush.msrb.mxu3 %v847_v17  ;;  %980 = vmatpush.msra.mxu0 %v848_v18  ;;  %v1015_v17 = vld [vmem:[#allocation8 + $0x2b0] sm:$0xff] }
 0x788   :  { %793 = vmatmul.f32.vlgmr.msrb.gmra.mxu0 %v753_v19  ;;  %v841_v19 = vld [vmem:[#allocation7 + $0x240] sm:$0xff]  ;;  %v1031_v18 = vld [vmem:[#allocation8 + $0x330] sm:$0xff] }
 0x789   :  { %921 = vmatpush.msrb.mxu1 %v841_v19 }
 0x805   :  { %v794_v21 = vpop.f32.mrf.mxu0 }
 0x806   :  { %v795_v22 = vadd.f32 %v1790_v20, %v794_v21  ;;  %v842_v20 = vld [vmem:[#allocation7 + $0x248] sm:$0xff]  ;;  %v843_v21 = vld [vmem:[#allocation7 + $0x250] sm:$0xff] }
 0x807   :  { %941 = vmatpush.msrb.mxu2 %v842_v20  ;;  %961 = vmatpush.msrb.mxu3 %v843_v21  ;;  %v997_v20 = vld [vmem:[#allocation8 + $0x220] sm:$0xff] }
 0x808   :  { %v2205_v23 = vadd.f32 %v795_v22, %v2179_v26  ;;  %v844_v22 = vld [vmem:[#allocation7 + $0x258] sm:$0xff]  ;;  %v1045_v21 = vld [vmem:[#allocation8 + $0x3a0] sm:$0xff] }
 0x809   :  { %981 = vmatpush.msra.mxu0 %v844_v22  ;;  %942 = vmatpush.msrb.mxu2 %v838_v25  ;;  %v1044_v25 = vld [vmem:[#allocation8 + $0x398] sm:$0xff] }
 0x80a   :  { %v802_v24 = vsel %vm183_vm1, %v2205_v23, 0.0  ;;  %962 = vmatpush.msrb.mxu3 %v839_v27  ;;  %v1791_v27 = vld [vmem:[%s2397_s12 + $0x1] ss:$0 sm:$0xff] }
 0x80b   :  { %803 = vadd.xlane.f32.xlu2 %v802_v24  ;;  %v837_v24 = vld [vmem:[#allocation7 + $0x220] sm:$0xff]  ;;  %982 = vmatpush.msra.mxu0 %v840_v28 }
 0x80c   :  { %922 = vmatpush.msrb.mxu1 %v837_v24  ;;  %943 = vmatpush.msrb.mxu2 %v834_v30  ;;  %v996_v24 = vld [vmem:[#allocation8 + $0x218] sm:$0xff]  ;;  %v1792_v30 = vld [vmem:[%s2398_s13 + $0x1] ss:$0 sm:$0xff] }
 0x80d   :  { %963 = vmatpush.msrb.mxu3 %v835_v31  ;;  %983 = vmatpush.msra.mxu0 %v836_v32 }
 0x80e   :  { %923 = vmatpush.msrb.mxu1 %v833_v29  ;;  %1082 = vmatpush.msra.mxu2 %v1024_v41  ;;  %v993_v41 = vld [vmem:[#allocation8 + $0x200] sm:$0xff] }
 0x80f   :  { %1102 = vmatpush.msra.mxu3 %v1040_v42  ;;  %v1012_v42 = vld [vmem:[#allocation8 + $0x298] sm:$0xff] }
 0x810   :  { %1062 = vmatpush.msra.mxu1 %v1008_v33  ;;  %1083 = vmatpush.msra.mxu2 %v1023_v44  ;;  %v995_v33 = vld [vmem:[#allocation8 + $0x210] sm:$0xff]  ;;  %v1041_v44 = vld [vmem:[#allocation8 + $0x380] sm:$0xff] }
 0x811   :  { %1103 = vmatpush.msra.mxu3 %v1039_v39  ;;  %v1010_v39 = vld [vmem:[#allocation8 + $0x288] sm:$0xff] }
 0x812   :  { %1084 = vmatpush.msra.mxu2 %v1022_v49  ;;  %v1009_v49 = vld [vmem:[#allocation8 + $0x280] sm:$0xff] }
 0x813   :  { %1104 = vmatpush.msra.mxu3 %v1038_v48  ;;  %v1025_v48 = vld [vmem:[#allocation8 + $0x300] sm:$0xff] }
 0x814   :  { %1085 = vmatpush.msra.mxu2 %v1021_v52 }
 0x815   :  { %1105 = vmatpush.msra.mxu3 %v1037_v53 }
 0x816   :  { %1086 = vmatpush.msra.mxu2 %v1020_v56 }
 0x817   :  { %1106 = vmatpush.msra.mxu3 %v1036_v57 }
 0x818   :  { %1087 = vmatpush.msra.mxu2 %v1019_v60 }
 0x819   :  { %1107 = vmatpush.msra.mxu3 %v1035_v61 }
 0x81a   :  { %1088 = vmatpush.msra.mxu2 %v1018_v1 }
 0x81b   :  { %1108 = vmatpush.msra.mxu3 %v1034_v2 }
 0x81c   :  { %1089 = vmatpush.msra.mxu2 %v1017_v6 }
 0x81d   :  { %1109 = vmatpush.msra.mxu3 %v1033_v7 }
 0x81e   :  { %1090 = vmatpush.msra.mxu2 %v1016_v11 }
 0x81f   :  { %1110 = vmatpush.msra.mxu3 %v1032_v12 }
 0x820   :  { %1091 = vmatpush.msra.mxu2 %v1015_v17 }
 0x821   :  { %1111 = vmatpush.msra.mxu3 %v1031_v18 }
 0x87e   :  { %v804_v26 = vpop.xlane.xlu2 %803 }
 0x87f   :  { %v805_v36 = vmul.f32 %v804_v26, %v2108_v16  ;;  %v1056_v26 = vld [vmem:[#allocation8 + $0x3f8] sm:$0xff] }
 0x880   :  { %1122 = vmatpush.msrb.mxu0 %v1056_v26  ;;  %v1014_v26 = vld [vmem:[#allocation8 + $0x2a8] sm:$0xff] }
 0x881   :  { %v2211_v34 = vsub.f32 %v2205_v23, %v805_v36  ;;  %v1007_v36 = vld [vmem:[#allocation8 + $0x270] sm:$0xff]  ;;  %1092 = vmatpush.msra.mxu2 %v1014_v26 }
 0x882   :  { %1063 = vmatpush.msra.mxu1 %v1007_v36  ;;  %v1030_v36 = vld [vmem:[#allocation8 + $0x328] sm:$0xff]  ;;  %v1180_v26 = vld [vmem:[#allocation3 + $0x110] sm:$0xff] }
 0x883   :  { %v807_v35 = vmul.f32 %v2211_v34, %v2211_v34  ;;  %1112 = vmatpush.msra.mxu3 %v1030_v36  ;;  %v1179_v36 = vld [vmem:[#allocation3 + $0x108] sm:$0xff] }
 0x885   :  { %v808_v37 = vsel %vm183_vm1, %v807_v35, 0.0  ;;  %v1055_v35 = vld [vmem:[#allocation8 + $0x3f0] sm:$0xff] }
 0x886   :  { %809 = vadd.xlane.f32.xlu0 %v808_v37  ;;  %v1006_v37 = vld [vmem:[#allocation8 + $0x268] sm:$0xff]  ;;  %1123 = vmatpush.msrb.mxu0 %v1055_v35  ;;  %v1043_v35 = vld [vmem:[#allocation8 + $0x390] sm:$0xff] }
 0x887   :  { %1064 = vmatpush.msra.mxu1 %v1006_v37  ;;  %v1013_v37 = vld [vmem:[#allocation8 + $0x2a0] sm:$0xff] }
 0x888   :  { %1124 = vmatpush.msrb.mxu0 %v1054_v40  ;;  %1093 = vmatpush.msra.mxu2 %v1013_v37  ;;  %v1042_v40 = vld [vmem:[#allocation8 + $0x388] sm:$0xff]  ;;  %v1234_v37 = vld [vmem:[#allocation5 + $0x170] sm:$0xff] }
 0x889   :  { %1065 = vmatpush.msra.mxu1 %v1005_v45  ;;  %v1011_v45 = vld [vmem:[#allocation8 + $0x290] sm:$0xff] }
 0x88a   :  { %1125 = vmatpush.msrb.mxu0 %v1053_v46  ;;  %1094 = vmatpush.msra.mxu2 %v1012_v42  ;;  %v1027_v46 = vld [vmem:[#allocation8 + $0x310] sm:$0xff]  ;;  %v1232_v42 = vld [vmem:[#allocation5 + $0x160] sm:$0xff] }
 0x88b   :  { %1066 = vmatpush.msra.mxu1 %v1004_v50  ;;  %v1755_v50 = vld [vmem:[%s2400_s15 + $0x4] sm:$0xf] }
 0x88c   :  { %1126 = vmatpush.msrb.mxu0 %v1052_v51  ;;  %1095 = vmatpush.msra.mxu2 %v1011_v45  ;;  %v900_v51 = vperm.slane %v1755_v50, 0  ;;  %v903_v52 = vperm.slane %v1755_v50, 3  ;;  %v902_v60 = vperm.slane %v1755_v50, 2  ;;  %v1230_v45 = vld [vmem:[#allocation5 + $0x150] sm:$0xff] }
 0x88d   :  { %1067 = vmatpush.msra.mxu1 %v1003_v54 }
 0x88e   :  { %1127 = vmatpush.msrb.mxu0 %v1051_v55  ;;  %1096 = vmatpush.msra.mxu2 %v1010_v39  ;;  %v1228_v39 = vld [vmem:[#allocation5 + $0x140] sm:$0xff] }
 0x88f   :  { %1068 = vmatpush.msra.mxu1 %v1002_v58  ;;  %v901_v58 = vperm.slane %v1755_v50, 1  ;;  %v1226_v50 = vld [vmem:[#allocation5 + $0x130] sm:$0xff] }
 0x890   :  { %1128 = vmatpush.msrb.mxu0 %v1050_v59  ;;  %1097 = vmatpush.msra.mxu2 %v1009_v49  ;;  %v1227_v49 = vld [vmem:[#allocation5 + $0x138] sm:$0xff] }
 0x891   :  { %1069 = vmatpush.msra.mxu1 %v1001_v62 }
 0x892   :  { %1129 = vmatpush.msrb.mxu0 %v1049_v63 }
 0x893   :  { %1070 = vmatpush.msra.mxu1 %v1000_v4 }
 0x894   :  { %1130 = vmatpush.msrb.mxu0 %v1048_v5 }
 0x895   :  { %1071 = vmatpush.msra.mxu1 %v999_v9 }
 0x896   :  { %1131 = vmatpush.msrb.mxu0 %v1047_v10 }
 0x897   :  { %1072 = vmatpush.msra.mxu1 %v998_v14  ;;  %v1193_v14 = vld [vmem:[#allocation3 + $0x178] sm:$0xff] }
 0x898   :  { %1132 = vmatpush.msrb.mxu0 %v1046_v15  ;;  %v1192_v15 = vld [vmem:[#allocation3 + $0x170] sm:$0xff] }
 0x899   :  { %1073 = vmatpush.msra.mxu1 %v997_v20 }
 0x89a   :  { %1133 = vmatpush.msrb.mxu0 %v1045_v21  ;;  %v1191_v21 = vld [vmem:[#allocation3 + $0x168] sm:$0xff] }
 0x89b   :  { %1074 = vmatpush.msra.mxu1 %v996_v24  ;;  %v1189_v24 = vld [vmem:[#allocation3 + $0x158] sm:$0xff] }
 0x89c   :  { %1134 = vmatpush.msrb.mxu0 %v1044_v25  ;;  %v1188_v25 = vld [vmem:[#allocation3 + $0x150] sm:$0xff] }
 0x89d   :  { %1075 = vmatpush.msra.mxu1 %v995_v33  ;;  %v1181_v33 = vld [vmem:[#allocation3 + $0x118] sm:$0xff] }
 0x89e   :  { %1135 = vmatpush.msrb.mxu0 %v1043_v35  ;;  %v1178_v35 = vld [vmem:[#allocation3 + $0x100] sm:$0xff] }
 0x8a0   :  { %1136 = vmatpush.msrb.mxu0 %v1042_v40 }
 0x8a2   :  { %1137 = vmatpush.msrb.mxu0 %v1041_v44  ;;  %v1231_v44 = vld [vmem:[#allocation5 + $0x158] sm:$0xff] }
 0x8f9   :  { %v810_v38 = vpop.xlane.xlu0 %809 }
 0x8fa   :  { %v811_v43 = vmul.f32 %v810_v38, %v2108_v16  ;;  %v1029_v38 = vld [vmem:[#allocation8 + $0x320] sm:$0xff] }
 0x8fb   :  { %1113 = vmatpush.msra.mxu3 %v1029_v38  ;;  %v1233_v38 = vld [vmem:[#allocation5 + $0x168] sm:$0xff] }
 0x8fc   :  { %v2217_v47 = vadd.f32 1e-05, %v811_v43  ;;  %v1028_v43 = vld [vmem:[#allocation8 + $0x318] sm:$0xff] }
 0x8fd   :  { %1114 = vmatpush.msra.mxu3 %v1028_v43 }
 0x8fe   :  { %1817 = vrsqrt.f32 %v2217_v47  ;;  %vm819_vm0 = vweird.f32 %v2217_v47 }
 0x8ff   :  { %1115 = vmatpush.msra.mxu3 %v1027_v46  ;;  %v1229_v46 = vld [vmem:[#allocation5 + $0x148] sm:$0xff] }
 0x904   :  { %v1818_v0 = vpop.eup %1817 }
 0x905   :  { %v814_v3 = vmul.f32 %v1818_v0, %v2217_v47  ;;  %vm820_vm15 = vweird.f32 %v1818_v0  ;;  %v1026_v47 = vld [vmem:[#allocation8 + $0x308] sm:$0xff] }
 0x906   :  { %vm821_vm2 = vmor %vm819_vm0, %vm820_vm15  ;;  %1116 = vmatpush.msra.mxu3 %v1026_v47  ;;  %vm1739_vm15 = vcmask 1024  }
 0x907   :  { %v815_v8 = vmul.f32 %v1818_v0, %v814_v3  ;;  %v1793_v3 = vld [vmem:[%s2402_s17 + $0x1] ss:$0 sm:$0xff] }
 0x908   :  { %1117 = vmatpush.msra.mxu3 %v1025_v48 }
 0x909   :  { %v816_v13 = vmul.f32 0.5, %v815_v8 }
 0x90b   :  { %v817_v19 = vsub.f32 1.5, %v816_v13 }
 0x90d   :  { %v818_v22 = vmul.f32 %v1818_v0, %v817_v19 }
 0x90f   :  { %v822_v28 = vsel %vm821_vm2, %v1818_v0, %v818_v22  ;;  %v1190_v22 = vld [vmem:[#allocation3 + $0x160] sm:$0xff] }
 0x910   :  { %v823_v29 = vmul.f32 %v822_v28, %v2211_v34  ;;  %v994_v34 = vld [vmem:[#allocation8 + $0x208] sm:$0xff]  ;;  %v1186_v28 = vld [vmem:[#allocation3 + $0x140] sm:$0xff] }
 0x911   :  { %1076 = vmatpush.msra.mxu1 %v994_v34  ;;  %v1235_v34 = vld [vmem:[#allocation5 + $0x178] sm:$0xff] }
 0x912   :  { %v827_v31 = vmul.f32 %v1791_v27, %v823_v29  ;;  %v1187_v27 = vld [vmem:[#allocation3 + $0x148] sm:$0xff]  ;;  %v1185_v29 = vld [vmem:[#allocation3 + $0x138] sm:$0xff] }
 0x913   :  { %1077 = vmatpush.msra.mxu1 %v993_v41 }
 0x914   :  { %v831_v32 = vadd.f32 %v1792_v30, %v827_v31  ;;  %v1184_v30 = vld [vmem:[#allocation3 + $0x130] sm:$0xff]  ;;  %v1183_v31 = vld [vmem:[#allocation3 + $0x128] sm:$0xff] }
 0x916   :  { %924 = vmatmul.f32.vlgmr.msrb.gmra.mxu1 %v831_v32  ;;  %944 = vmatmul.f32.vlgmr.msrb.gmra.mxu2 %v831_v32 }
 0x917   :  { %964 = vmatmul.f32.vlgmr.msrb.gmra.mxu3 %v831_v32  ;;  %984 = vmatmul.f32.vlgmr.msra.gmra.mxu0 %v831_v32  ;;  %v1182_v32 = vld [vmem:[#allocation3 + $0x120] sm:$0xff] }
 0x918   :  { %1199 = vmatpush.msrb.mxu1 %v1193_v14  ;;  %1241 = vmatpush.msrb.mxu2 %v1235_v34  ;;  %v1359_v14 = vld [vmem:[#allocation7 + $0x5f0] sm:$0xff]  ;;  %v1344_v34 = vld [vmem:[#allocation7 + $0x578] sm:$0xff] }
 0x91a   :  { %1200 = vmatpush.msrb.mxu1 %v1192_v15  ;;  %1242 = vmatpush.msrb.mxu2 %v1234_v37  ;;  %v1360_v15 = vld [vmem:[#allocation7 + $0x5f8] sm:$0xff]  ;;  %v1337_v37 = vld [vmem:[#allocation7 + $0x540] sm:$0xff] }
 0x91c   :  { %1201 = vmatpush.msrb.mxu1 %v1191_v21  ;;  %1243 = vmatpush.msrb.mxu2 %v1233_v38  ;;  %v1338_v38 = vld [vmem:[#allocation7 + $0x548] sm:$0xff] }
 0x91e   :  { %1202 = vmatpush.msrb.mxu1 %v1190_v22  ;;  %1244 = vmatpush.msrb.mxu2 %v1232_v42  ;;  %v1333_v42 = vld [vmem:[#allocation7 + $0x520] sm:$0xff] }
 0x920   :  { %1203 = vmatpush.msrb.mxu1 %v1189_v24  ;;  %1245 = vmatpush.msrb.mxu2 %v1231_v44  ;;  %v1335_v44 = vld [vmem:[#allocation7 + $0x530] sm:$0xff] }
 0x922   :  { %1204 = vmatpush.msrb.mxu1 %v1188_v25  ;;  %1246 = vmatpush.msrb.mxu2 %v1230_v45  ;;  %v1349_v25 = vld [vmem:[#allocation7 + $0x5a0] sm:$0xff]  ;;  %v1336_v45 = vld [vmem:[#allocation7 + $0x538] sm:$0xff] }
 0x924   :  { %1205 = vmatpush.msrb.mxu1 %v1187_v27  ;;  %1247 = vmatpush.msrb.mxu2 %v1229_v46  ;;  %v1350_v27 = vld [vmem:[#allocation7 + $0x5a8] sm:$0xff]  ;;  %v1329_v46 = vld [vmem:[#allocation7 + $0x500] sm:$0xff] }
 0x926   :  { %1206 = vmatpush.msrb.mxu1 %v1186_v28  ;;  %1248 = vmatpush.msrb.mxu2 %v1228_v39  ;;  %v1351_v28 = vld [vmem:[#allocation7 + $0x5b0] sm:$0xff]  ;;  %v1330_v39 = vld [vmem:[#allocation7 + $0x508] sm:$0xff] }
 0x928   :  { %1207 = vmatpush.msrb.mxu1 %v1185_v29  ;;  %1249 = vmatpush.msrb.mxu2 %v1227_v49  ;;  %v1352_v29 = vld [vmem:[#allocation7 + $0x5b8] sm:$0xff] }
 0x929   :  { %v1332_v49 = vld [vmem:[#allocation7 + $0x518] sm:$0xff] }
 0x92a   :  { %1208 = vmatpush.msrb.mxu1 %v1184_v30  ;;  %1250 = vmatpush.msrb.mxu2 %v1226_v50  ;;  %v1345_v30 = vld [vmem:[#allocation7 + $0x580] sm:$0xff]  ;;  %v1326_v50 = vld [vmem:[#allocation7 + $0x4e8] sm:$0xff] }
 0x92c   :  { %1209 = vmatpush.msrb.mxu1 %v1183_v31  ;;  %v1346_v31 = vld [vmem:[#allocation7 + $0x588] sm:$0xff] }
 0x92e   :  { %1210 = vmatpush.msrb.mxu1 %v1182_v32  ;;  %v1347_v32 = vld [vmem:[#allocation7 + $0x590] sm:$0xff] }
 0x930   :  { %1211 = vmatpush.msrb.mxu1 %v1181_v33  ;;  %v1348_v33 = vld [vmem:[#allocation7 + $0x598] sm:$0xff] }
 0x932   :  { %1212 = vmatpush.msrb.mxu1 %v1180_v26  ;;  %v1341_v26 = vld [vmem:[#allocation7 + $0x560] sm:$0xff] }
 0x934   :  { %1213 = vmatpush.msrb.mxu1 %v1179_v36  ;;  %v1342_v36 = vld [vmem:[#allocation7 + $0x568] sm:$0xff] }
 0x936   :  { %1214 = vmatpush.msrb.mxu1 %v1178_v35  ;;  %v1343_v35 = vld [vmem:[#allocation7 + $0x570] sm:$0xff] }
 0x993   :  { %v925_v53 = vpop.f32.mrf.mxu1 }
 0x994   :  { %v926_v54 = vadd.f32 %v925_v53, %v900_v51  ;;  %v985_v55 = vpop.f32.mrf.mxu0 }
 0x995   :  { %v986_v56 = vadd.f32 %v985_v55, %v903_v52  ;;  %v1225_v52 = vld [vmem:[#allocation5 + $0x128] sm:$0xff] }
 0x996   :  { %v988_v57 = vmax.f32 %v926_v54, 0.0  ;;  %v1224_v54 = vld [vmem:[#allocation5 + $0x120] sm:$0xff]  ;;  %1251 = vmatpush.msrb.mxu2 %v1225_v52  ;;  %v1328_v52 = vld [vmem:[#allocation7 + $0x4f8] sm:$0xff] }
 0x997   :  { %v991_v59 = vmax.f32 %v986_v56, 0.0  ;;  %v1223_v56 = vld [vmem:[#allocation5 + $0x118] sm:$0xff] }
 0x998   :  { %1078 = vmatmul.f32.vlgmr.msra.gmra.mxu1 %v988_v57  ;;  %1252 = vmatpush.msrb.mxu2 %v1224_v54  ;;  %v1322_v54 = vld [vmem:[#allocation7 + $0x4c8] sm:$0xff] }
 0x999   :  { %1138 = vmatmul.f32.vlgmr.msrb.gmra.mxu0 %v991_v59  ;;  %v945_v61 = vpop.f32.mrf.mxu2  ;;  %v1222_v59 = vld [vmem:[#allocation5 + $0x110] sm:$0xff]  ;;  %1412 = vmatpush.msra.mxu1 %v1359_v14  ;;  %v1304_v14 = vld [vmem:[#allocation7 + $0x438] sm:$0xff] }
 0x99a   :  { %v946_v62 = vadd.f32 %v945_v61, %v901_v58  ;;  %v965_v63 = vpop.f32.mrf.mxu3  ;;  %v1794_v58 = vld [vmem:[%s2436_s10 + $0x2] ss:$0 sm:$0xff]  ;;  %1253 = vmatpush.msrb.mxu2 %v1223_v56  ;;  %v1324_v56 = vld [vmem:[#allocation7 + $0x4d8] sm:$0xff] }
 0x99b   :  { %v966_v0 = vadd.f32 %v965_v63, %v902_v60 }
 0x99c   :  { %v989_v1 = vmax.f32 %v946_v62, 0.0  ;;  %v1795_v62 = vld [vmem:[%s2437_s7 + $0x2] ss:$0 sm:$0xff]  ;;  %1254 = vmatpush.msrb.mxu2 %v1222_v59  ;;  %v1319_v59 = vld [vmem:[#allocation7 + $0x4b0] sm:$0xff] }
 0x99d   :  { %v990_v2 = vmax.f32 %v966_v0, 0.0 }
 0x99e   :  { %1098 = vmatmul.f32.vlgmr.msra.gmra.mxu2 %v989_v1  ;;  %v1221_v1 = vld [vmem:[#allocation5 + $0x108] sm:$0xff] }
 0x99f   :  { %1118 = vmatmul.f32.vlgmr.msra.gmra.mxu3 %v990_v2  ;;  %1255 = vmatpush.msrb.mxu2 %v1221_v1  ;;  %v1220_v2 = vld [vmem:[#allocation5 + $0x100] sm:$0xff] }
 0x9a0   :  { %v1309_v1 = vld [vmem:[#allocation7 + $0x460] sm:$0xff] }
 0x9a1   :  { %1256 = vmatpush.msrb.mxu2 %v1220_v2  ;;  %v1310_v2 = vld [vmem:[#allocation7 + $0x468] sm:$0xff] }
 0x9a3   :  { %1432 = vmatpush.msra.mxu2 %v1360_v15  ;;  %v1297_v15 = vld [vmem:[#allocation7 + $0x400] sm:$0xff] }
 0xa15   :  { %v1079_v4 = vpop.f32.mrf.mxu1 }
 0xa16   :  { %v1080_v5 = vadd.f32 %v1793_v3, %v1079_v4  ;;  %v1139_v10 = vpop.f32.mrf.mxu0  ;;  %v1796_v3 = vld [vmem:[%s2438_s29 + $0x2] ss:$0 sm:$0xff] }
 0xa21   :  { %v1099_v6 = vpop.f32.mrf.mxu2 }
 0xa22   :  { %v1100_v7 = vadd.f32 %v1099_v6, %v1080_v5  ;;  %v1119_v8 = vpop.f32.mrf.mxu3  ;;  %v1797_v6 = vld [vmem:[%s2396_s11 + $0x2] ss:$0 sm:$0xff] }
 0xa24   :  { %v1120_v9 = vadd.f32 %v1119_v8, %v1100_v7 }
 0xa26   :  { %v1140_v11 = vadd.f32 %v1139_v10, %v1120_v9 }
 0xa28   :  { %v2236_v12 = vadd.f32 %v1140_v11, %v2205_v23  ;;  %v1357_v11 = vld [vmem:[#allocation7 + $0x5e0] sm:$0xff] }
 0xa29   :  { %1372 = vmatpush.msrb.mxu3 %v1357_v11  ;;  %v1302_v11 = vld [vmem:[#allocation7 + $0x428] sm:$0xff] }
 0xa2a   :  { %v1147_v13 = vsel %vm183_vm1, %v2236_v12, 0.0 }
 0xa2b   :  { %1148 = vadd.xlane.f32.xlu1 %v1147_v13  ;;  %v1358_v13 = vld [vmem:[#allocation7 + $0x5e8] sm:$0xff] }
 0xa2c   :  { %1392 = vmatpush.msra.mxu0 %v1358_v13  ;;  %v1303_v13 = vld [vmem:[#allocation7 + $0x430] sm:$0xff] }
 0xa9e   :  { %v1149_v17 = vpop.xlane.xlu1 %1148 }
 0xa9f   :  { %v1150_v18 = vmul.f32 %v1149_v17, %v2108_v16  ;;  %v1353_v17 = vld [vmem:[#allocation7 + $0x5c0] sm:$0xff] }
 0xaa0   :  { %1373 = vmatpush.msrb.mxu3 %v1353_v17  ;;  %v1298_v17 = vld [vmem:[#allocation7 + $0x408] sm:$0xff] }
 0xaa1   :  { %v2242_v19 = vsub.f32 %v2236_v12, %v1150_v18  ;;  %v1354_v18 = vld [vmem:[#allocation7 + $0x5c8] sm:$0xff] }
 0xaa2   :  { %1393 = vmatpush.msra.mxu0 %v1354_v18  ;;  %1374 = vmatpush.msrb.mxu3 %v1349_v25  ;;  %v1299_v18 = vld [vmem:[#allocation7 + $0x410] sm:$0xff]  ;;  %v1486_v25 = vld [vmem:[#allocation8 + $0x4e8] sm:$0xff] }
 0xaa3   :  { %v1152_v20 = vmul.f32 %v2242_v19, %v2242_v19 }
 0xaa4   :  { %1394 = vmatpush.msra.mxu0 %v1350_v27  ;;  %1375 = vmatpush.msrb.mxu3 %v1345_v30  ;;  %v1502_v27 = vld [vmem:[#allocation8 + $0x568] sm:$0xff]  ;;  %v1520_v30 = vld [vmem:[#allocation8 + $0x5f8] sm:$0xff] }
 0xaa5   :  { %v1153_v23 = vsel %vm183_vm1, %v1152_v20, 0.0  ;;  %v1356_v20 = vld [vmem:[#allocation7 + $0x5d8] sm:$0xff] }
 0xaa6   :  { %1154 = vadd.xlane.f32.xlu2 %v1153_v23  ;;  %1433 = vmatpush.msra.mxu2 %v1356_v20  ;;  %v1488_v20 = vld [vmem:[#allocation8 + $0x4f8] sm:$0xff] }
 0xaa7   :  { %1395 = vmatpush.msra.mxu0 %v1346_v31  ;;  %1376 = vmatpush.msrb.mxu3 %v1341_v26  ;;  %v1471_v31 = vld [vmem:[#allocation8 + $0x470] sm:$0xff] }
 0xaa8   :  { %1434 = vmatpush.msra.mxu2 %v1352_v29  ;;  %v1519_v26 = vld [vmem:[#allocation8 + $0x5f0] sm:$0xff] }
 0xaa9   :  { %1396 = vmatpush.msra.mxu0 %v1342_v36  ;;  %1377 = vmatpush.msrb.mxu3 %v1337_v37  ;;  %v1484_v37 = vld [vmem:[#allocation8 + $0x4d8] sm:$0xff] }
 0xaaa   :  { %1435 = vmatpush.msra.mxu2 %v1348_v33  ;;  %v1501_v33 = vld [vmem:[#allocation8 + $0x560] sm:$0xff] }
 0xaab   :  { %1397 = vmatpush.msra.mxu0 %v1338_v38  ;;  %1378 = vmatpush.msrb.mxu3 %v1333_v42  ;;  %v1500_v38 = vld [vmem:[#allocation8 + $0x558] sm:$0xff]  ;;  %v1499_v42 = vld [vmem:[#allocation8 + $0x550] sm:$0xff] }
 0xaac   :  { %1436 = vmatpush.msra.mxu2 %v1344_v34  ;;  %v1518_v34 = vld [vmem:[#allocation8 + $0x5e8] sm:$0xff] }
 0xaad   :  { %1379 = vmatpush.msrb.mxu3 %v1329_v46  ;;  %v1498_v46 = vld [vmem:[#allocation8 + $0x548] sm:$0xff] }
 0xb19   :  { %v1155_v40 = vpop.xlane.xlu2 %1154 }
 0xb1a   :  { %v1156_v41 = vmul.f32 %v1155_v40, %v2108_v16  ;;  %v1339_v40 = vld [vmem:[#allocation7 + $0x550] sm:$0xff] }
 0xb1c   :  { %v1157_v43 = vadd.f32 1e-05, %v1156_v41  ;;  %v1340_v41 = vld [vmem:[#allocation7 + $0x558] sm:$0xff] }
 0xb1d   :  { %1437 = vmatpush.msra.mxu2 %v1340_v41  ;;  %v1483_v41 = vld [vmem:[#allocation8 + $0x4d0] sm:$0xff] }
 0xb1e   :  { %1819 = vrsqrt.f32 %v1157_v43  ;;  %vm1164_vm4 = vweird.f32 %v1157_v43 }
 0xb1f   :  { %1438 = vmatpush.msra.mxu2 %v1336_v45  ;;  %v1482_v45 = vld [vmem:[#allocation8 + $0x4c8] sm:$0xff] }
 0xb21   :  { %1439 = vmatpush.msra.mxu2 %v1332_v49  ;;  %v1481_v49 = vld [vmem:[#allocation8 + $0x4c0] sm:$0xff] }
 0xb23   :  { %1440 = vmatpush.msra.mxu2 %v1328_v52  ;;  %v1514_v52 = vld [vmem:[#allocation8 + $0x5c8] sm:$0xff] }
 0xb24   :  { %v1820_v47 = vpop.eup %1819 }
 0xb25   :  { %v1159_v48 = vmul.f32 %v1820_v47, %v1157_v43  ;;  %vm1165_vm3 = vweird.f32 %v1820_v47  ;;  %v1334_v43 = vld [vmem:[#allocation7 + $0x528] sm:$0xff]  ;;  %1441 = vmatpush.msra.mxu2 %v1324_v56  ;;  %v1465_v56 = vld [vmem:[#allocation8 + $0x440] sm:$0xff] }
 0xb26   :  { %vm1166_vm5 = vmor %vm1164_vm4, %vm1165_vm3  ;;  %1398 = vmatpush.msra.mxu0 %v1334_v43  ;;  %v1468_v43 = vld [vmem:[#allocation8 + $0x458] sm:$0xff] }
 0xb27   :  { %v1160_v51 = vmul.f32 %v1820_v47, %v1159_v48  ;;  %v1325_v48 = vld [vmem:[#allocation7 + $0x4e0] sm:$0xff] }
 0xb28   :  { %1399 = vmatpush.msra.mxu0 %v1330_v39  ;;  %1380 = vmatpush.msrb.mxu3 %v1325_v48  ;;  %v1467_v39 = vld [vmem:[#allocation8 + $0x450] sm:$0xff]  ;;  %v1497_v48 = vld [vmem:[#allocation8 + $0x540] sm:$0xff] }
 0xb29   :  { %v1161_v53 = vmul.f32 0.5, %v1160_v51  ;;  %v1327_v51 = vld [vmem:[#allocation7 + $0x4f0] sm:$0xff] }
 0xb2a   :  { %1400 = vmatpush.msra.mxu0 %v1326_v50 }
 0xb2b   :  { %v1162_v55 = vsub.f32 1.5, %v1161_v53  ;;  %v1321_v53 = vld [vmem:[#allocation7 + $0x4c0] sm:$0xff] }
 0xb2c   :  { %1381 = vmatpush.msrb.mxu3 %v1321_v53  ;;  %1401 = vmatpush.msra.mxu0 %v1322_v54  ;;  %v1480_v54 = vld [vmem:[#allocation8 + $0x4b8] sm:$0xff] }
 0xb2d   :  { %v1163_v57 = vmul.f32 %v1820_v47, %v1162_v55  ;;  %v1323_v55 = vld [vmem:[#allocation7 + $0x4d0] sm:$0xff] }
 0xb2f   :  { %v1167_v60 = vsel %vm1166_vm5, %v1820_v47, %v1163_v57  ;;  %v1331_v47 = vld [vmem:[#allocation7 + $0x510] sm:$0xff]  ;;  %v1317_v57 = vld [vmem:[#allocation7 + $0x4a0] sm:$0xff] }
 0xb30   :  { %v1168_v61 = vmul.f32 %v1167_v60, %v2242_v19  ;;  %v1355_v19 = vld [vmem:[#allocation7 + $0x5d0] sm:$0xff]  ;;  %1382 = vmatpush.msrb.mxu3 %v1317_v57  ;;  %v1320_v60 = vld [vmem:[#allocation7 + $0x4b8] sm:$0xff]  ;;  %v1513_v57 = vld [vmem:[#allocation8 + $0x5c0] sm:$0xff] }
 0xb31   :  { %1413 = vmatpush.msra.mxu1 %v1355_v19  ;;  %1442 = vmatpush.msra.mxu2 %v1320_v60  ;;  %v1300_v19 = vld [vmem:[#allocation7 + $0x418] sm:$0xff]  ;;  %v1495_v60 = vld [vmem:[#allocation8 + $0x530] sm:$0xff] }
 0xb32   :  { %v1172_v63 = vmul.f32 %v1794_v58, %v1168_v61  ;;  %v1318_v58 = vld [vmem:[#allocation7 + $0x4a8] sm:$0xff]  ;;  %v1313_v61 = vld [vmem:[#allocation7 + $0x480] sm:$0xff] }
 0xb33   :  { %1414 = vmatpush.msra.mxu1 %v1351_v28  ;;  %1402 = vmatpush.msra.mxu0 %v1318_v58  ;;  %v1472_v28 = vld [vmem:[#allocation8 + $0x478] sm:$0xff] }
 0xb34   :  { %v1176_v0 = vadd.f32 %v1795_v62, %v1172_v63  ;;  %v1314_v62 = vld [vmem:[#allocation7 + $0x488] sm:$0xff]  ;;  %v1315_v63 = vld [vmem:[#allocation7 + $0x490] sm:$0xff]  ;;  %1383 = vmatpush.msrb.mxu3 %v1313_v61  ;;  %v1464_v61 = vld [vmem:[#allocation8 + $0x438] sm:$0xff] }
 0xb35   :  { %1415 = vmatpush.msra.mxu1 %v1347_v32  ;;  %1403 = vmatpush.msra.mxu0 %v1314_v62  ;;  %v1485_v32 = vld [vmem:[#allocation8 + $0x4e0] sm:$0xff]  ;;  %v1512_v62 = vld [vmem:[#allocation8 + $0x5b8] sm:$0xff] }
 0xb36   :  { %1215 = vmatmul.f32.vlgmr.msrb.gmra.mxu1 %v1176_v0  ;;  %v1316_v0 = vld [vmem:[#allocation7 + $0x498] sm:$0xff]  ;;  %1384 = vmatpush.msrb.mxu3 %v1309_v1  ;;  %v1494_v1 = vld [vmem:[#allocation8 + $0x528] sm:$0xff] }
 0xb37   :  { %1416 = vmatpush.msra.mxu1 %v1343_v35  ;;  %1443 = vmatpush.msra.mxu2 %v1316_v0  ;;  %v1470_v35 = vld [vmem:[#allocation8 + $0x468] sm:$0xff] }
 0xb38   :  { %1404 = vmatpush.msra.mxu0 %v1310_v2  ;;  %v1478_v0 = vld [vmem:[#allocation8 + $0x4a8] sm:$0xff]  ;;  %v1463_v2 = vld [vmem:[#allocation8 + $0x430] sm:$0xff] }
 0xb39   :  { %1417 = vmatpush.msra.mxu1 %v1339_v40  ;;  %v1517_v40 = vld [vmem:[#allocation8 + $0x5e0] sm:$0xff] }
 0xb3b   :  { %1418 = vmatpush.msra.mxu1 %v1335_v44  ;;  %v1516_v44 = vld [vmem:[#allocation8 + $0x5d8] sm:$0xff] }
 0xb3d   :  { %1419 = vmatpush.msra.mxu1 %v1331_v47  ;;  %v1515_v47 = vld [vmem:[#allocation8 + $0x5d0] sm:$0xff] }
 0xb3f   :  { %1420 = vmatpush.msra.mxu1 %v1327_v51  ;;  %v1466_v51 = vld [vmem:[#allocation8 + $0x448] sm:$0xff] }
 0xb41   :  { %1421 = vmatpush.msra.mxu1 %v1323_v55  ;;  %v1496_v55 = vld [vmem:[#allocation8 + $0x538] sm:$0xff] }
 0xb43   :  { %1422 = vmatpush.msra.mxu1 %v1319_v59  ;;  %v1479_v59 = vld [vmem:[#allocation8 + $0x4b0] sm:$0xff] }
 0xb45   :  { %1423 = vmatpush.msra.mxu1 %v1315_v63 }
 0xbb3   :  { %v1216_v4 = vpop.f32.mrf.mxu1 }
 0xbb4   :  { %v1217_v5 = vadd.f32 %v1796_v3, %v1216_v4  ;;  %v1311_v3 = vld [vmem:[#allocation7 + $0x470] sm:$0xff]  ;;  %v1312_v4 = vld [vmem:[#allocation7 + $0x478] sm:$0xff] }
 0xbb5   :  { %1424 = vmatpush.msra.mxu1 %v1311_v3  ;;  %1444 = vmatpush.msra.mxu2 %v1312_v4  ;;  %v1511_v3 = vld [vmem:[#allocation8 + $0x5b0] sm:$0xff] }
 0xbb6   :  { %1257 = vmatmul.f32.vlgmr.msrb.gmra.mxu2 %v1217_v5  ;;  %v1305_v5 = vld [vmem:[#allocation7 + $0x440] sm:$0xff] }
 0xbb7   :  { %1385 = vmatpush.msrb.mxu3 %v1305_v5  ;;  %v1477_v5 = vld [vmem:[#allocation8 + $0x4a0] sm:$0xff] }
 0xc39   :  { %v1258_v7 = vpop.f32.mrf.mxu2 }
 0xc3a   :  { %v1259_v8 = vadd.f32 %v1797_v6, %v1258_v7  ;;  %v1306_v6 = vld [vmem:[#allocation7 + $0x448] sm:$0xff]  ;;  %v1307_v7 = vld [vmem:[#allocation7 + $0x450] sm:$0xff] }
 0xc3b   :  { %1405 = vmatpush.msra.mxu0 %v1306_v6  ;;  %1425 = vmatpush.msra.mxu1 %v1307_v7  ;;  %v1493_v6 = vld [vmem:[#allocation8 + $0x520] sm:$0xff] }
 0xc3c   :  { %v2262_v9 = vadd.f32 %v1259_v8, %v2236_v12  ;;  %v1308_v8 = vld [vmem:[#allocation7 + $0x458] sm:$0xff] }
 0xc3d   :  { %1445 = vmatpush.msra.mxu2 %v1308_v8  ;;  %1406 = vmatpush.msra.mxu0 %v1302_v11  ;;  %v1476_v8 = vld [vmem:[#allocation8 + $0x498] sm:$0xff]  ;;  %v1798_v11 = vld [vmem:[%s2397_s12 + $0x2] ss:$0 sm:$0xff] }
 0xc3e   :  { %v1266_v10 = vsel %vm183_vm1, %v2262_v9, 0.0  ;;  %1426 = vmatpush.msra.mxu1 %v1303_v13 }
 0xc3f   :  { %1267 = vadd.xlane.f32.xlu0 %v1266_v10  ;;  %v1301_v10 = vld [vmem:[#allocation7 + $0x420] sm:$0xff]  ;;  %1446 = vmatpush.msra.mxu2 %v1304_v14 }
 0xc40   :  { %1386 = vmatpush.msrb.mxu3 %v1301_v10  ;;  %1407 = vmatpush.msra.mxu0 %v1298_v17  ;;  %v1492_v10 = vld [vmem:[#allocation8 + $0x518] sm:$0xff] }
 0xc41   :  { %1427 = vmatpush.msra.mxu1 %v1299_v18  ;;  %1447 = vmatpush.msra.mxu2 %v1300_v19  ;;  %v1462_v19 = vld [vmem:[#allocation8 + $0x428] sm:$0xff] }
 0xc42   :  { %1387 = vmatpush.msrb.mxu3 %v1297_v15  ;;  %1546 = vmatpush.msrb.mxu0 %v1488_v20  ;;  %v1799_v15 = vld [vmem:[%s2398_s13 + $0x2] ss:$0 sm:$0xff]  ;;  %v1475_v20 = vld [vmem:[#allocation8 + $0x490] sm:$0xff] }
 0xc43   :  { %1586 = vmatpush.msrb.mxu2 %v1520_v30  ;;  %v1508_v30 = vld [vmem:[#allocation8 + $0x598] sm:$0xff] }
 0xc44   :  { %1526 = vmatpush.msra.mxu3 %v1472_v28  ;;  %v1473_v28 = vld [vmem:[#allocation8 + $0x480] sm:$0xff] }
 0xc45   :  { %1587 = vmatpush.msrb.mxu2 %v1519_v26  ;;  %v1506_v26 = vld [vmem:[#allocation8 + $0x588] sm:$0xff] }
 0xc46   :  { %1527 = vmatpush.msra.mxu3 %v1471_v31  ;;  %v1459_v31 = vld [vmem:[#allocation8 + $0x410] sm:$0xff] }
 0xc47   :  { %1588 = vmatpush.msrb.mxu2 %v1518_v34  ;;  %v1622_v34 = vld [vmem:[%s2403_s18 + $0x78] sm:$0xff] }
 0xc48   :  { %1528 = vmatpush.msra.mxu3 %v1470_v35  ;;  %v1505_v35 = vld [vmem:[#allocation8 + $0x580] sm:$0xff] }
 0xc49   :  { %1589 = vmatpush.msrb.mxu2 %v1517_v40  ;;  %v1763_v40 = vld [vmem:[%s2400_s15 + $0x8] sm:$0xf] }
 0xc4b   :  { %1590 = vmatpush.msrb.mxu2 %v1516_v44 }
 0xc4d   :  { %1591 = vmatpush.msrb.mxu2 %v1515_v47  ;;  %v1364_v47 = vperm.slane %v1763_v40, 0 }
 0xc4f   :  { %1592 = vmatpush.msrb.mxu2 %v1514_v52 }
 0xc51   :  { %1593 = vmatpush.msrb.mxu2 %v1513_v57  ;;  %v1617_v57 = vld [vmem:[%s2403_s18 + $0x50] sm:$0xff] }
 0xc53   :  { %1594 = vmatpush.msrb.mxu2 %v1512_v62  ;;  %v1612_v62 = vld [vmem:[%s2403_s18 + $0x28] sm:$0xff] }
 0xc55   :  { %1595 = vmatpush.msrb.mxu2 %v1511_v3  ;;  %v1607_v3 = vld [vmem:[%s2403_s18] sm:$0xff] }
 0xcb2   :  { %v1268_v12 = vpop.xlane.xlu0 %1267 }
 0xcb3   :  { %v1269_v23 = vmul.f32 %v1268_v12, %v2108_v16  ;;  %v1504_v12 = vld [vmem:[#allocation8 + $0x578] sm:$0xff] }
 0xcb4   :  { %1566 = vmatpush.msrb.mxu1 %v1504_v12  ;;  %v1491_v12 = vld [vmem:[#allocation8 + $0x510] sm:$0xff] }
 0xcb5   :  { %v2268_v21 = vsub.f32 %v2262_v9, %v1269_v23  ;;  %v1487_v23 = vld [vmem:[#allocation8 + $0x4f0] sm:$0xff] }
 0xcb6   :  { %1547 = vmatpush.msrb.mxu0 %v1487_v23  ;;  %v1510_v23 = vld [vmem:[#allocation8 + $0x5a8] sm:$0xff] }
 0xcb7   :  { %v1271_v22 = vmul.f32 %v2268_v21, %v2268_v21  ;;  %1596 = vmatpush.msrb.mxu2 %v1510_v23 }
 0xcb8   :  { %1548 = vmatpush.msrb.mxu0 %v1486_v25  ;;  %v1509_v25 = vld [vmem:[#allocation8 + $0x5a0] sm:$0xff] }
 0xcb9   :  { %v1272_v24 = vsel %vm183_vm1, %v1271_v22, 0.0  ;;  %v1503_v22 = vld [vmem:[#allocation8 + $0x570] sm:$0xff]  ;;  %1597 = vmatpush.msrb.mxu2 %v1509_v25 }
 0xcba   :  { %1273 = vadd.xlane.f32.xlu1 %v1272_v24  ;;  %1567 = vmatpush.msrb.mxu1 %v1503_v22  ;;  %v1474_v22 = vld [vmem:[#allocation8 + $0x488] sm:$0xff] }
 0xcbb   :  { %1549 = vmatpush.msrb.mxu0 %v1485_v32  ;;  %1598 = vmatpush.msrb.mxu2 %v1508_v30  ;;  %v1507_v32 = vld [vmem:[#allocation8 + $0x590] sm:$0xff] }
 0xcbc   :  { %1568 = vmatpush.msrb.mxu1 %v1502_v27  ;;  %v1460_v27 = vld [vmem:[#allocation8 + $0x418] sm:$0xff] }
 0xcbd   :  { %1550 = vmatpush.msrb.mxu0 %v1484_v37  ;;  %1599 = vmatpush.msrb.mxu2 %v1507_v32  ;;  %v1621_v37 = vld [vmem:[%s2403_s18 + $0x70] sm:$0xff]  ;;  %v1695_v32 = vld [vmem:[%s2407_s22 + $0x38] sm:$0xff] }
 0xcbe   :  { %1569 = vmatpush.msrb.mxu1 %v1501_v33  ;;  %v1458_v33 = vld [vmem:[#allocation8 + $0x408] sm:$0xff] }
 0xcbf   :  { %1551 = vmatpush.msrb.mxu0 %v1483_v41  ;;  %1600 = vmatpush.msrb.mxu2 %v1506_v26  ;;  %v1365_v41 = vperm.slane %v1763_v40, 1  ;;  %v1693_v26 = vld [vmem:[%s2407_s22 + $0x28] sm:$0xff] }
 0xcc0   :  { %1570 = vmatpush.msrb.mxu1 %v1500_v38  ;;  %v1620_v38 = vld [vmem:[%s2403_s18 + $0x68] sm:$0xff] }
 0xcc1   :  { %1552 = vmatpush.msrb.mxu0 %v1482_v45  ;;  %1601 = vmatpush.msrb.mxu2 %v1505_v35  ;;  %v1691_v35 = vld [vmem:[%s2407_s22 + $0x18] sm:$0xff] }
 0xcc2   :  { %1571 = vmatpush.msrb.mxu1 %v1499_v42  ;;  %v1366_v42 = vperm.slane %v1763_v40, 2 }
 0xcc3   :  { %1553 = vmatpush.msrb.mxu0 %v1481_v49 }
 0xcc4   :  { %1572 = vmatpush.msrb.mxu1 %v1498_v46 }
 0xcc5   :  { %1554 = vmatpush.msrb.mxu0 %v1480_v54 }
 0xcc6   :  { %1573 = vmatpush.msrb.mxu1 %v1497_v48  ;;  %v1367_v48 = vperm.slane %v1763_v40, 3 }
 0xcc7   :  { %1555 = vmatpush.msrb.mxu0 %v1479_v59  ;;  %v1615_v59 = vld [vmem:[%s2403_s18 + $0x40] sm:$0xff] }
 0xcc8   :  { %1574 = vmatpush.msrb.mxu1 %v1496_v55 }
 0xcc9   :  { %1556 = vmatpush.msrb.mxu0 %v1478_v0  ;;  %v1610_v0 = vld [vmem:[%s2403_s18 + $0x18] sm:$0xff] }
 0xcca   :  { %1575 = vmatpush.msrb.mxu1 %v1495_v60  ;;  %v1614_v60 = vld [vmem:[%s2403_s18 + $0x38] sm:$0xff] }
 0xccb   :  { %1557 = vmatpush.msrb.mxu0 %v1477_v5 }
 0xccc   :  { %1576 = vmatpush.msrb.mxu1 %v1494_v1  ;;  %v1609_v1 = vld [vmem:[%s2403_s18 + $0x10] sm:$0xff] }
 0xccd   :  { %1558 = vmatpush.msrb.mxu0 %v1476_v8 }
 0xcce   :  { %1577 = vmatpush.msrb.mxu1 %v1493_v6 }
 0xccf   :  { %1559 = vmatpush.msrb.mxu0 %v1475_v20 }
 0xcd0   :  { %1578 = vmatpush.msrb.mxu1 %v1492_v10 }
 0xcd1   :  { %1560 = vmatpush.msrb.mxu0 %v1474_v22 }
 0xcd2   :  { %1579 = vmatpush.msrb.mxu1 %v1491_v12  ;;  %v1938_v12 = vmov 64.0  }
 0xcd3   :  { %1561 = vmatpush.msrb.mxu0 %v1473_v28 }
 0xd2d   :  { %v1274_v24 = vpop.xlane.xlu1 %1273 }
 0xd2e   :  { %v1275_v29 = vmul.f32 %v1274_v24, %v2108_v16  ;;  %v1469_v16 = vld [vmem:[#allocation8 + $0x460] sm:$0xff]  ;;  %v1490_v24 = vld [vmem:[#allocation8 + $0x508] sm:$0xff] }
 0xd2f   :  { %1529 = vmatpush.msra.mxu3 %v1469_v16  ;;  %1580 = vmatpush.msrb.mxu1 %v1490_v24  ;;  %v1619_v16 = vld [vmem:[%s2403_s18 + $0x60] sm:$0xff] }
 0xd30   :  { %v2274_v36 = vadd.f32 1e-05, %v1275_v29  ;;  %v1489_v29 = vld [vmem:[#allocation8 + $0x500] sm:$0xff] }
 0xd31   :  { %1530 = vmatpush.msra.mxu3 %v1468_v43  ;;  %1581 = vmatpush.msrb.mxu1 %v1489_v29 }
 0xd32   :  { %1821 = vrsqrt.f32 %v2274_v36  ;;  %vm1283_vm6 = vweird.f32 %v2274_v36 }
 0xd33   :  { %1531 = vmatpush.msra.mxu3 %v1467_v39  ;;  %1823 = vrcp.f32 %v1938_v12 }
 0xd35   :  { %1532 = vmatpush.msra.mxu3 %v1466_v51 }
 0xd37   :  { %1533 = vmatpush.msra.mxu3 %v1465_v56  ;;  %v1618_v56 = vld [vmem:[%s2403_s18 + $0x58] sm:$0xff] }
 0xd38   :  { %v1822_v50 = vpop.eup %1821 }
 0xd39   :  { %v1278_v53 = vmul.f32 %v1822_v50, %v2274_v36  ;;  %vm1284_vm1 = vweird.f32 %v1822_v50  ;;  %1534 = vmatpush.msra.mxu3 %v1464_v61  ;;  %v1457_v36 = vld [vmem:[#allocation8 + $0x400] sm:$0xff]  ;;  %v1613_v61 = vld [vmem:[%s2403_s18 + $0x30] sm:$0xff]  ;;  %v1824_v23 = vpop.eup %1823 }
 0xd3a   :  { %vm1285_vm7 = vmor %vm1283_vm6, %vm1284_vm1  ;;  %vm1658_vm9 = vweird.f32 %v1824_v23 }
 0xd3b   :  { %v1279_v58 = vmul.f32 %v1822_v50, %v1278_v53  ;;  %1535 = vmatpush.msra.mxu3 %v1463_v2  ;;  %v1608_v2 = vld [vmem:[%s2403_s18 + $0x8] sm:$0xff] }
 0xd3d   :  { %v1280_v63 = vmul.f32 0.5, %v1279_v58  ;;  %1536 = vmatpush.msra.mxu3 %v1462_v19  ;;  %v1616_v58 = vld [vmem:[%s2403_s18 + $0x48] sm:$0xff] }
 0xd3f   :  { %v1281_v4 = vsub.f32 1.5, %v1280_v63  ;;  %v1611_v63 = vld [vmem:[%s2403_s18 + $0x20] sm:$0xff] }
 0xd41   :  { %v1282_v7 = vmul.f32 %v1822_v50, %v1281_v4  ;;  %v1800_v4 = vld [vmem:[%s2402_s17 + $0x2] ss:$0 sm:$0xff] }
 0xd43   :  { %v1286_v13 = vsel %vm1285_vm7, %v1822_v50, %v1282_v7 }
 0xd44   :  { %v1287_v14 = vmul.f32 %v1286_v13, %v2268_v21  ;;  %v1461_v21 = vld [vmem:[#allocation8 + $0x420] sm:$0xff] }
 0xd45   :  { %1537 = vmatpush.msra.mxu3 %v1461_v21  ;;  %v1654_v21 = vmul.f32 64.0, %v1824_v23 }
 0xd46   :  { %v1291_v17 = vmul.f32 %v1798_v11, %v1287_v14 }
 0xd47   :  { %1538 = vmatpush.msra.mxu3 %v1460_v27  ;;  %v1655_v22 = vsub.f32 1.0, %v1654_v21 }
 0xd48   :  { %v1295_v18 = vadd.f32 %v1799_v15, %v1291_v17  ;;  %v1801_v17 = vld [vmem:[%s2404_s19] ss:$0 sm:$0xff] }
 0xd49   :  { %1539 = vmatpush.msra.mxu3 %v1459_v31  ;;  %v1656_v24 = vmul.f32 %v1824_v23, %v1655_v22 }
 0xd4a   :  { %1388 = vmatmul.f32.vlgmr.msrb.gmra.mxu3 %v1295_v18  ;;  %1408 = vmatmul.f32.vlgmr.msra.gmra.mxu0 %v1295_v18 }
 0xd4b   :  { %1428 = vmatmul.f32.vlgmr.msra.gmra.mxu1 %v1295_v18  ;;  %1448 = vmatmul.f32.vlgmr.msra.gmra.mxu2 %v1295_v18  ;;  %v1657_v25 = vadd.f32 %v1824_v23, %v1656_v24 }
 0xd4c   :  { %1540 = vmatpush.msra.mxu3 %v1458_v33  ;;  %1712 = vmatpush.msra.mxu0 %v1695_v32  ;;  %v1694_v33 = vld [vmem:[%s2407_s22 + $0x30] sm:$0xff] }
 0xd4e   :  { %1541 = vmatpush.msra.mxu3 %v1457_v36  ;;  %1713 = vmatpush.msra.mxu0 %v1694_v33  ;;  %v1692_v36 = vld [vmem:[%s2407_s22 + $0x20] sm:$0xff] }
 0xd50   :  { %1627 = vmatpush.msrb.mxu3 %v1622_v34  ;;  %1714 = vmatpush.msra.mxu0 %v1693_v26  ;;  %v1690_v34 = vld [vmem:[%s2407_s22 + $0x10] sm:$0xff] }
 0xd52   :  { %1628 = vmatpush.msrb.mxu3 %v1621_v37  ;;  %1715 = vmatpush.msra.mxu0 %v1692_v36  ;;  %v1689_v37 = vld [vmem:[%s2407_s22 + $0x8] sm:$0xff] }
 0xd54   :  { %1629 = vmatpush.msrb.mxu3 %v1620_v38  ;;  %1716 = vmatpush.msra.mxu0 %v1691_v35  ;;  %v1688_v38 = vld [vmem:[%s2407_s22] sm:$0xff] }
 0xd56   :  { %1630 = vmatpush.msrb.mxu3 %v1619_v16  ;;  %1717 = vmatpush.msra.mxu0 %v1690_v34 }
 0xd58   :  { %1631 = vmatpush.msrb.mxu3 %v1618_v56  ;;  %1718 = vmatpush.msra.mxu0 %v1689_v37 }
 0xd5a   :  { %1632 = vmatpush.msrb.mxu3 %v1617_v57  ;;  %1719 = vmatpush.msra.mxu0 %v1688_v38  ;;  %v1805_v57 = vld [vmem:[%s2409_s24] ss:$0 sm:$0xff] }
 0xd5c   :  { %1633 = vmatpush.msrb.mxu3 %v1616_v58 }
 0xd5e   :  { %1634 = vmatpush.msrb.mxu3 %v1615_v59 }
 0xd60   :  { %1635 = vmatpush.msrb.mxu3 %v1614_v60 }
 0xd62   :  { %1636 = vmatpush.msrb.mxu3 %v1613_v61  ;;  %v1806_v61 = vld [vmem:[#allocation2] ss:$0 sm:$0xff] }
 0xd64   :  { %1637 = vmatpush.msrb.mxu3 %v1612_v62 }
 0xd66   :  { %1638 = vmatpush.msrb.mxu3 %v1611_v63 }
 0xd68   :  { %1639 = vmatpush.msrb.mxu3 %v1610_v0 }
 0xd6a   :  { %1640 = vmatpush.msrb.mxu3 %v1609_v1 }
 0xd6c   :  { %1641 = vmatpush.msrb.mxu3 %v1608_v2 }
 0xd6e   :  { %1642 = vmatpush.msrb.mxu3 %v1607_v3 }
 0xdc7   :  { %v1409_v43 = vpop.f32.mrf.mxu0 }
 0xdc8   :  { %v1410_v44 = vadd.f32 %v1409_v43, %v1365_v41  ;;  %v1429_v45 = vpop.f32.mrf.mxu1 }
 0xdc9   :  { %v1430_v46 = vadd.f32 %v1429_v45, %v1366_v42 }
 0xdca   :  { %v1453_v39 = vmax.f32 %v1410_v44, 0.0 }
 0xdcb   :  { %v1454_v49 = vmax.f32 %v1430_v46, 0.0 }
 0xdcc   :  { %1562 = vmatmul.f32.vlgmr.msrb.gmra.mxu0 %v1453_v39 }
 0xdcd   :  { %1582 = vmatmul.f32.vlgmr.msrb.gmra.mxu1 %v1454_v49  ;;  %v1389_v50 = vpop.f32.mrf.mxu3 }
 0xdce   :  { %v1390_v51 = vadd.f32 %v1389_v50, %v1364_v47  ;;  %v1449_v52 = vpop.f32.mrf.mxu2  ;;  %v1802_v47 = vld [vmem:[%s2405_s20] ss:$0 sm:$0xff] }
 0xdcf   :  { %v1450_v53 = vadd.f32 %v1449_v52, %v1367_v48  ;;  %v1803_v50 = vld [vmem:[%s2406_s21] ss:$0 sm:$0xff] }
 0xdd0   :  { %v1452_v54 = vmax.f32 %v1390_v51, 0.0 }
 0xdd1   :  { %v1455_v55 = vmax.f32 %v1450_v53, 0.0 }
 0xdd2   :  { %1542 = vmatmul.f32.vlgmr.msra.gmra.mxu3 %v1452_v54  ;;  %v1804_v54 = vld [vmem:[%s2408_s23] ss:$0 sm:$0xff] }
 0xdd3   :  { %1602 = vmatmul.f32.vlgmr.msrb.gmra.mxu2 %v1455_v55 }
 0xe49   :  { %v1563_v7 = vpop.f32.mrf.mxu0 }
 0xe4a   :  { %v1583_v10 = vpop.f32.mrf.mxu1 }
 0xe55   :  { %v1543_v5 = vpop.f32.mrf.mxu3 }
 0xe56   :  { %v1544_v6 = vadd.f32 %v1800_v4, %v1543_v5  ;;  %v1603_v13 = vpop.f32.mrf.mxu2 }
 0xe58   :  { %v1564_v8 = vadd.f32 %v1563_v7, %v1544_v6 }
 0xe5a   :  { %v1584_v11 = vadd.f32 %v1583_v10, %v1564_v8 }
 0xe5c   :  { %v1604_v14 = vadd.f32 %v1603_v13, %v1584_v11 }
 0xe5e   :  { %v1606_v15 = vadd.f32 %v1604_v14, %v2262_v9  ;;  %v1659_v9 = vsel %vm1658_vm9, %v1824_v23, %v1657_v25 }
 0xe60   :  { %1643 = vmatmul.f32.vlgmr.msrb.gmra.mxu3 %v1606_v15 }
 0xee3   :  { %v1644_v18 = vpop.f32.mrf.mxu3 }
 0xee4   :  { %v1645_v19 = vadd.f32 %v1801_v17, %v1644_v18 }
 0xee6   :  { %v1650_v20 = vsel %vm1649_vm8, %v1645_v19, 0.0 }
 0xee7   :  { %1651 = vadd.xlane.f32.xlu2 %v1650_v20 }
 0xf5a   :  { %v1652_v27 = vpop.xlane.xlu2 %1651 }
 0xf5b   :  { %v1660_v28 = vmul.f32 %v1659_v9, %v1652_v27 }
 0xf5d   :  { %v1661_v29 = vsub.f32 %v1645_v19, %v1660_v28 }
 0xf5f   :  { %v1662_v30 = vmul.f32 %v1661_v29, %v1661_v29 }
 0xf61   :  { %v1663_v31 = vsel %vm1649_vm8, %v1662_v30, 0.0 }
 0xf62   :  { %1664 = vadd.xlane.f32.xlu0 %v1663_v31 }
 0xfd5   :  { %v1665_v16 = vpop.xlane.xlu0 %1664 }
 0xfd6   :  { %v1666_v40 = vmul.f32 %v1665_v16, %v1659_v9 }
 0xfd8   :  { %v1667_v41 = vadd.f32 1e-05, %v1666_v40 }
 0xfda   :  { %1825 = vrsqrt.f32 %v1667_v41  ;;  %vm1674_vm11 = vweird.f32 %v1667_v41 }
 0xfe0   :  { %v1826_v42 = vpop.eup %1825 }
 0xfe1   :  { %v1669_v43 = vmul.f32 %v1826_v42, %v1667_v41  ;;  %vm1675_vm10 = vweird.f32 %v1826_v42 }
 0xfe2   :  { %vm1676_vm12 = vmor %vm1674_vm11, %vm1675_vm10 }
 0xfe3   :  { %v1670_v44 = vmul.f32 %v1826_v42, %v1669_v43 }
 0xfe5   :  { %v1671_v45 = vmul.f32 0.5, %v1670_v44 }
 0xfe7   :  { %v1672_v46 = vsub.f32 1.5, %v1671_v45 }
 0xfe9   :  { %v1673_v39 = vmul.f32 %v1826_v42, %v1672_v46 }
 0xfeb   :  { %v1677_v49 = vsel %vm1676_vm12, %v1826_v42, %v1673_v39 }
 0xfec   :  { %v1678_v48 = vmul.f32 %v1677_v49, %v1661_v29 }
 0xfee   :  { %v1682_v51 = vmul.f32 %v1802_v47, %v1678_v48 }
 0xff0   :  { %v1686_v52 = vadd.f32 %v1803_v50, %v1682_v51 }
 0xff2   :  { %v1687_v53 = vmax.f32 %v1686_v52, 0.0 }
 0xff4   :  { %1765 = vmatmul.msk.f32.vlgmr.msra.gmra.mxu0 %vm1700_vm13, %v1687_v53 }
0x1071   :  { %v1721_v55 = vpop.f32.mrf.mxu0 }
0x1072   :  { %v1722_v56 = vadd.f32 %v1804_v54, %v1721_v55 }
0x1074   :  { %v1724_v58 = vmax.f32 %v1722_v56, 0.0 }
0x1076   :  { %v1729_v59 = vmul.f32 %v1805_v57, %v1724_v58 }
0x1078   :  { %v1731_v60 = vsel %vm1730_vm14, %v1729_v59, 0.0 }
0x1079   :  { %1732 = vadd.xlane.f32.xlu1 %v1731_v60 }
0x10ec   :  { %v1733_v62 = vpop.xlane.xlu1 %1732 }
0x10ed   :  { %v1738_v63 = vadd.f32 %v1806_v61, %v1733_v62 }
0x10ef   :  { %1740 = vst.msk [vmem:[%s2439_s27] sm:$0x3] %vm1739_vm15, %v1738_v63 }
0x10f0   :  { %1745 = vsyncpa [#allocation4], 1 }
0x10f1   :  { %1746 = vsyncpa [#allocation6], 1 }
0x10f2   :  { %1747 = vsyncpa [#allocation9], 1 }

</bundles_post_ra>
